<compile_context>
chip_gen: v6e
topology: v6e:2x2x1
jax: 0.10.0
libtpu: 0.0.40
codegen_flags: <defaults>
</compile_context>

<pallas_src>
import jax
import jax.numpy as jnp
from jax import lax
from jax.experimental import pallas as pl
from jax.experimental.pallas import tpu as pltpu

HIDDEN = 64


def lstm_kernel(xT_ref, wrec_ref, fscal_ref, out_ref, pre0_ref):
    T, B = xT_ref.shape
    H = wrec_ref.shape[1]
    H3 = 3 * H
    H4 = 4 * H

    # Pre-packed bf16 recurrent weights, gate order [i, f, o, g].
    w_hh0 = wrec_ref[0]      # (H, 4H) bf16
    w_ih1 = wrec_ref[1]      # (H, 4H) bf16
    w_hh1 = wrec_ref[2]      # (H, 4H) bf16
    b1 = fscal_ref[2:3, :]   # (1, 4H) f32

    # Prologue (off the recurrence path): layer-0 input projection for all T
    # steps -> VMEM scratch slab.  pre0[t] = x[:, t] * W_ih0 + b0.
    w_ih0_row = fscal_ref[0:1, :].reshape(1, 1, H4)   # (1, 1, 4H) f32
    b0_row = fscal_ref[1:2, :].reshape(1, 1, H4)      # (1, 1, 4H) f32
    pre0_ref[...] = xT_ref[...][:, :, None] * w_ih0_row + b0_row

    def gates_to_state(gates, c_prev):
        # Gate order [i, f, o, g]: one wide sigmoid (3H lanes) + one tanh (H).
        sig = jax.nn.sigmoid(gates[:, :H3])
        g = jnp.tanh(gates[:, H3:])
        i = sig[:, 0:H]
        f = sig[:, H:2 * H]
        o = sig[:, 2 * H:H3]
        c = f * c_prev + i * g
        h = o * jnp.tanh(c)
        return h, c

    def step(t, carry):
        h1, c1, h2, c2 = carry

        # Off-critical-path: h2 is the *previous* step's output, so its layer-1
        # contribution (and the +b1 bias) can be issued before this step's
        # layer-0 finishes — K=64 dot, does not extend the serial chain.
        gh2 = jnp.dot(h2.astype(jnp.bfloat16), w_hh1,
                      preferred_element_type=jnp.float32) + b1

        # Layer 0 (critical path): hoisted input projection + recurrent dot.
        gates1 = pre0_ref[t] + jnp.dot(h1.astype(jnp.bfloat16), w_hh0,
                                       preferred_element_type=jnp.float32)
        h1n, c1n = gates_to_state(gates1, c1)

        # Layer 1 (eval mode: no dropout on h1n): only the h1n-dependent K=64
        # dot remains on the chain; no per-step concatenate.
        gates2 = gh2 + jnp.dot(h1n.astype(jnp.bfloat16), w_ih1,
                               preferred_element_type=jnp.float32)
        h2n, c2n = gates_to_state(gates2, c2)
        return (h1n, c1n, h2n, c2n)

    z = jnp.zeros((B, H), jnp.float32)
    _, _, h2, _ = lax.fori_loop(0, T, step, (z, z, z, z), unroll=True)

    # fc: Linear(H, 1) applied to hidden[-1] == h2 (one-shot epilogue store).
    w_fc = fscal_ref[3:4, 0:H]     # (1, H)
    b_fc = fscal_ref[4:5, 0:1]     # (1, 1)
    out_ref[...] = jnp.sum(h2 * w_fc, axis=-1, keepdims=True) + b_fc


@jax.jit
def lstm_forward(x, kernel_params):
    """x: (B, T) float32 -> (B, 1) float32."""
    wrec, fscal = kernel_params
    B, T = x.shape
    H = wrec.shape[1]
    return pl.pallas_call(
        lstm_kernel,
        out_shape=jax.ShapeDtypeStruct((B, 1), jnp.float32),
        in_specs=[pl.BlockSpec(memory_space=pltpu.MemorySpace.VMEM)] * 3,
        out_specs=pl.BlockSpec(memory_space=pltpu.MemorySpace.VMEM),
        scratch_shapes=[pltpu.VMEM((T, B, 4 * H), jnp.float32)],
    )(x.T, wrec, fscal)


def init_raw_params(key, hidden=HIDDEN):
    """Raw PyTorch-layout parameters (gate order [i, f, g, o], untransposed)."""
    ks = jax.random.split(key, 10)
    scale = 0.1
    n = jax.random.normal
    return dict(
        w_ih0=n(ks[0], (4 * hidden, 1), jnp.float32) * scale,
        w_hh0=n(ks[1], (4 * hidden, hidden), jnp.float32) * scale,
        b_ih0=n(ks[2], (4 * hidden,), jnp.float32) * scale,
        b_hh0=n(ks[3], (4 * hidden,), jnp.float32) * scale,
        w_ih1=n(ks[4], (4 * hidden, hidden), jnp.float32) * scale,
        w_hh1=n(ks[5], (4 * hidden, hidden), jnp.float32) * scale,
        b_ih1=n(ks[6], (4 * hidden,), jnp.float32) * scale,
        b_hh1=n(ks[7], (4 * hidden,), jnp.float32) * scale,
        w_fc=n(ks[8], (1, hidden), jnp.float32) * scale,
        b_fc=n(ks[9], (1,), jnp.float32) * scale,
    )


def _reorder_gates(w, hidden):
    """Permute PyTorch gate blocks [i, f, g, o] -> kernel order [i, f, o, g]."""
    i = w[0 * hidden:1 * hidden]
    f = w[1 * hidden:2 * hidden]
    g = w[2 * hidden:3 * hidden]
    o = w[3 * hidden:4 * hidden]
    return jnp.concatenate([i, f, o, g], axis=0)


def pack_params(raw, hidden=HIDDEN):
    """Offline repack into two coalesced slabs.

    Slab 1 (bf16, (3, H, 4H)):  [W_hh0; W_ih1; W_hh1], gates reordered,
        transposed to (K, 4H) MXU layout.
    Slab 2 (f32, (8, 4H)):      row0=W_ih0 (input_size=1), row1=b_ih0+b_hh0,
        row2=b_ih1+b_hh1, row3=W_fc (first H lanes), row4=b_fc (broadcast),
        rows 5-7 zero padding.
    """
    H = hidden
    w_hh0 = _reorder_gates(raw["w_hh0"], H).T                       # (H, 4H)
    w_ih1 = _reorder_gates(raw["w_ih1"], H).T                       # (H, 4H)
    w_hh1 = _reorder_gates(raw["w_hh1"], H).T                       # (H, 4H)
    wrec = jnp.stack([w_hh0, w_ih1, w_hh1], axis=0).astype(jnp.bfloat16)

    w_ih0 = _reorder_gates(raw["w_ih0"], H)[:, 0]                   # (4H,)
    b0 = _reorder_gates(raw["b_ih0"] + raw["b_hh0"], H)             # (4H,)
    b1 = _reorder_gates(raw["b_ih1"] + raw["b_hh1"], H)             # (4H,)
    w_fc = jnp.zeros((4 * H,), jnp.float32).at[:H].set(raw["w_fc"][0])
    b_fc = jnp.full((4 * H,), raw["b_fc"][0], jnp.float32)
    fscal = (jnp.zeros((8, 4 * H), jnp.float32)
             .at[0].set(w_ih0).at[1].set(b0).at[2].set(b1)
             .at[3].set(w_fc).at[4].set(b_fc))
    return (wrec, fscal)


def lstm_ref(x, raw, hidden=HIDDEN):
    """Pure-JAX f32 reference using raw PyTorch-layout weights ([i,f,g,o])."""
    H = hidden
    b0 = raw["b_ih0"] + raw["b_hh0"]
    b1 = raw["b_ih1"] + raw["b_hh1"]

    def gate(gates, c_prev):
        i = jax.nn.sigmoid(gates[:, 0:H])
        f = jax.nn.sigmoid(gates[:, H:2 * H])
        g = jnp.tanh(gates[:, 2 * H:3 * H])
        o = jax.nn.sigmoid(gates[:, 3 * H:4 * H])
        c = f * c_prev + i * g
        return o * jnp.tanh(c), c

    def step(carry, x_t):
        h1, c1, h2, c2 = carry
        g1 = x_t[:, None] @ raw["w_ih0"].T + h1 @ raw["w_hh0"].T + b0
        h1, c1 = gate(g1, c1)
        g2 = h1 @ raw["w_ih1"].T + h2 @ raw["w_hh1"].T + b1
        h2, c2 = gate(g2, c2)
        return (h1, c1, h2, c2), None

    B, T = x.shape
    z = jnp.zeros((B, H), jnp.float32)
    (h1, c1, h2, c2), _ = lax.scan(step, (z, z, z, z), x.T)
    return h2 @ raw["w_fc"].T + raw["b_fc"]


if __name__ == "__main__":
    key = jax.random.PRNGKey(0)
    k_x, k_p = jax.random.split(key)

    B, T = 8, 16
    x = jax.random.normal(k_x, (B, T), jnp.float32)
    raw = init_raw_params(k_p)
    kparams = pack_params(raw)

    out = lstm_forward(x, kparams)
    out = jax.block_until_ready(out)

    ref = lstm_ref(x, raw)
    assert out.shape == (B, 1)
    # bf16 MXU operands with f32 accumulation -> loosened tolerance vs f32 ref.
    assert jnp.allclose(out, ref, atol=2e-2, rtol=2e-2), (out, ref)

    print("KERNEL_OK")
</pallas_src>

<mosaic_0001>
module attributes {stable_mosaic.version = 11 : i64} {
  func.func @lstm_kernel(%arg0: memref<16x8xf32, #tpu.memory_space<vmem>>, %arg1: memref<3x64x256xbf16, #tpu.memory_space<vmem>>, %arg2: memref<8x256xf32, #tpu.memory_space<vmem>>, %arg3: memref<8x1xf32, #tpu.memory_space<vmem>>, %arg4: memref<16x8x256xf32, #tpu.memory_space<vmem>>) attributes {dimension_semantics = [], scalar_prefetch = 0 : i64, scratch_operands = 1 : i64, tpu.core_type = #tpu.core_type<tc>} {
    %c0 = arith.constant 0 : index
    %c0_0 = arith.constant 0 : index
    %c0_1 = arith.constant 0 : index
    %0 = vector.load %arg1[%c0, %c0_0, %c0_1] : memref<3x64x256xbf16, #tpu.memory_space<vmem>>, vector<1x64x256xbf16>
    %1 = vector.shape_cast %0 : vector<1x64x256xbf16> to vector<64x256xbf16>
    %c1 = arith.constant 1 : index
    %c0_2 = arith.constant 0 : index
    %c0_3 = arith.constant 0 : index
    %2 = vector.load %arg1[%c1, %c0_2, %c0_3] : memref<3x64x256xbf16, #tpu.memory_space<vmem>>, vector<1x64x256xbf16>
    %3 = vector.shape_cast %2 : vector<1x64x256xbf16> to vector<64x256xbf16>
    %c2 = arith.constant 2 : index
    %c0_4 = arith.constant 0 : index
    %c0_5 = arith.constant 0 : index
    %4 = vector.load %arg1[%c2, %c0_4, %c0_5] : memref<3x64x256xbf16, #tpu.memory_space<vmem>>, vector<1x64x256xbf16>
    %5 = vector.shape_cast %4 : vector<1x64x256xbf16> to vector<64x256xbf16>
    %c2_6 = arith.constant 2 : index
    %c0_7 = arith.constant 0 : index
    %6 = vector.load %arg2[%c2_6, %c0_7] : memref<8x256xf32, #tpu.memory_space<vmem>>, vector<1x256xf32>
    %c0_8 = arith.constant 0 : index
    %c0_9 = arith.constant 0 : index
    %7 = vector.load %arg2[%c0_8, %c0_9] : memref<8x256xf32, #tpu.memory_space<vmem>>, vector<1x256xf32>
    %8 = vector.shape_cast %7 : vector<1x256xf32> to vector<1x1x256xf32>
    %c1_10 = arith.constant 1 : index
    %c0_11 = arith.constant 0 : index
    %9 = vector.load %arg2[%c1_10, %c0_11] : memref<8x256xf32, #tpu.memory_space<vmem>>, vector<1x256xf32>
    %10 = vector.shape_cast %9 : vector<1x256xf32> to vector<1x1x256xf32>
    %c0_12 = arith.constant 0 : index
    %c0_13 = arith.constant 0 : index
    %11 = vector.load %arg0[%c0_12, %c0_13] : memref<16x8xf32, #tpu.memory_space<vmem>>, vector<16x8xf32>
    %12 = vector.shape_cast %11 : vector<16x8xf32> to vector<16x8x1xf32>
    %13 = vector.broadcast %12 : vector<16x8x1xf32> to vector<16x8x256xf32>
    %14 = vector.broadcast %8 : vector<1x1x256xf32> to vector<16x8x256xf32>
    %15 = arith.mulf %13, %14 : vector<16x8x256xf32>
    %16 = vector.broadcast %10 : vector<1x1x256xf32> to vector<16x8x256xf32>
    %17 = arith.addf %15, %16 : vector<16x8x256xf32>
    %c0_14 = arith.constant 0 : index
    %c0_15 = arith.constant 0 : index
    %c0_16 = arith.constant 0 : index
    %18 = vector.load %arg4[%c0_14, %c0_15, %c0_16] : memref<16x8x256xf32, #tpu.memory_space<vmem>>, vector<16x8x256xf32>
    tpu.vector_store %arg4[%c0_14, %c0_15, %c0_16], %17 {strides = array<i32>} : memref<16x8x256xf32, #tpu.memory_space<vmem>>, vector<16x8x256xf32>,
    %cst = arith.constant 0.000000e+00 : f32
    %19 = vector.broadcast %cst : f32 to vector<8x64xf32>
    %c0_i32 = arith.constant 0 : i32
    %20 = arith.truncf %19 : vector<8x64xf32> to vector<8x64xbf16>
    %cst_17 = arith.constant dense<0.000000e+00> : vector<8x256xf32>
    %21 = tpu.matmul %20, %5, %cst_17 {dimension_numbers = #tpu.dot_dimension_numbers<[1], [0], [0], [1], [0, 0, 1, 1], [], []>} : vector<8x64xbf16>, vector<64x256xbf16>, vector<8x256xf32> -> vector<8x256xf32>
    %22 = vector.broadcast %6 : vector<1x256xf32> to vector<8x256xf32>
    %23 = arith.addf %21, %22 : vector<8x256xf32>
    %24 = arith.index_cast %c0_i32 : i32 to index
    %c0_18 = arith.constant 0 : index
    %c0_19 = arith.constant 0 : index
    %25 = vector.load %arg4[%24, %c0_18, %c0_19] : memref<16x8x256xf32, #tpu.memory_space<vmem>>, vector<1x8x256xf32>
    %26 = vector.shape_cast %25 : vector<1x8x256xf32> to vector<8x256xf32>
    %27 = arith.truncf %19 : vector<8x64xf32> to vector<8x64xbf16>
    %cst_20 = arith.constant dense<0.000000e+00> : vector<8x256xf32>
    %28 = tpu.matmul %27, %1, %cst_20 {dimension_numbers = #tpu.dot_dimension_numbers<[1], [0], [0], [1], [0, 0, 1, 1], [], []>} : vector<8x64xbf16>, vector<64x256xbf16>, vector<8x256xf32> -> vector<8x256xf32>
    %29 = arith.addf %26, %28 : vector<8x256xf32>
    %30 = vector.extract_strided_slice %29 {offsets = [0, 0], sizes = [8, 192], strides = [1, 1]} : vector<8x256xf32> to vector<8x192xf32>
    %31 = arith.negf %30 : vector<8x192xf32>
    %32 = math.exp %31 : vector<8x192xf32>
    %cst_21 = arith.constant 1.000000e+00 : f32
    %33 = vector.broadcast %cst_21 : f32 to vector<8x192xf32>
    %34 = arith.addf %33, %32 : vector<8x192xf32>
    %35 = arith.divf %33, %34 : vector<8x192xf32>
    %36 = vector.extract_strided_slice %29 {offsets = [0, 192], sizes = [8, 64], strides = [1, 1]} : vector<8x256xf32> to vector<8x64xf32>
    %37 = math.tanh %36 : vector<8x64xf32>
    %38 = vector.extract_strided_slice %35 {offsets = [0, 0], sizes = [8, 64], strides = [1, 1]} : vector<8x192xf32> to vector<8x64xf32>
    %39 = vector.extract_strided_slice %35 {offsets = [0, 64], sizes = [8, 64], strides = [1, 1]} : vector<8x192xf32> to vector<8x64xf32>
    %40 = vector.extract_strided_slice %35 {offsets = [0, 128], sizes = [8, 64], strides = [1, 1]} : vector<8x192xf32> to vector<8x64xf32>
    %41 = arith.mulf %39, %19 : vector<8x64xf32>
    %42 = arith.mulf %38, %37 : vector<8x64xf32>
    %43 = arith.addf %41, %42 : vector<8x64xf32>
    %44 = math.tanh %43 : vector<8x64xf32>
    %45 = arith.mulf %40, %44 : vector<8x64xf32>
    %46 = arith.truncf %45 : vector<8x64xf32> to vector<8x64xbf16>
    %cst_22 = arith.constant dense<0.000000e+00> : vector<8x256xf32>
    %47 = tpu.matmul %46, %3, %cst_22 {dimension_numbers = #tpu.dot_dimension_numbers<[1], [0], [0], [1], [0, 0, 1, 1], [], []>} : vector<8x64xbf16>, vector<64x256xbf16>, vector<8x256xf32> -> vector<8x256xf32>
    %48 = arith.addf %23, %47 : vector<8x256xf32>
    %49 = vector.extract_strided_slice %48 {offsets = [0, 0], sizes = [8, 192], strides = [1, 1]} : vector<8x256xf32> to vector<8x192xf32>
    %50 = arith.negf %49 : vector<8x192xf32>
    %51 = math.exp %50 : vector<8x192xf32>
    %cst_23 = arith.constant 1.000000e+00 : f32
    %52 = vector.broadcast %cst_23 : f32 to vector<8x192xf32>
    %53 = arith.addf %52, %51 : vector<8x192xf32>
    %54 = arith.divf %52, %53 : vector<8x192xf32>
    %55 = vector.extract_strided_slice %48 {offsets = [0, 192], sizes = [8, 64], strides = [1, 1]} : vector<8x256xf32> to vector<8x64xf32>
    %56 = math.tanh %55 : vector<8x64xf32>
    %57 = vector.extract_strided_slice %54 {offsets = [0, 0], sizes = [8, 64], strides = [1, 1]} : vector<8x192xf32> to vector<8x64xf32>
    %58 = vector.extract_strided_slice %54 {offsets = [0, 64], sizes = [8, 64], strides = [1, 1]} : vector<8x192xf32> to vector<8x64xf32>
    %59 = vector.extract_strided_slice %54 {offsets = [0, 128], sizes = [8, 64], strides = [1, 1]} : vector<8x192xf32> to vector<8x64xf32>
    %60 = arith.mulf %58, %19 : vector<8x64xf32>
    %61 = arith.mulf %57, %56 : vector<8x64xf32>
    %62 = arith.addf %60, %61 : vector<8x64xf32>
    %63 = math.tanh %62 : vector<8x64xf32>
    %64 = arith.mulf %59, %63 : vector<8x64xf32>
    %c1_i32 = arith.constant 1 : i32
    %65 = arith.truncf %64 : vector<8x64xf32> to vector<8x64xbf16>
    %cst_24 = arith.constant dense<0.000000e+00> : vector<8x256xf32>
    %66 = tpu.matmul %65, %5, %cst_24 {dimension_numbers = #tpu.dot_dimension_numbers<[1], [0], [0], [1], [0, 0, 1, 1], [], []>} : vector<8x64xbf16>, vector<64x256xbf16>, vector<8x256xf32> -> vector<8x256xf32>
    %67 = vector.broadcast %6 : vector<1x256xf32> to vector<8x256xf32>
    %68 = arith.addf %66, %67 : vector<8x256xf32>
    %69 = arith.index_cast %c1_i32 : i32 to index
    %c0_25 = arith.constant 0 : index
    %c0_26 = arith.constant 0 : index
    %70 = vector.load %arg4[%69, %c0_25, %c0_26] : memref<16x8x256xf32, #tpu.memory_space<vmem>>, vector<1x8x256xf32>
    %71 = vector.shape_cast %70 : vector<1x8x256xf32> to vector<8x256xf32>
    %72 = arith.truncf %45 : vector<8x64xf32> to vector<8x64xbf16>
    %cst_27 = arith.constant dense<0.000000e+00> : vector<8x256xf32>
    %73 = tpu.matmul %72, %1, %cst_27 {dimension_numbers = #tpu.dot_dimension_numbers<[1], [0], [0], [1], [0, 0, 1, 1], [], []>} : vector<8x64xbf16>, vector<64x256xbf16>, vector<8x256xf32> -> vector<8x256xf32>
    %74 = arith.addf %71, %73 : vector<8x256xf32>
    %75 = vector.extract_strided_slice %74 {offsets = [0, 0], sizes = [8, 192], strides = [1, 1]} : vector<8x256xf32> to vector<8x192xf32>
    %76 = arith.negf %75 : vector<8x192xf32>
    %77 = math.exp %76 : vector<8x192xf32>
    %cst_28 = arith.constant 1.000000e+00 : f32
    %78 = vector.broadcast %cst_28 : f32 to vector<8x192xf32>
    %79 = arith.addf %78, %77 : vector<8x192xf32>
    %80 = arith.divf %78, %79 : vector<8x192xf32>
    %81 = vector.extract_strided_slice %74 {offsets = [0, 192], sizes = [8, 64], strides = [1, 1]} : vector<8x256xf32> to vector<8x64xf32>
    %82 = math.tanh %81 : vector<8x64xf32>
    %83 = vector.extract_strided_slice %80 {offsets = [0, 0], sizes = [8, 64], strides = [1, 1]} : vector<8x192xf32> to vector<8x64xf32>
    %84 = vector.extract_strided_slice %80 {offsets = [0, 64], sizes = [8, 64], strides = [1, 1]} : vector<8x192xf32> to vector<8x64xf32>
    %85 = vector.extract_strided_slice %80 {offsets = [0, 128], sizes = [8, 64], strides = [1, 1]} : vector<8x192xf32> to vector<8x64xf32>
    %86 = arith.mulf %84, %43 : vector<8x64xf32>
    %87 = arith.mulf %83, %82 : vector<8x64xf32>
    %88 = arith.addf %86, %87 : vector<8x64xf32>
    %89 = math.tanh %88 : vector<8x64xf32>
    %90 = arith.mulf %85, %89 : vector<8x64xf32>
    %91 = arith.truncf %90 : vector<8x64xf32> to vector<8x64xbf16>
    %cst_29 = arith.constant dense<0.000000e+00> : vector<8x256xf32>
    %92 = tpu.matmul %91, %3, %cst_29 {dimension_numbers = #tpu.dot_dimension_numbers<[1], [0], [0], [1], [0, 0, 1, 1], [], []>} : vector<8x64xbf16>, vector<64x256xbf16>, vector<8x256xf32> -> vector<8x256xf32>
    %93 = arith.addf %68, %92 : vector<8x256xf32>
    %94 = vector.extract_strided_slice %93 {offsets = [0, 0], sizes = [8, 192], strides = [1, 1]} : vector<8x256xf32> to vector<8x192xf32>
    %95 = arith.negf %94 : vector<8x192xf32>
    %96 = math.exp %95 : vector<8x192xf32>
    %cst_30 = arith.constant 1.000000e+00 : f32
    %97 = vector.broadcast %cst_30 : f32 to vector<8x192xf32>
    %98 = arith.addf %97, %96 : vector<8x192xf32>
    %99 = arith.divf %97, %98 : vector<8x192xf32>
    %100 = vector.extract_strided_slice %93 {offsets = [0, 192], sizes = [8, 64], strides = [1, 1]} : vector<8x256xf32> to vector<8x64xf32>
    %101 = math.tanh %100 : vector<8x64xf32>
    %102 = vector.extract_strided_slice %99 {offsets = [0, 0], sizes = [8, 64], strides = [1, 1]} : vector<8x192xf32> to vector<8x64xf32>
    %103 = vector.extract_strided_slice %99 {offsets = [0, 64], sizes = [8, 64], strides = [1, 1]} : vector<8x192xf32> to vector<8x64xf32>
    %104 = vector.extract_strided_slice %99 {offsets = [0, 128], sizes = [8, 64], strides = [1, 1]} : vector<8x192xf32> to vector<8x64xf32>
    %105 = arith.mulf %103, %62 : vector<8x64xf32>
    %106 = arith.mulf %102, %101 : vector<8x64xf32>
    %107 = arith.addf %105, %106 : vector<8x64xf32>
    %108 = math.tanh %107 : vector<8x64xf32>
    %109 = arith.mulf %104, %108 : vector<8x64xf32>
    %c2_i32 = arith.constant 2 : i32
    %110 = arith.truncf %109 : vector<8x64xf32> to vector<8x64xbf16>
    %cst_31 = arith.constant dense<0.000000e+00> : vector<8x256xf32>
    %111 = tpu.matmul %110, %5, %cst_31 {dimension_numbers = #tpu.dot_dimension_numbers<[1], [0], [0], [1], [0, 0, 1, 1], [], []>} : vector<8x64xbf16>, vector<64x256xbf16>, vector<8x256xf32> -> vector<8x256xf32>
    %112 = vector.broadcast %6 : vector<1x256xf32> to vector<8x256xf32>
    %113 = arith.addf %111, %112 : vector<8x256xf32>
    %114 = arith.index_cast %c2_i32 : i32 to index
    %c0_32 = arith.constant 0 : index
    %c0_33 = arith.constant 0 : index
    %115 = vector.load %arg4[%114, %c0_32, %c0_33] : memref<16x8x256xf32, #tpu.memory_space<vmem>>, vector<1x8x256xf32>
    %116 = vector.shape_cast %115 : vector<1x8x256xf32> to vector<8x256xf32>
    %117 = arith.truncf %90 : vector<8x64xf32> to vector<8x64xbf16>
    %cst_34 = arith.constant dense<0.000000e+00> : vector<8x256xf32>
    %118 = tpu.matmul %117, %1, %cst_34 {dimension_numbers = #tpu.dot_dimension_numbers<[1], [0], [0], [1], [0, 0, 1, 1], [], []>} : vector<8x64xbf16>, vector<64x256xbf16>, vector<8x256xf32> -> vector<8x256xf32>
    %119 = arith.addf %116, %118 : vector<8x256xf32>
    %120 = vector.extract_strided_slice %119 {offsets = [0, 0], sizes = [8, 192], strides = [1, 1]} : vector<8x256xf32> to vector<8x192xf32>
    %121 = arith.negf %120 : vector<8x192xf32>
    %122 = math.exp %121 : vector<8x192xf32>
    %cst_35 = arith.constant 1.000000e+00 : f32
    %123 = vector.broadcast %cst_35 : f32 to vector<8x192xf32>
    %124 = arith.addf %123, %122 : vector<8x192xf32>
    %125 = arith.divf %123, %124 : vector<8x192xf32>
    %126 = vector.extract_strided_slice %119 {offsets = [0, 192], sizes = [8, 64], strides = [1, 1]} : vector<8x256xf32> to vector<8x64xf32>
    %127 = math.tanh %126 : vector<8x64xf32>
    %128 = vector.extract_strided_slice %125 {offsets = [0, 0], sizes = [8, 64], strides = [1, 1]} : vector<8x192xf32> to vector<8x64xf32>
    %129 = vector.extract_strided_slice %125 {offsets = [0, 64], sizes = [8, 64], strides = [1, 1]} : vector<8x192xf32> to vector<8x64xf32>
    %130 = vector.extract_strided_slice %125 {offsets = [0, 128], sizes = [8, 64], strides = [1, 1]} : vector<8x192xf32> to vector<8x64xf32>
    %131 = arith.mulf %129, %88 : vector<8x64xf32>
    %132 = arith.mulf %128, %127 : vector<8x64xf32>
    %133 = arith.addf %131, %132 : vector<8x64xf32>
    %134 = math.tanh %133 : vector<8x64xf32>
    %135 = arith.mulf %130, %134 : vector<8x64xf32>
    %136 = arith.truncf %135 : vector<8x64xf32> to vector<8x64xbf16>
    %cst_36 = arith.constant dense<0.000000e+00> : vector<8x256xf32>
    %137 = tpu.matmul %136, %3, %cst_36 {dimension_numbers = #tpu.dot_dimension_numbers<[1], [0], [0], [1], [0, 0, 1, 1], [], []>} : vector<8x64xbf16>, vector<64x256xbf16>, vector<8x256xf32> -> vector<8x256xf32>
    %138 = arith.addf %113, %137 : vector<8x256xf32>
    %139 = vector.extract_strided_slice %138 {offsets = [0, 0], sizes = [8, 192], strides = [1, 1]} : vector<8x256xf32> to vector<8x192xf32>
    %140 = arith.negf %139 : vector<8x192xf32>
    %141 = math.exp %140 : vector<8x192xf32>
    %cst_37 = arith.constant 1.000000e+00 : f32
    %142 = vector.broadcast %cst_37 : f32 to vector<8x192xf32>
    %143 = arith.addf %142, %141 : vector<8x192xf32>
    %144 = arith.divf %142, %143 : vector<8x192xf32>
    %145 = vector.extract_strided_slice %138 {offsets = [0, 192], sizes = [8, 64], strides = [1, 1]} : vector<8x256xf32> to vector<8x64xf32>
    %146 = math.tanh %145 : vector<8x64xf32>
    %147 = vector.extract_strided_slice %144 {offsets = [0, 0], sizes = [8, 64], strides = [1, 1]} : vector<8x192xf32> to vector<8x64xf32>
    %148 = vector.extract_strided_slice %144 {offsets = [0, 64], sizes = [8, 64], strides = [1, 1]} : vector<8x192xf32> to vector<8x64xf32>
    %149 = vector.extract_strided_slice %144 {offsets = [0, 128], sizes = [8, 64], strides = [1, 1]} : vector<8x192xf32> to vector<8x64xf32>
    %150 = arith.mulf %148, %107 : vector<8x64xf32>
    %151 = arith.mulf %147, %146 : vector<8x64xf32>
    %152 = arith.addf %150, %151 : vector<8x64xf32>
    %153 = math.tanh %152 : vector<8x64xf32>
    %154 = arith.mulf %149, %153 : vector<8x64xf32>
    %c3_i32 = arith.constant 3 : i32
    %155 = arith.truncf %154 : vector<8x64xf32> to vector<8x64xbf16>
    %cst_38 = arith.constant dense<0.000000e+00> : vector<8x256xf32>
    %156 = tpu.matmul %155, %5, %cst_38 {dimension_numbers = #tpu.dot_dimension_numbers<[1], [0], [0], [1], [0, 0, 1, 1], [], []>} : vector<8x64xbf16>, vector<64x256xbf16>, vector<8x256xf32> -> vector<8x256xf32>
    %157 = vector.broadcast %6 : vector<1x256xf32> to vector<8x256xf32>
    %158 = arith.addf %156, %157 : vector<8x256xf32>
    %159 = arith.index_cast %c3_i32 : i32 to index
    %c0_39 = arith.constant 0 : index
    %c0_40 = arith.constant 0 : index
    %160 = vector.load %arg4[%159, %c0_39, %c0_40] : memref<16x8x256xf32, #tpu.memory_space<vmem>>, vector<1x8x256xf32>
    %161 = vector.shape_cast %160 : vector<1x8x256xf32> to vector<8x256xf32>
    %162 = arith.truncf %135 : vector<8x64xf32> to vector<8x64xbf16>
    %cst_41 = arith.constant dense<0.000000e+00> : vector<8x256xf32>
    %163 = tpu.matmul %162, %1, %cst_41 {dimension_numbers = #tpu.dot_dimension_numbers<[1], [0], [0], [1], [0, 0, 1, 1], [], []>} : vector<8x64xbf16>, vector<64x256xbf16>, vector<8x256xf32> -> vector<8x256xf32>
    %164 = arith.addf %161, %163 : vector<8x256xf32>
    %165 = vector.extract_strided_slice %164 {offsets = [0, 0], sizes = [8, 192], strides = [1, 1]} : vector<8x256xf32> to vector<8x192xf32>
    %166 = arith.negf %165 : vector<8x192xf32>
    %167 = math.exp %166 : vector<8x192xf32>
    %cst_42 = arith.constant 1.000000e+00 : f32
    %168 = vector.broadcast %cst_42 : f32 to vector<8x192xf32>
    %169 = arith.addf %168, %167 : vector<8x192xf32>
    %170 = arith.divf %168, %169 : vector<8x192xf32>
    %171 = vector.extract_strided_slice %164 {offsets = [0, 192], sizes = [8, 64], strides = [1, 1]} : vector<8x256xf32> to vector<8x64xf32>
    %172 = math.tanh %171 : vector<8x64xf32>
    %173 = vector.extract_strided_slice %170 {offsets = [0, 0], sizes = [8, 64], strides = [1, 1]} : vector<8x192xf32> to vector<8x64xf32>
    %174 = vector.extract_strided_slice %170 {offsets = [0, 64], sizes = [8, 64], strides = [1, 1]} : vector<8x192xf32> to vector<8x64xf32>
    %175 = vector.extract_strided_slice %170 {offsets = [0, 128], sizes = [8, 64], strides = [1, 1]} : vector<8x192xf32> to vector<8x64xf32>
    %176 = arith.mulf %174, %133 : vector<8x64xf32>
    %177 = arith.mulf %173, %172 : vector<8x64xf32>
    %178 = arith.addf %176, %177 : vector<8x64xf32>
    %179 = math.tanh %178 : vector<8x64xf32>
    %180 = arith.mulf %175, %179 : vector<8x64xf32>
    %181 = arith.truncf %180 : vector<8x64xf32> to vector<8x64xbf16>
    %cst_43 = arith.constant dense<0.000000e+00> : vector<8x256xf32>
    %182 = tpu.matmul %181, %3, %cst_43 {dimension_numbers = #tpu.dot_dimension_numbers<[1], [0], [0], [1], [0, 0, 1, 1], [], []>} : vector<8x64xbf16>, vector<64x256xbf16>, vector<8x256xf32> -> vector<8x256xf32>
    %183 = arith.addf %158, %182 : vector<8x256xf32>
    %184 = vector.extract_strided_slice %183 {offsets = [0, 0], sizes = [8, 192], strides = [1, 1]} : vector<8x256xf32> to vector<8x192xf32>
    %185 = arith.negf %184 : vector<8x192xf32>
    %186 = math.exp %185 : vector<8x192xf32>
    %cst_44 = arith.constant 1.000000e+00 : f32
    %187 = vector.broadcast %cst_44 : f32 to vector<8x192xf32>
    %188 = arith.addf %187, %186 : vector<8x192xf32>
    %189 = arith.divf %187, %188 : vector<8x192xf32>
    %190 = vector.extract_strided_slice %183 {offsets = [0, 192], sizes = [8, 64], strides = [1, 1]} : vector<8x256xf32> to vector<8x64xf32>
    %191 = math.tanh %190 : vector<8x64xf32>
    %192 = vector.extract_strided_slice %189 {offsets = [0, 0], sizes = [8, 64], strides = [1, 1]} : vector<8x192xf32> to vector<8x64xf32>
    %193 = vector.extract_strided_slice %189 {offsets = [0, 64], sizes = [8, 64], strides = [1, 1]} : vector<8x192xf32> to vector<8x64xf32>
    %194 = vector.extract_strided_slice %189 {offsets = [0, 128], sizes = [8, 64], strides = [1, 1]} : vector<8x192xf32> to vector<8x64xf32>
    %195 = arith.mulf %193, %152 : vector<8x64xf32>
    %196 = arith.mulf %192, %191 : vector<8x64xf32>
    %197 = arith.addf %195, %196 : vector<8x64xf32>
    %198 = math.tanh %197 : vector<8x64xf32>
    %199 = arith.mulf %194, %198 : vector<8x64xf32>
    %c4_i32 = arith.constant 4 : i32
    %200 = arith.truncf %199 : vector<8x64xf32> to vector<8x64xbf16>
    %cst_45 = arith.constant dense<0.000000e+00> : vector<8x256xf32>
    %201 = tpu.matmul %200, %5, %cst_45 {dimension_numbers = #tpu.dot_dimension_numbers<[1], [0], [0], [1], [0, 0, 1, 1], [], []>} : vector<8x64xbf16>, vector<64x256xbf16>, vector<8x256xf32> -> vector<8x256xf32>
    %202 = vector.broadcast %6 : vector<1x256xf32> to vector<8x256xf32>
    %203 = arith.addf %201, %202 : vector<8x256xf32>
    %204 = arith.index_cast %c4_i32 : i32 to index
    %c0_46 = arith.constant 0 : index
    %c0_47 = arith.constant 0 : index
    %205 = vector.load %arg4[%204, %c0_46, %c0_47] : memref<16x8x256xf32, #tpu.memory_space<vmem>>, vector<1x8x256xf32>
    %206 = vector.shape_cast %205 : vector<1x8x256xf32> to vector<8x256xf32>
    %207 = arith.truncf %180 : vector<8x64xf32> to vector<8x64xbf16>
    %cst_48 = arith.constant dense<0.000000e+00> : vector<8x256xf32>
    %208 = tpu.matmul %207, %1, %cst_48 {dimension_numbers = #tpu.dot_dimension_numbers<[1], [0], [0], [1], [0, 0, 1, 1], [], []>} : vector<8x64xbf16>, vector<64x256xbf16>, vector<8x256xf32> -> vector<8x256xf32>
    %209 = arith.addf %206, %208 : vector<8x256xf32>
    %210 = vector.extract_strided_slice %209 {offsets = [0, 0], sizes = [8, 192], strides = [1, 1]} : vector<8x256xf32> to vector<8x192xf32>
    %211 = arith.negf %210 : vector<8x192xf32>
    %212 = math.exp %211 : vector<8x192xf32>
    %cst_49 = arith.constant 1.000000e+00 : f32
    %213 = vector.broadcast %cst_49 : f32 to vector<8x192xf32>
    %214 = arith.addf %213, %212 : vector<8x192xf32>
    %215 = arith.divf %213, %214 : vector<8x192xf32>
    %216 = vector.extract_strided_slice %209 {offsets = [0, 192], sizes = [8, 64], strides = [1, 1]} : vector<8x256xf32> to vector<8x64xf32>
    %217 = math.tanh %216 : vector<8x64xf32>
    %218 = vector.extract_strided_slice %215 {offsets = [0, 0], sizes = [8, 64], strides = [1, 1]} : vector<8x192xf32> to vector<8x64xf32>
    %219 = vector.extract_strided_slice %215 {offsets = [0, 64], sizes = [8, 64], strides = [1, 1]} : vector<8x192xf32> to vector<8x64xf32>
    %220 = vector.extract_strided_slice %215 {offsets = [0, 128], sizes = [8, 64], strides = [1, 1]} : vector<8x192xf32> to vector<8x64xf32>
    %221 = arith.mulf %219, %178 : vector<8x64xf32>
    %222 = arith.mulf %218, %217 : vector<8x64xf32>
    %223 = arith.addf %221, %222 : vector<8x64xf32>
    %224 = math.tanh %223 : vector<8x64xf32>
    %225 = arith.mulf %220, %224 : vector<8x64xf32>
    %226 = arith.truncf %225 : vector<8x64xf32> to vector<8x64xbf16>
    %cst_50 = arith.constant dense<0.000000e+00> : vector<8x256xf32>
    %227 = tpu.matmul %226, %3, %cst_50 {dimension_numbers = #tpu.dot_dimension_numbers<[1], [0], [0], [1], [0, 0, 1, 1], [], []>} : vector<8x64xbf16>, vector<64x256xbf16>, vector<8x256xf32> -> vector<8x256xf32>
    %228 = arith.addf %203, %227 : vector<8x256xf32>
    %229 = vector.extract_strided_slice %228 {offsets = [0, 0], sizes = [8, 192], strides = [1, 1]} : vector<8x256xf32> to vector<8x192xf32>
    %230 = arith.negf %229 : vector<8x192xf32>
    %231 = math.exp %230 : vector<8x192xf32>
    %cst_51 = arith.constant 1.000000e+00 : f32
    %232 = vector.broadcast %cst_51 : f32 to vector<8x192xf32>
    %233 = arith.addf %232, %231 : vector<8x192xf32>
    %234 = arith.divf %232, %233 : vector<8x192xf32>
    %235 = vector.extract_strided_slice %228 {offsets = [0, 192], sizes = [8, 64], strides = [1, 1]} : vector<8x256xf32> to vector<8x64xf32>
    %236 = math.tanh %235 : vector<8x64xf32>
    %237 = vector.extract_strided_slice %234 {offsets = [0, 0], sizes = [8, 64], strides = [1, 1]} : vector<8x192xf32> to vector<8x64xf32>
    %238 = vector.extract_strided_slice %234 {offsets = [0, 64], sizes = [8, 64], strides = [1, 1]} : vector<8x192xf32> to vector<8x64xf32>
    %239 = vector.extract_strided_slice %234 {offsets = [0, 128], sizes = [8, 64], strides = [1, 1]} : vector<8x192xf32> to vector<8x64xf32>
    %240 = arith.mulf %238, %197 : vector<8x64xf32>
    %241 = arith.mulf %237, %236 : vector<8x64xf32>
    %242 = arith.addf %240, %241 : vector<8x64xf32>
    %243 = math.tanh %242 : vector<8x64xf32>
    %244 = arith.mulf %239, %243 : vector<8x64xf32>
    %c5_i32 = arith.constant 5 : i32
    %245 = arith.truncf %244 : vector<8x64xf32> to vector<8x64xbf16>
    %cst_52 = arith.constant dense<0.000000e+00> : vector<8x256xf32>
    %246 = tpu.matmul %245, %5, %cst_52 {dimension_numbers = #tpu.dot_dimension_numbers<[1], [0], [0], [1], [0, 0, 1, 1], [], []>} : vector<8x64xbf16>, vector<64x256xbf16>, vector<8x256xf32> -> vector<8x256xf32>
    %247 = vector.broadcast %6 : vector<1x256xf32> to vector<8x256xf32>
    %248 = arith.addf %246, %247 : vector<8x256xf32>
    %249 = arith.index_cast %c5_i32 : i32 to index
    %c0_53 = arith.constant 0 : index
    %c0_54 = arith.constant 0 : index
    %250 = vector.load %arg4[%249, %c0_53, %c0_54] : memref<16x8x256xf32, #tpu.memory_space<vmem>>, vector<1x8x256xf32>
    %251 = vector.shape_cast %250 : vector<1x8x256xf32> to vector<8x256xf32>
    %252 = arith.truncf %225 : vector<8x64xf32> to vector<8x64xbf16>
    %cst_55 = arith.constant dense<0.000000e+00> : vector<8x256xf32>
    %253 = tpu.matmul %252, %1, %cst_55 {dimension_numbers = #tpu.dot_dimension_numbers<[1], [0], [0], [1], [0, 0, 1, 1], [], []>} : vector<8x64xbf16>, vector<64x256xbf16>, vector<8x256xf32> -> vector<8x256xf32>
    %254 = arith.addf %251, %253 : vector<8x256xf32>
    %255 = vector.extract_strided_slice %254 {offsets = [0, 0], sizes = [8, 192], strides = [1, 1]} : vector<8x256xf32> to vector<8x192xf32>
    %256 = arith.negf %255 : vector<8x192xf32>
    %257 = math.exp %256 : vector<8x192xf32>
    %cst_56 = arith.constant 1.000000e+00 : f32
    %258 = vector.broadcast %cst_56 : f32 to vector<8x192xf32>
    %259 = arith.addf %258, %257 : vector<8x192xf32>
    %260 = arith.divf %258, %259 : vector<8x192xf32>
    %261 = vector.extract_strided_slice %254 {offsets = [0, 192], sizes = [8, 64], strides = [1, 1]} : vector<8x256xf32> to vector<8x64xf32>
    %262 = math.tanh %261 : vector<8x64xf32>
    %263 = vector.extract_strided_slice %260 {offsets = [0, 0], sizes = [8, 64], strides = [1, 1]} : vector<8x192xf32> to vector<8x64xf32>
    %264 = vector.extract_strided_slice %260 {offsets = [0, 64], sizes = [8, 64], strides = [1, 1]} : vector<8x192xf32> to vector<8x64xf32>
    %265 = vector.extract_strided_slice %260 {offsets = [0, 128], sizes = [8, 64], strides = [1, 1]} : vector<8x192xf32> to vector<8x64xf32>
    %266 = arith.mulf %264, %223 : vector<8x64xf32>
    %267 = arith.mulf %263, %262 : vector<8x64xf32>
    %268 = arith.addf %266, %267 : vector<8x64xf32>
    %269 = math.tanh %268 : vector<8x64xf32>
    %270 = arith.mulf %265, %269 : vector<8x64xf32>
    %271 = arith.truncf %270 : vector<8x64xf32> to vector<8x64xbf16>
    %cst_57 = arith.constant dense<0.000000e+00> : vector<8x256xf32>
    %272 = tpu.matmul %271, %3, %cst_57 {dimension_numbers = #tpu.dot_dimension_numbers<[1], [0], [0], [1], [0, 0, 1, 1], [], []>} : vector<8x64xbf16>, vector<64x256xbf16>, vector<8x256xf32> -> vector<8x256xf32>
    %273 = arith.addf %248, %272 : vector<8x256xf32>
    %274 = vector.extract_strided_slice %273 {offsets = [0, 0], sizes = [8, 192], strides = [1, 1]} : vector<8x256xf32> to vector<8x192xf32>
    %275 = arith.negf %274 : vector<8x192xf32>
    %276 = math.exp %275 : vector<8x192xf32>
    %cst_58 = arith.constant 1.000000e+00 : f32
    %277 = vector.broadcast %cst_58 : f32 to vector<8x192xf32>
    %278 = arith.addf %277, %276 : vector<8x192xf32>
    %279 = arith.divf %277, %278 : vector<8x192xf32>
    %280 = vector.extract_strided_slice %273 {offsets = [0, 192], sizes = [8, 64], strides = [1, 1]} : vector<8x256xf32> to vector<8x64xf32>
    %281 = math.tanh %280 : vector<8x64xf32>
    %282 = vector.extract_strided_slice %279 {offsets = [0, 0], sizes = [8, 64], strides = [1, 1]} : vector<8x192xf32> to vector<8x64xf32>
    %283 = vector.extract_strided_slice %279 {offsets = [0, 64], sizes = [8, 64], strides = [1, 1]} : vector<8x192xf32> to vector<8x64xf32>
    %284 = vector.extract_strided_slice %279 {offsets = [0, 128], sizes = [8, 64], strides = [1, 1]} : vector<8x192xf32> to vector<8x64xf32>
    %285 = arith.mulf %283, %242 : vector<8x64xf32>
    %286 = arith.mulf %282, %281 : vector<8x64xf32>
    %287 = arith.addf %285, %286 : vector<8x64xf32>
    %288 = math.tanh %287 : vector<8x64xf32>
    %289 = arith.mulf %284, %288 : vector<8x64xf32>
    %c6_i32 = arith.constant 6 : i32
    %290 = arith.truncf %289 : vector<8x64xf32> to vector<8x64xbf16>
    %cst_59 = arith.constant dense<0.000000e+00> : vector<8x256xf32>
    %291 = tpu.matmul %290, %5, %cst_59 {dimension_numbers = #tpu.dot_dimension_numbers<[1], [0], [0], [1], [0, 0, 1, 1], [], []>} : vector<8x64xbf16>, vector<64x256xbf16>, vector<8x256xf32> -> vector<8x256xf32>
    %292 = vector.broadcast %6 : vector<1x256xf32> to vector<8x256xf32>
    %293 = arith.addf %291, %292 : vector<8x256xf32>
    %294 = arith.index_cast %c6_i32 : i32 to index
    %c0_60 = arith.constant 0 : index
    %c0_61 = arith.constant 0 : index
    %295 = vector.load %arg4[%294, %c0_60, %c0_61] : memref<16x8x256xf32, #tpu.memory_space<vmem>>, vector<1x8x256xf32>
    %296 = vector.shape_cast %295 : vector<1x8x256xf32> to vector<8x256xf32>
    %297 = arith.truncf %270 : vector<8x64xf32> to vector<8x64xbf16>
    %cst_62 = arith.constant dense<0.000000e+00> : vector<8x256xf32>
    %298 = tpu.matmul %297, %1, %cst_62 {dimension_numbers = #tpu.dot_dimension_numbers<[1], [0], [0], [1], [0, 0, 1, 1], [], []>} : vector<8x64xbf16>, vector<64x256xbf16>, vector<8x256xf32> -> vector<8x256xf32>
    %299 = arith.addf %296, %298 : vector<8x256xf32>
    %300 = vector.extract_strided_slice %299 {offsets = [0, 0], sizes = [8, 192], strides = [1, 1]} : vector<8x256xf32> to vector<8x192xf32>
    %301 = arith.negf %300 : vector<8x192xf32>
    %302 = math.exp %301 : vector<8x192xf32>
    %cst_63 = arith.constant 1.000000e+00 : f32
    %303 = vector.broadcast %cst_63 : f32 to vector<8x192xf32>
    %304 = arith.addf %303, %302 : vector<8x192xf32>
    %305 = arith.divf %303, %304 : vector<8x192xf32>
    %306 = vector.extract_strided_slice %299 {offsets = [0, 192], sizes = [8, 64], strides = [1, 1]} : vector<8x256xf32> to vector<8x64xf32>
    %307 = math.tanh %306 : vector<8x64xf32>
    %308 = vector.extract_strided_slice %305 {offsets = [0, 0], sizes = [8, 64], strides = [1, 1]} : vector<8x192xf32> to vector<8x64xf32>
    %309 = vector.extract_strided_slice %305 {offsets = [0, 64], sizes = [8, 64], strides = [1, 1]} : vector<8x192xf32> to vector<8x64xf32>
    %310 = vector.extract_strided_slice %305 {offsets = [0, 128], sizes = [8, 64], strides = [1, 1]} : vector<8x192xf32> to vector<8x64xf32>
    %311 = arith.mulf %309, %268 : vector<8x64xf32>
    %312 = arith.mulf %308, %307 : vector<8x64xf32>
    %313 = arith.addf %311, %312 : vector<8x64xf32>
    %314 = math.tanh %313 : vector<8x64xf32>
    %315 = arith.mulf %310, %314 : vector<8x64xf32>
    %316 = arith.truncf %315 : vector<8x64xf32> to vector<8x64xbf16>
    %cst_64 = arith.constant dense<0.000000e+00> : vector<8x256xf32>
    %317 = tpu.matmul %316, %3, %cst_64 {dimension_numbers = #tpu.dot_dimension_numbers<[1], [0], [0], [1], [0, 0, 1, 1], [], []>} : vector<8x64xbf16>, vector<64x256xbf16>, vector<8x256xf32> -> vector<8x256xf32>
    %318 = arith.addf %293, %317 : vector<8x256xf32>
    %319 = vector.extract_strided_slice %318 {offsets = [0, 0], sizes = [8, 192], strides = [1, 1]} : vector<8x256xf32> to vector<8x192xf32>
    %320 = arith.negf %319 : vector<8x192xf32>
    %321 = math.exp %320 : vector<8x192xf32>
    %cst_65 = arith.constant 1.000000e+00 : f32
    %322 = vector.broadcast %cst_65 : f32 to vector<8x192xf32>
    %323 = arith.addf %322, %321 : vector<8x192xf32>
    %324 = arith.divf %322, %323 : vector<8x192xf32>
    %325 = vector.extract_strided_slice %318 {offsets = [0, 192], sizes = [8, 64], strides = [1, 1]} : vector<8x256xf32> to vector<8x64xf32>
    %326 = math.tanh %325 : vector<8x64xf32>
    %327 = vector.extract_strided_slice %324 {offsets = [0, 0], sizes = [8, 64], strides = [1, 1]} : vector<8x192xf32> to vector<8x64xf32>
    %328 = vector.extract_strided_slice %324 {offsets = [0, 64], sizes = [8, 64], strides = [1, 1]} : vector<8x192xf32> to vector<8x64xf32>
    %329 = vector.extract_strided_slice %324 {offsets = [0, 128], sizes = [8, 64], strides = [1, 1]} : vector<8x192xf32> to vector<8x64xf32>
    %330 = arith.mulf %328, %287 : vector<8x64xf32>
    %331 = arith.mulf %327, %326 : vector<8x64xf32>
    %332 = arith.addf %330, %331 : vector<8x64xf32>
    %333 = math.tanh %332 : vector<8x64xf32>
    %334 = arith.mulf %329, %333 : vector<8x64xf32>
    %c7_i32 = arith.constant 7 : i32
    %335 = arith.truncf %334 : vector<8x64xf32> to vector<8x64xbf16>
    %cst_66 = arith.constant dense<0.000000e+00> : vector<8x256xf32>
    %336 = tpu.matmul %335, %5, %cst_66 {dimension_numbers = #tpu.dot_dimension_numbers<[1], [0], [0], [1], [0, 0, 1, 1], [], []>} : vector<8x64xbf16>, vector<64x256xbf16>, vector<8x256xf32> -> vector<8x256xf32>
    %337 = vector.broadcast %6 : vector<1x256xf32> to vector<8x256xf32>
    %338 = arith.addf %336, %337 : vector<8x256xf32>
    %339 = arith.index_cast %c7_i32 : i32 to index
    %c0_67 = arith.constant 0 : index
    %c0_68 = arith.constant 0 : index
    %340 = vector.load %arg4[%339, %c0_67, %c0_68] : memref<16x8x256xf32, #tpu.memory_space<vmem>>, vector<1x8x256xf32>
    %341 = vector.shape_cast %340 : vector<1x8x256xf32> to vector<8x256xf32>
    %342 = arith.truncf %315 : vector<8x64xf32> to vector<8x64xbf16>
    %cst_69 = arith.constant dense<0.000000e+00> : vector<8x256xf32>
    %343 = tpu.matmul %342, %1, %cst_69 {dimension_numbers = #tpu.dot_dimension_numbers<[1], [0], [0], [1], [0, 0, 1, 1], [], []>} : vector<8x64xbf16>, vector<64x256xbf16>, vector<8x256xf32> -> vector<8x256xf32>
    %344 = arith.addf %341, %343 : vector<8x256xf32>
    %345 = vector.extract_strided_slice %344 {offsets = [0, 0], sizes = [8, 192], strides = [1, 1]} : vector<8x256xf32> to vector<8x192xf32>
    %346 = arith.negf %345 : vector<8x192xf32>
    %347 = math.exp %346 : vector<8x192xf32>
    %cst_70 = arith.constant 1.000000e+00 : f32
    %348 = vector.broadcast %cst_70 : f32 to vector<8x192xf32>
    %349 = arith.addf %348, %347 : vector<8x192xf32>
    %350 = arith.divf %348, %349 : vector<8x192xf32>
    %351 = vector.extract_strided_slice %344 {offsets = [0, 192], sizes = [8, 64], strides = [1, 1]} : vector<8x256xf32> to vector<8x64xf32>
    %352 = math.tanh %351 : vector<8x64xf32>
    %353 = vector.extract_strided_slice %350 {offsets = [0, 0], sizes = [8, 64], strides = [1, 1]} : vector<8x192xf32> to vector<8x64xf32>
    %354 = vector.extract_strided_slice %350 {offsets = [0, 64], sizes = [8, 64], strides = [1, 1]} : vector<8x192xf32> to vector<8x64xf32>
    %355 = vector.extract_strided_slice %350 {offsets = [0, 128], sizes = [8, 64], strides = [1, 1]} : vector<8x192xf32> to vector<8x64xf32>
    %356 = arith.mulf %354, %313 : vector<8x64xf32>
    %357 = arith.mulf %353, %352 : vector<8x64xf32>
    %358 = arith.addf %356, %357 : vector<8x64xf32>
    %359 = math.tanh %358 : vector<8x64xf32>
    %360 = arith.mulf %355, %359 : vector<8x64xf32>
    %361 = arith.truncf %360 : vector<8x64xf32> to vector<8x64xbf16>
    %cst_71 = arith.constant dense<0.000000e+00> : vector<8x256xf32>
    %362 = tpu.matmul %361, %3, %cst_71 {dimension_numbers = #tpu.dot_dimension_numbers<[1], [0], [0], [1], [0, 0, 1, 1], [], []>} : vector<8x64xbf16>, vector<64x256xbf16>, vector<8x256xf32> -> vector<8x256xf32>
    %363 = arith.addf %338, %362 : vector<8x256xf32>
    %364 = vector.extract_strided_slice %363 {offsets = [0, 0], sizes = [8, 192], strides = [1, 1]} : vector<8x256xf32> to vector<8x192xf32>
    %365 = arith.negf %364 : vector<8x192xf32>
    %366 = math.exp %365 : vector<8x192xf32>
    %cst_72 = arith.constant 1.000000e+00 : f32
    %367 = vector.broadcast %cst_72 : f32 to vector<8x192xf32>
    %368 = arith.addf %367, %366 : vector<8x192xf32>
    %369 = arith.divf %367, %368 : vector<8x192xf32>
    %370 = vector.extract_strided_slice %363 {offsets = [0, 192], sizes = [8, 64], strides = [1, 1]} : vector<8x256xf32> to vector<8x64xf32>
    %371 = math.tanh %370 : vector<8x64xf32>
    %372 = vector.extract_strided_slice %369 {offsets = [0, 0], sizes = [8, 64], strides = [1, 1]} : vector<8x192xf32> to vector<8x64xf32>
    %373 = vector.extract_strided_slice %369 {offsets = [0, 64], sizes = [8, 64], strides = [1, 1]} : vector<8x192xf32> to vector<8x64xf32>
    %374 = vector.extract_strided_slice %369 {offsets = [0, 128], sizes = [8, 64], strides = [1, 1]} : vector<8x192xf32> to vector<8x64xf32>
    %375 = arith.mulf %373, %332 : vector<8x64xf32>
    %376 = arith.mulf %372, %371 : vector<8x64xf32>
    %377 = arith.addf %375, %376 : vector<8x64xf32>
    %378 = math.tanh %377 : vector<8x64xf32>
    %379 = arith.mulf %374, %378 : vector<8x64xf32>
    %c8_i32 = arith.constant 8 : i32
    %380 = arith.truncf %379 : vector<8x64xf32> to vector<8x64xbf16>
    %cst_73 = arith.constant dense<0.000000e+00> : vector<8x256xf32>
    %381 = tpu.matmul %380, %5, %cst_73 {dimension_numbers = #tpu.dot_dimension_numbers<[1], [0], [0], [1], [0, 0, 1, 1], [], []>} : vector<8x64xbf16>, vector<64x256xbf16>, vector<8x256xf32> -> vector<8x256xf32>
    %382 = vector.broadcast %6 : vector<1x256xf32> to vector<8x256xf32>
    %383 = arith.addf %381, %382 : vector<8x256xf32>
    %384 = arith.index_cast %c8_i32 : i32 to index
    %c0_74 = arith.constant 0 : index
    %c0_75 = arith.constant 0 : index
    %385 = vector.load %arg4[%384, %c0_74, %c0_75] : memref<16x8x256xf32, #tpu.memory_space<vmem>>, vector<1x8x256xf32>
    %386 = vector.shape_cast %385 : vector<1x8x256xf32> to vector<8x256xf32>
    %387 = arith.truncf %360 : vector<8x64xf32> to vector<8x64xbf16>
    %cst_76 = arith.constant dense<0.000000e+00> : vector<8x256xf32>
    %388 = tpu.matmul %387, %1, %cst_76 {dimension_numbers = #tpu.dot_dimension_numbers<[1], [0], [0], [1], [0, 0, 1, 1], [], []>} : vector<8x64xbf16>, vector<64x256xbf16>, vector<8x256xf32> -> vector<8x256xf32>
    %389 = arith.addf %386, %388 : vector<8x256xf32>
    %390 = vector.extract_strided_slice %389 {offsets = [0, 0], sizes = [8, 192], strides = [1, 1]} : vector<8x256xf32> to vector<8x192xf32>
    %391 = arith.negf %390 : vector<8x192xf32>
    %392 = math.exp %391 : vector<8x192xf32>
    %cst_77 = arith.constant 1.000000e+00 : f32
    %393 = vector.broadcast %cst_77 : f32 to vector<8x192xf32>
    %394 = arith.addf %393, %392 : vector<8x192xf32>
    %395 = arith.divf %393, %394 : vector<8x192xf32>
    %396 = vector.extract_strided_slice %389 {offsets = [0, 192], sizes = [8, 64], strides = [1, 1]} : vector<8x256xf32> to vector<8x64xf32>
    %397 = math.tanh %396 : vector<8x64xf32>
    %398 = vector.extract_strided_slice %395 {offsets = [0, 0], sizes = [8, 64], strides = [1, 1]} : vector<8x192xf32> to vector<8x64xf32>
    %399 = vector.extract_strided_slice %395 {offsets = [0, 64], sizes = [8, 64], strides = [1, 1]} : vector<8x192xf32> to vector<8x64xf32>
    %400 = vector.extract_strided_slice %395 {offsets = [0, 128], sizes = [8, 64], strides = [1, 1]} : vector<8x192xf32> to vector<8x64xf32>
    %401 = arith.mulf %399, %358 : vector<8x64xf32>
    %402 = arith.mulf %398, %397 : vector<8x64xf32>
    %403 = arith.addf %401, %402 : vector<8x64xf32>
    %404 = math.tanh %403 : vector<8x64xf32>
    %405 = arith.mulf %400, %404 : vector<8x64xf32>
    %406 = arith.truncf %405 : vector<8x64xf32> to vector<8x64xbf16>
    %cst_78 = arith.constant dense<0.000000e+00> : vector<8x256xf32>
    %407 = tpu.matmul %406, %3, %cst_78 {dimension_numbers = #tpu.dot_dimension_numbers<[1], [0], [0], [1], [0, 0, 1, 1], [], []>} : vector<8x64xbf16>, vector<64x256xbf16>, vector<8x256xf32> -> vector<8x256xf32>
    %408 = arith.addf %383, %407 : vector<8x256xf32>
    %409 = vector.extract_strided_slice %408 {offsets = [0, 0], sizes = [8, 192], strides = [1, 1]} : vector<8x256xf32> to vector<8x192xf32>
    %410 = arith.negf %409 : vector<8x192xf32>
    %411 = math.exp %410 : vector<8x192xf32>
    %cst_79 = arith.constant 1.000000e+00 : f32
    %412 = vector.broadcast %cst_79 : f32 to vector<8x192xf32>
    %413 = arith.addf %412, %411 : vector<8x192xf32>
    %414 = arith.divf %412, %413 : vector<8x192xf32>
    %415 = vector.extract_strided_slice %408 {offsets = [0, 192], sizes = [8, 64], strides = [1, 1]} : vector<8x256xf32> to vector<8x64xf32>
    %416 = math.tanh %415 : vector<8x64xf32>
    %417 = vector.extract_strided_slice %414 {offsets = [0, 0], sizes = [8, 64], strides = [1, 1]} : vector<8x192xf32> to vector<8x64xf32>
    %418 = vector.extract_strided_slice %414 {offsets = [0, 64], sizes = [8, 64], strides = [1, 1]} : vector<8x192xf32> to vector<8x64xf32>
    %419 = vector.extract_strided_slice %414 {offsets = [0, 128], sizes = [8, 64], strides = [1, 1]} : vector<8x192xf32> to vector<8x64xf32>
    %420 = arith.mulf %418, %377 : vector<8x64xf32>
    %421 = arith.mulf %417, %416 : vector<8x64xf32>
    %422 = arith.addf %420, %421 : vector<8x64xf32>
    %423 = math.tanh %422 : vector<8x64xf32>
    %424 = arith.mulf %419, %423 : vector<8x64xf32>
    %c9_i32 = arith.constant 9 : i32
    %425 = arith.truncf %424 : vector<8x64xf32> to vector<8x64xbf16>
    %cst_80 = arith.constant dense<0.000000e+00> : vector<8x256xf32>
    %426 = tpu.matmul %425, %5, %cst_80 {dimension_numbers = #tpu.dot_dimension_numbers<[1], [0], [0], [1], [0, 0, 1, 1], [], []>} : vector<8x64xbf16>, vector<64x256xbf16>, vector<8x256xf32> -> vector<8x256xf32>
    %427 = vector.broadcast %6 : vector<1x256xf32> to vector<8x256xf32>
    %428 = arith.addf %426, %427 : vector<8x256xf32>
    %429 = arith.index_cast %c9_i32 : i32 to index
    %c0_81 = arith.constant 0 : index
    %c0_82 = arith.constant 0 : index
    %430 = vector.load %arg4[%429, %c0_81, %c0_82] : memref<16x8x256xf32, #tpu.memory_space<vmem>>, vector<1x8x256xf32>
    %431 = vector.shape_cast %430 : vector<1x8x256xf32> to vector<8x256xf32>
    %432 = arith.truncf %405 : vector<8x64xf32> to vector<8x64xbf16>
    %cst_83 = arith.constant dense<0.000000e+00> : vector<8x256xf32>
    %433 = tpu.matmul %432, %1, %cst_83 {dimension_numbers = #tpu.dot_dimension_numbers<[1], [0], [0], [1], [0, 0, 1, 1], [], []>} : vector<8x64xbf16>, vector<64x256xbf16>, vector<8x256xf32> -> vector<8x256xf32>
    %434 = arith.addf %431, %433 : vector<8x256xf32>
    %435 = vector.extract_strided_slice %434 {offsets = [0, 0], sizes = [8, 192], strides = [1, 1]} : vector<8x256xf32> to vector<8x192xf32>
    %436 = arith.negf %435 : vector<8x192xf32>
    %437 = math.exp %436 : vector<8x192xf32>
    %cst_84 = arith.constant 1.000000e+00 : f32
    %438 = vector.broadcast %cst_84 : f32 to vector<8x192xf32>
    %439 = arith.addf %438, %437 : vector<8x192xf32>
    %440 = arith.divf %438, %439 : vector<8x192xf32>
    %441 = vector.extract_strided_slice %434 {offsets = [0, 192], sizes = [8, 64], strides = [1, 1]} : vector<8x256xf32> to vector<8x64xf32>
    %442 = math.tanh %441 : vector<8x64xf32>
    %443 = vector.extract_strided_slice %440 {offsets = [0, 0], sizes = [8, 64], strides = [1, 1]} : vector<8x192xf32> to vector<8x64xf32>
    %444 = vector.extract_strided_slice %440 {offsets = [0, 64], sizes = [8, 64], strides = [1, 1]} : vector<8x192xf32> to vector<8x64xf32>
    %445 = vector.extract_strided_slice %440 {offsets = [0, 128], sizes = [8, 64], strides = [1, 1]} : vector<8x192xf32> to vector<8x64xf32>
    %446 = arith.mulf %444, %403 : vector<8x64xf32>
    %447 = arith.mulf %443, %442 : vector<8x64xf32>
    %448 = arith.addf %446, %447 : vector<8x64xf32>
    %449 = math.tanh %448 : vector<8x64xf32>
    %450 = arith.mulf %445, %449 : vector<8x64xf32>
    %451 = arith.truncf %450 : vector<8x64xf32> to vector<8x64xbf16>
    %cst_85 = arith.constant dense<0.000000e+00> : vector<8x256xf32>
    %452 = tpu.matmul %451, %3, %cst_85 {dimension_numbers = #tpu.dot_dimension_numbers<[1], [0], [0], [1], [0, 0, 1, 1], [], []>} : vector<8x64xbf16>, vector<64x256xbf16>, vector<8x256xf32> -> vector<8x256xf32>
    %453 = arith.addf %428, %452 : vector<8x256xf32>
    %454 = vector.extract_strided_slice %453 {offsets = [0, 0], sizes = [8, 192], strides = [1, 1]} : vector<8x256xf32> to vector<8x192xf32>
    %455 = arith.negf %454 : vector<8x192xf32>
    %456 = math.exp %455 : vector<8x192xf32>
    %cst_86 = arith.constant 1.000000e+00 : f32
    %457 = vector.broadcast %cst_86 : f32 to vector<8x192xf32>
    %458 = arith.addf %457, %456 : vector<8x192xf32>
    %459 = arith.divf %457, %458 : vector<8x192xf32>
    %460 = vector.extract_strided_slice %453 {offsets = [0, 192], sizes = [8, 64], strides = [1, 1]} : vector<8x256xf32> to vector<8x64xf32>
    %461 = math.tanh %460 : vector<8x64xf32>
    %462 = vector.extract_strided_slice %459 {offsets = [0, 0], sizes = [8, 64], strides = [1, 1]} : vector<8x192xf32> to vector<8x64xf32>
    %463 = vector.extract_strided_slice %459 {offsets = [0, 64], sizes = [8, 64], strides = [1, 1]} : vector<8x192xf32> to vector<8x64xf32>
    %464 = vector.extract_strided_slice %459 {offsets = [0, 128], sizes = [8, 64], strides = [1, 1]} : vector<8x192xf32> to vector<8x64xf32>
    %465 = arith.mulf %463, %422 : vector<8x64xf32>
    %466 = arith.mulf %462, %461 : vector<8x64xf32>
    %467 = arith.addf %465, %466 : vector<8x64xf32>
    %468 = math.tanh %467 : vector<8x64xf32>
    %469 = arith.mulf %464, %468 : vector<8x64xf32>
    %c10_i32 = arith.constant 10 : i32
    %470 = arith.truncf %469 : vector<8x64xf32> to vector<8x64xbf16>
    %cst_87 = arith.constant dense<0.000000e+00> : vector<8x256xf32>
    %471 = tpu.matmul %470, %5, %cst_87 {dimension_numbers = #tpu.dot_dimension_numbers<[1], [0], [0], [1], [0, 0, 1, 1], [], []>} : vector<8x64xbf16>, vector<64x256xbf16>, vector<8x256xf32> -> vector<8x256xf32>
    %472 = vector.broadcast %6 : vector<1x256xf32> to vector<8x256xf32>
    %473 = arith.addf %471, %472 : vector<8x256xf32>
    %474 = arith.index_cast %c10_i32 : i32 to index
    %c0_88 = arith.constant 0 : index
    %c0_89 = arith.constant 0 : index
    %475 = vector.load %arg4[%474, %c0_88, %c0_89] : memref<16x8x256xf32, #tpu.memory_space<vmem>>, vector<1x8x256xf32>
    %476 = vector.shape_cast %475 : vector<1x8x256xf32> to vector<8x256xf32>
    %477 = arith.truncf %450 : vector<8x64xf32> to vector<8x64xbf16>
    %cst_90 = arith.constant dense<0.000000e+00> : vector<8x256xf32>
    %478 = tpu.matmul %477, %1, %cst_90 {dimension_numbers = #tpu.dot_dimension_numbers<[1], [0], [0], [1], [0, 0, 1, 1], [], []>} : vector<8x64xbf16>, vector<64x256xbf16>, vector<8x256xf32> -> vector<8x256xf32>
    %479 = arith.addf %476, %478 : vector<8x256xf32>
    %480 = vector.extract_strided_slice %479 {offsets = [0, 0], sizes = [8, 192], strides = [1, 1]} : vector<8x256xf32> to vector<8x192xf32>
    %481 = arith.negf %480 : vector<8x192xf32>
    %482 = math.exp %481 : vector<8x192xf32>
    %cst_91 = arith.constant 1.000000e+00 : f32
    %483 = vector.broadcast %cst_91 : f32 to vector<8x192xf32>
    %484 = arith.addf %483, %482 : vector<8x192xf32>
    %485 = arith.divf %483, %484 : vector<8x192xf32>
    %486 = vector.extract_strided_slice %479 {offsets = [0, 192], sizes = [8, 64], strides = [1, 1]} : vector<8x256xf32> to vector<8x64xf32>
    %487 = math.tanh %486 : vector<8x64xf32>
    %488 = vector.extract_strided_slice %485 {offsets = [0, 0], sizes = [8, 64], strides = [1, 1]} : vector<8x192xf32> to vector<8x64xf32>
    %489 = vector.extract_strided_slice %485 {offsets = [0, 64], sizes = [8, 64], strides = [1, 1]} : vector<8x192xf32> to vector<8x64xf32>
    %490 = vector.extract_strided_slice %485 {offsets = [0, 128], sizes = [8, 64], strides = [1, 1]} : vector<8x192xf32> to vector<8x64xf32>
    %491 = arith.mulf %489, %448 : vector<8x64xf32>
    %492 = arith.mulf %488, %487 : vector<8x64xf32>
    %493 = arith.addf %491, %492 : vector<8x64xf32>
    %494 = math.tanh %493 : vector<8x64xf32>
    %495 = arith.mulf %490, %494 : vector<8x64xf32>
    %496 = arith.truncf %495 : vector<8x64xf32> to vector<8x64xbf16>
    %cst_92 = arith.constant dense<0.000000e+00> : vector<8x256xf32>
    %497 = tpu.matmul %496, %3, %cst_92 {dimension_numbers = #tpu.dot_dimension_numbers<[1], [0], [0], [1], [0, 0, 1, 1], [], []>} : vector<8x64xbf16>, vector<64x256xbf16>, vector<8x256xf32> -> vector<8x256xf32>
    %498 = arith.addf %473, %497 : vector<8x256xf32>
    %499 = vector.extract_strided_slice %498 {offsets = [0, 0], sizes = [8, 192], strides = [1, 1]} : vector<8x256xf32> to vector<8x192xf32>
    %500 = arith.negf %499 : vector<8x192xf32>
    %501 = math.exp %500 : vector<8x192xf32>
    %cst_93 = arith.constant 1.000000e+00 : f32
    %502 = vector.broadcast %cst_93 : f32 to vector<8x192xf32>
    %503 = arith.addf %502, %501 : vector<8x192xf32>
    %504 = arith.divf %502, %503 : vector<8x192xf32>
    %505 = vector.extract_strided_slice %498 {offsets = [0, 192], sizes = [8, 64], strides = [1, 1]} : vector<8x256xf32> to vector<8x64xf32>
    %506 = math.tanh %505 : vector<8x64xf32>
    %507 = vector.extract_strided_slice %504 {offsets = [0, 0], sizes = [8, 64], strides = [1, 1]} : vector<8x192xf32> to vector<8x64xf32>
    %508 = vector.extract_strided_slice %504 {offsets = [0, 64], sizes = [8, 64], strides = [1, 1]} : vector<8x192xf32> to vector<8x64xf32>
    %509 = vector.extract_strided_slice %504 {offsets = [0, 128], sizes = [8, 64], strides = [1, 1]} : vector<8x192xf32> to vector<8x64xf32>
    %510 = arith.mulf %508, %467 : vector<8x64xf32>
    %511 = arith.mulf %507, %506 : vector<8x64xf32>
    %512 = arith.addf %510, %511 : vector<8x64xf32>
    %513 = math.tanh %512 : vector<8x64xf32>
    %514 = arith.mulf %509, %513 : vector<8x64xf32>
    %c11_i32 = arith.constant 11 : i32
    %515 = arith.truncf %514 : vector<8x64xf32> to vector<8x64xbf16>
    %cst_94 = arith.constant dense<0.000000e+00> : vector<8x256xf32>
    %516 = tpu.matmul %515, %5, %cst_94 {dimension_numbers = #tpu.dot_dimension_numbers<[1], [0], [0], [1], [0, 0, 1, 1], [], []>} : vector<8x64xbf16>, vector<64x256xbf16>, vector<8x256xf32> -> vector<8x256xf32>
    %517 = vector.broadcast %6 : vector<1x256xf32> to vector<8x256xf32>
    %518 = arith.addf %516, %517 : vector<8x256xf32>
    %519 = arith.index_cast %c11_i32 : i32 to index
    %c0_95 = arith.constant 0 : index
    %c0_96 = arith.constant 0 : index
    %520 = vector.load %arg4[%519, %c0_95, %c0_96] : memref<16x8x256xf32, #tpu.memory_space<vmem>>, vector<1x8x256xf32>
    %521 = vector.shape_cast %520 : vector<1x8x256xf32> to vector<8x256xf32>
    %522 = arith.truncf %495 : vector<8x64xf32> to vector<8x64xbf16>
    %cst_97 = arith.constant dense<0.000000e+00> : vector<8x256xf32>
    %523 = tpu.matmul %522, %1, %cst_97 {dimension_numbers = #tpu.dot_dimension_numbers<[1], [0], [0], [1], [0, 0, 1, 1], [], []>} : vector<8x64xbf16>, vector<64x256xbf16>, vector<8x256xf32> -> vector<8x256xf32>
    %524 = arith.addf %521, %523 : vector<8x256xf32>
    %525 = vector.extract_strided_slice %524 {offsets = [0, 0], sizes = [8, 192], strides = [1, 1]} : vector<8x256xf32> to vector<8x192xf32>
    %526 = arith.negf %525 : vector<8x192xf32>
    %527 = math.exp %526 : vector<8x192xf32>
    %cst_98 = arith.constant 1.000000e+00 : f32
    %528 = vector.broadcast %cst_98 : f32 to vector<8x192xf32>
    %529 = arith.addf %528, %527 : vector<8x192xf32>
    %530 = arith.divf %528, %529 : vector<8x192xf32>
    %531 = vector.extract_strided_slice %524 {offsets = [0, 192], sizes = [8, 64], strides = [1, 1]} : vector<8x256xf32> to vector<8x64xf32>
    %532 = math.tanh %531 : vector<8x64xf32>
    %533 = vector.extract_strided_slice %530 {offsets = [0, 0], sizes = [8, 64], strides = [1, 1]} : vector<8x192xf32> to vector<8x64xf32>
    %534 = vector.extract_strided_slice %530 {offsets = [0, 64], sizes = [8, 64], strides = [1, 1]} : vector<8x192xf32> to vector<8x64xf32>
    %535 = vector.extract_strided_slice %530 {offsets = [0, 128], sizes = [8, 64], strides = [1, 1]} : vector<8x192xf32> to vector<8x64xf32>
    %536 = arith.mulf %534, %493 : vector<8x64xf32>
    %537 = arith.mulf %533, %532 : vector<8x64xf32>
    %538 = arith.addf %536, %537 : vector<8x64xf32>
    %539 = math.tanh %538 : vector<8x64xf32>
    %540 = arith.mulf %535, %539 : vector<8x64xf32>
    %541 = arith.truncf %540 : vector<8x64xf32> to vector<8x64xbf16>
    %cst_99 = arith.constant dense<0.000000e+00> : vector<8x256xf32>
    %542 = tpu.matmul %541, %3, %cst_99 {dimension_numbers = #tpu.dot_dimension_numbers<[1], [0], [0], [1], [0, 0, 1, 1], [], []>} : vector<8x64xbf16>, vector<64x256xbf16>, vector<8x256xf32> -> vector<8x256xf32>
    %543 = arith.addf %518, %542 : vector<8x256xf32>
    %544 = vector.extract_strided_slice %543 {offsets = [0, 0], sizes = [8, 192], strides = [1, 1]} : vector<8x256xf32> to vector<8x192xf32>
    %545 = arith.negf %544 : vector<8x192xf32>
    %546 = math.exp %545 : vector<8x192xf32>
    %cst_100 = arith.constant 1.000000e+00 : f32
    %547 = vector.broadcast %cst_100 : f32 to vector<8x192xf32>
    %548 = arith.addf %547, %546 : vector<8x192xf32>
    %549 = arith.divf %547, %548 : vector<8x192xf32>
    %550 = vector.extract_strided_slice %543 {offsets = [0, 192], sizes = [8, 64], strides = [1, 1]} : vector<8x256xf32> to vector<8x64xf32>
    %551 = math.tanh %550 : vector<8x64xf32>
    %552 = vector.extract_strided_slice %549 {offsets = [0, 0], sizes = [8, 64], strides = [1, 1]} : vector<8x192xf32> to vector<8x64xf32>
    %553 = vector.extract_strided_slice %549 {offsets = [0, 64], sizes = [8, 64], strides = [1, 1]} : vector<8x192xf32> to vector<8x64xf32>
    %554 = vector.extract_strided_slice %549 {offsets = [0, 128], sizes = [8, 64], strides = [1, 1]} : vector<8x192xf32> to vector<8x64xf32>
    %555 = arith.mulf %553, %512 : vector<8x64xf32>
    %556 = arith.mulf %552, %551 : vector<8x64xf32>
    %557 = arith.addf %555, %556 : vector<8x64xf32>
    %558 = math.tanh %557 : vector<8x64xf32>
    %559 = arith.mulf %554, %558 : vector<8x64xf32>
    %c12_i32 = arith.constant 12 : i32
    %560 = arith.truncf %559 : vector<8x64xf32> to vector<8x64xbf16>
    %cst_101 = arith.constant dense<0.000000e+00> : vector<8x256xf32>
    %561 = tpu.matmul %560, %5, %cst_101 {dimension_numbers = #tpu.dot_dimension_numbers<[1], [0], [0], [1], [0, 0, 1, 1], [], []>} : vector<8x64xbf16>, vector<64x256xbf16>, vector<8x256xf32> -> vector<8x256xf32>
    %562 = vector.broadcast %6 : vector<1x256xf32> to vector<8x256xf32>
    %563 = arith.addf %561, %562 : vector<8x256xf32>
    %564 = arith.index_cast %c12_i32 : i32 to index
    %c0_102 = arith.constant 0 : index
    %c0_103 = arith.constant 0 : index
    %565 = vector.load %arg4[%564, %c0_102, %c0_103] : memref<16x8x256xf32, #tpu.memory_space<vmem>>, vector<1x8x256xf32>
    %566 = vector.shape_cast %565 : vector<1x8x256xf32> to vector<8x256xf32>
    %567 = arith.truncf %540 : vector<8x64xf32> to vector<8x64xbf16>
    %cst_104 = arith.constant dense<0.000000e+00> : vector<8x256xf32>
    %568 = tpu.matmul %567, %1, %cst_104 {dimension_numbers = #tpu.dot_dimension_numbers<[1], [0], [0], [1], [0, 0, 1, 1], [], []>} : vector<8x64xbf16>, vector<64x256xbf16>, vector<8x256xf32> -> vector<8x256xf32>
    %569 = arith.addf %566, %568 : vector<8x256xf32>
    %570 = vector.extract_strided_slice %569 {offsets = [0, 0], sizes = [8, 192], strides = [1, 1]} : vector<8x256xf32> to vector<8x192xf32>
    %571 = arith.negf %570 : vector<8x192xf32>
    %572 = math.exp %571 : vector<8x192xf32>
    %cst_105 = arith.constant 1.000000e+00 : f32
    %573 = vector.broadcast %cst_105 : f32 to vector<8x192xf32>
    %574 = arith.addf %573, %572 : vector<8x192xf32>
    %575 = arith.divf %573, %574 : vector<8x192xf32>
    %576 = vector.extract_strided_slice %569 {offsets = [0, 192], sizes = [8, 64], strides = [1, 1]} : vector<8x256xf32> to vector<8x64xf32>
    %577 = math.tanh %576 : vector<8x64xf32>
    %578 = vector.extract_strided_slice %575 {offsets = [0, 0], sizes = [8, 64], strides = [1, 1]} : vector<8x192xf32> to vector<8x64xf32>
    %579 = vector.extract_strided_slice %575 {offsets = [0, 64], sizes = [8, 64], strides = [1, 1]} : vector<8x192xf32> to vector<8x64xf32>
    %580 = vector.extract_strided_slice %575 {offsets = [0, 128], sizes = [8, 64], strides = [1, 1]} : vector<8x192xf32> to vector<8x64xf32>
    %581 = arith.mulf %579, %538 : vector<8x64xf32>
    %582 = arith.mulf %578, %577 : vector<8x64xf32>
    %583 = arith.addf %581, %582 : vector<8x64xf32>
    %584 = math.tanh %583 : vector<8x64xf32>
    %585 = arith.mulf %580, %584 : vector<8x64xf32>
    %586 = arith.truncf %585 : vector<8x64xf32> to vector<8x64xbf16>
    %cst_106 = arith.constant dense<0.000000e+00> : vector<8x256xf32>
    %587 = tpu.matmul %586, %3, %cst_106 {dimension_numbers = #tpu.dot_dimension_numbers<[1], [0], [0], [1], [0, 0, 1, 1], [], []>} : vector<8x64xbf16>, vector<64x256xbf16>, vector<8x256xf32> -> vector<8x256xf32>
    %588 = arith.addf %563, %587 : vector<8x256xf32>
    %589 = vector.extract_strided_slice %588 {offsets = [0, 0], sizes = [8, 192], strides = [1, 1]} : vector<8x256xf32> to vector<8x192xf32>
    %590 = arith.negf %589 : vector<8x192xf32>
    %591 = math.exp %590 : vector<8x192xf32>
    %cst_107 = arith.constant 1.000000e+00 : f32
    %592 = vector.broadcast %cst_107 : f32 to vector<8x192xf32>
    %593 = arith.addf %592, %591 : vector<8x192xf32>
    %594 = arith.divf %592, %593 : vector<8x192xf32>
    %595 = vector.extract_strided_slice %588 {offsets = [0, 192], sizes = [8, 64], strides = [1, 1]} : vector<8x256xf32> to vector<8x64xf32>
    %596 = math.tanh %595 : vector<8x64xf32>
    %597 = vector.extract_strided_slice %594 {offsets = [0, 0], sizes = [8, 64], strides = [1, 1]} : vector<8x192xf32> to vector<8x64xf32>
    %598 = vector.extract_strided_slice %594 {offsets = [0, 64], sizes = [8, 64], strides = [1, 1]} : vector<8x192xf32> to vector<8x64xf32>
    %599 = vector.extract_strided_slice %594 {offsets = [0, 128], sizes = [8, 64], strides = [1, 1]} : vector<8x192xf32> to vector<8x64xf32>
    %600 = arith.mulf %598, %557 : vector<8x64xf32>
    %601 = arith.mulf %597, %596 : vector<8x64xf32>
    %602 = arith.addf %600, %601 : vector<8x64xf32>
    %603 = math.tanh %602 : vector<8x64xf32>
    %604 = arith.mulf %599, %603 : vector<8x64xf32>
    %c13_i32 = arith.constant 13 : i32
    %605 = arith.truncf %604 : vector<8x64xf32> to vector<8x64xbf16>
    %cst_108 = arith.constant dense<0.000000e+00> : vector<8x256xf32>
    %606 = tpu.matmul %605, %5, %cst_108 {dimension_numbers = #tpu.dot_dimension_numbers<[1], [0], [0], [1], [0, 0, 1, 1], [], []>} : vector<8x64xbf16>, vector<64x256xbf16>, vector<8x256xf32> -> vector<8x256xf32>
    %607 = vector.broadcast %6 : vector<1x256xf32> to vector<8x256xf32>
    %608 = arith.addf %606, %607 : vector<8x256xf32>
    %609 = arith.index_cast %c13_i32 : i32 to index
    %c0_109 = arith.constant 0 : index
    %c0_110 = arith.constant 0 : index
    %610 = vector.load %arg4[%609, %c0_109, %c0_110] : memref<16x8x256xf32, #tpu.memory_space<vmem>>, vector<1x8x256xf32>
    %611 = vector.shape_cast %610 : vector<1x8x256xf32> to vector<8x256xf32>
    %612 = arith.truncf %585 : vector<8x64xf32> to vector<8x64xbf16>
    %cst_111 = arith.constant dense<0.000000e+00> : vector<8x256xf32>
    %613 = tpu.matmul %612, %1, %cst_111 {dimension_numbers = #tpu.dot_dimension_numbers<[1], [0], [0], [1], [0, 0, 1, 1], [], []>} : vector<8x64xbf16>, vector<64x256xbf16>, vector<8x256xf32> -> vector<8x256xf32>
    %614 = arith.addf %611, %613 : vector<8x256xf32>
    %615 = vector.extract_strided_slice %614 {offsets = [0, 0], sizes = [8, 192], strides = [1, 1]} : vector<8x256xf32> to vector<8x192xf32>
    %616 = arith.negf %615 : vector<8x192xf32>
    %617 = math.exp %616 : vector<8x192xf32>
    %cst_112 = arith.constant 1.000000e+00 : f32
    %618 = vector.broadcast %cst_112 : f32 to vector<8x192xf32>
    %619 = arith.addf %618, %617 : vector<8x192xf32>
    %620 = arith.divf %618, %619 : vector<8x192xf32>
    %621 = vector.extract_strided_slice %614 {offsets = [0, 192], sizes = [8, 64], strides = [1, 1]} : vector<8x256xf32> to vector<8x64xf32>
    %622 = math.tanh %621 : vector<8x64xf32>
    %623 = vector.extract_strided_slice %620 {offsets = [0, 0], sizes = [8, 64], strides = [1, 1]} : vector<8x192xf32> to vector<8x64xf32>
    %624 = vector.extract_strided_slice %620 {offsets = [0, 64], sizes = [8, 64], strides = [1, 1]} : vector<8x192xf32> to vector<8x64xf32>
    %625 = vector.extract_strided_slice %620 {offsets = [0, 128], sizes = [8, 64], strides = [1, 1]} : vector<8x192xf32> to vector<8x64xf32>
    %626 = arith.mulf %624, %583 : vector<8x64xf32>
    %627 = arith.mulf %623, %622 : vector<8x64xf32>
    %628 = arith.addf %626, %627 : vector<8x64xf32>
    %629 = math.tanh %628 : vector<8x64xf32>
    %630 = arith.mulf %625, %629 : vector<8x64xf32>
    %631 = arith.truncf %630 : vector<8x64xf32> to vector<8x64xbf16>
    %cst_113 = arith.constant dense<0.000000e+00> : vector<8x256xf32>
    %632 = tpu.matmul %631, %3, %cst_113 {dimension_numbers = #tpu.dot_dimension_numbers<[1], [0], [0], [1], [0, 0, 1, 1], [], []>} : vector<8x64xbf16>, vector<64x256xbf16>, vector<8x256xf32> -> vector<8x256xf32>
    %633 = arith.addf %608, %632 : vector<8x256xf32>
    %634 = vector.extract_strided_slice %633 {offsets = [0, 0], sizes = [8, 192], strides = [1, 1]} : vector<8x256xf32> to vector<8x192xf32>
    %635 = arith.negf %634 : vector<8x192xf32>
    %636 = math.exp %635 : vector<8x192xf32>
    %cst_114 = arith.constant 1.000000e+00 : f32
    %637 = vector.broadcast %cst_114 : f32 to vector<8x192xf32>
    %638 = arith.addf %637, %636 : vector<8x192xf32>
    %639 = arith.divf %637, %638 : vector<8x192xf32>
    %640 = vector.extract_strided_slice %633 {offsets = [0, 192], sizes = [8, 64], strides = [1, 1]} : vector<8x256xf32> to vector<8x64xf32>
    %641 = math.tanh %640 : vector<8x64xf32>
    %642 = vector.extract_strided_slice %639 {offsets = [0, 0], sizes = [8, 64], strides = [1, 1]} : vector<8x192xf32> to vector<8x64xf32>
    %643 = vector.extract_strided_slice %639 {offsets = [0, 64], sizes = [8, 64], strides = [1, 1]} : vector<8x192xf32> to vector<8x64xf32>
    %644 = vector.extract_strided_slice %639 {offsets = [0, 128], sizes = [8, 64], strides = [1, 1]} : vector<8x192xf32> to vector<8x64xf32>
    %645 = arith.mulf %643, %602 : vector<8x64xf32>
    %646 = arith.mulf %642, %641 : vector<8x64xf32>
    %647 = arith.addf %645, %646 : vector<8x64xf32>
    %648 = math.tanh %647 : vector<8x64xf32>
    %649 = arith.mulf %644, %648 : vector<8x64xf32>
    %c14_i32 = arith.constant 14 : i32
    %650 = arith.truncf %649 : vector<8x64xf32> to vector<8x64xbf16>
    %cst_115 = arith.constant dense<0.000000e+00> : vector<8x256xf32>
    %651 = tpu.matmul %650, %5, %cst_115 {dimension_numbers = #tpu.dot_dimension_numbers<[1], [0], [0], [1], [0, 0, 1, 1], [], []>} : vector<8x64xbf16>, vector<64x256xbf16>, vector<8x256xf32> -> vector<8x256xf32>
    %652 = vector.broadcast %6 : vector<1x256xf32> to vector<8x256xf32>
    %653 = arith.addf %651, %652 : vector<8x256xf32>
    %654 = arith.index_cast %c14_i32 : i32 to index
    %c0_116 = arith.constant 0 : index
    %c0_117 = arith.constant 0 : index
    %655 = vector.load %arg4[%654, %c0_116, %c0_117] : memref<16x8x256xf32, #tpu.memory_space<vmem>>, vector<1x8x256xf32>
    %656 = vector.shape_cast %655 : vector<1x8x256xf32> to vector<8x256xf32>
    %657 = arith.truncf %630 : vector<8x64xf32> to vector<8x64xbf16>
    %cst_118 = arith.constant dense<0.000000e+00> : vector<8x256xf32>
    %658 = tpu.matmul %657, %1, %cst_118 {dimension_numbers = #tpu.dot_dimension_numbers<[1], [0], [0], [1], [0, 0, 1, 1], [], []>} : vector<8x64xbf16>, vector<64x256xbf16>, vector<8x256xf32> -> vector<8x256xf32>
    %659 = arith.addf %656, %658 : vector<8x256xf32>
    %660 = vector.extract_strided_slice %659 {offsets = [0, 0], sizes = [8, 192], strides = [1, 1]} : vector<8x256xf32> to vector<8x192xf32>
    %661 = arith.negf %660 : vector<8x192xf32>
    %662 = math.exp %661 : vector<8x192xf32>
    %cst_119 = arith.constant 1.000000e+00 : f32
    %663 = vector.broadcast %cst_119 : f32 to vector<8x192xf32>
    %664 = arith.addf %663, %662 : vector<8x192xf32>
    %665 = arith.divf %663, %664 : vector<8x192xf32>
    %666 = vector.extract_strided_slice %659 {offsets = [0, 192], sizes = [8, 64], strides = [1, 1]} : vector<8x256xf32> to vector<8x64xf32>
    %667 = math.tanh %666 : vector<8x64xf32>
    %668 = vector.extract_strided_slice %665 {offsets = [0, 0], sizes = [8, 64], strides = [1, 1]} : vector<8x192xf32> to vector<8x64xf32>
    %669 = vector.extract_strided_slice %665 {offsets = [0, 64], sizes = [8, 64], strides = [1, 1]} : vector<8x192xf32> to vector<8x64xf32>
    %670 = vector.extract_strided_slice %665 {offsets = [0, 128], sizes = [8, 64], strides = [1, 1]} : vector<8x192xf32> to vector<8x64xf32>
    %671 = arith.mulf %669, %628 : vector<8x64xf32>
    %672 = arith.mulf %668, %667 : vector<8x64xf32>
    %673 = arith.addf %671, %672 : vector<8x64xf32>
    %674 = math.tanh %673 : vector<8x64xf32>
    %675 = arith.mulf %670, %674 : vector<8x64xf32>
    %676 = arith.truncf %675 : vector<8x64xf32> to vector<8x64xbf16>
    %cst_120 = arith.constant dense<0.000000e+00> : vector<8x256xf32>
    %677 = tpu.matmul %676, %3, %cst_120 {dimension_numbers = #tpu.dot_dimension_numbers<[1], [0], [0], [1], [0, 0, 1, 1], [], []>} : vector<8x64xbf16>, vector<64x256xbf16>, vector<8x256xf32> -> vector<8x256xf32>
    %678 = arith.addf %653, %677 : vector<8x256xf32>
    %679 = vector.extract_strided_slice %678 {offsets = [0, 0], sizes = [8, 192], strides = [1, 1]} : vector<8x256xf32> to vector<8x192xf32>
    %680 = arith.negf %679 : vector<8x192xf32>
    %681 = math.exp %680 : vector<8x192xf32>
    %cst_121 = arith.constant 1.000000e+00 : f32
    %682 = vector.broadcast %cst_121 : f32 to vector<8x192xf32>
    %683 = arith.addf %682, %681 : vector<8x192xf32>
    %684 = arith.divf %682, %683 : vector<8x192xf32>
    %685 = vector.extract_strided_slice %678 {offsets = [0, 192], sizes = [8, 64], strides = [1, 1]} : vector<8x256xf32> to vector<8x64xf32>
    %686 = math.tanh %685 : vector<8x64xf32>
    %687 = vector.extract_strided_slice %684 {offsets = [0, 0], sizes = [8, 64], strides = [1, 1]} : vector<8x192xf32> to vector<8x64xf32>
    %688 = vector.extract_strided_slice %684 {offsets = [0, 64], sizes = [8, 64], strides = [1, 1]} : vector<8x192xf32> to vector<8x64xf32>
    %689 = vector.extract_strided_slice %684 {offsets = [0, 128], sizes = [8, 64], strides = [1, 1]} : vector<8x192xf32> to vector<8x64xf32>
    %690 = arith.mulf %688, %647 : vector<8x64xf32>
    %691 = arith.mulf %687, %686 : vector<8x64xf32>
    %692 = arith.addf %690, %691 : vector<8x64xf32>
    %693 = math.tanh %692 : vector<8x64xf32>
    %694 = arith.mulf %689, %693 : vector<8x64xf32>
    %c15_i32 = arith.constant 15 : i32
    %695 = arith.truncf %694 : vector<8x64xf32> to vector<8x64xbf16>
    %cst_122 = arith.constant dense<0.000000e+00> : vector<8x256xf32>
    %696 = tpu.matmul %695, %5, %cst_122 {dimension_numbers = #tpu.dot_dimension_numbers<[1], [0], [0], [1], [0, 0, 1, 1], [], []>} : vector<8x64xbf16>, vector<64x256xbf16>, vector<8x256xf32> -> vector<8x256xf32>
    %697 = vector.broadcast %6 : vector<1x256xf32> to vector<8x256xf32>
    %698 = arith.addf %696, %697 : vector<8x256xf32>
    %699 = arith.index_cast %c15_i32 : i32 to index
    %c0_123 = arith.constant 0 : index
    %c0_124 = arith.constant 0 : index
    %700 = vector.load %arg4[%699, %c0_123, %c0_124] : memref<16x8x256xf32, #tpu.memory_space<vmem>>, vector<1x8x256xf32>
    %701 = vector.shape_cast %700 : vector<1x8x256xf32> to vector<8x256xf32>
    %702 = arith.truncf %675 : vector<8x64xf32> to vector<8x64xbf16>
    %cst_125 = arith.constant dense<0.000000e+00> : vector<8x256xf32>
    %703 = tpu.matmul %702, %1, %cst_125 {dimension_numbers = #tpu.dot_dimension_numbers<[1], [0], [0], [1], [0, 0, 1, 1], [], []>} : vector<8x64xbf16>, vector<64x256xbf16>, vector<8x256xf32> -> vector<8x256xf32>
    %704 = arith.addf %701, %703 : vector<8x256xf32>
    %705 = vector.extract_strided_slice %704 {offsets = [0, 0], sizes = [8, 192], strides = [1, 1]} : vector<8x256xf32> to vector<8x192xf32>
    %706 = arith.negf %705 : vector<8x192xf32>
    %707 = math.exp %706 : vector<8x192xf32>
    %cst_126 = arith.constant 1.000000e+00 : f32
    %708 = vector.broadcast %cst_126 : f32 to vector<8x192xf32>
    %709 = arith.addf %708, %707 : vector<8x192xf32>
    %710 = arith.divf %708, %709 : vector<8x192xf32>
    %711 = vector.extract_strided_slice %704 {offsets = [0, 192], sizes = [8, 64], strides = [1, 1]} : vector<8x256xf32> to vector<8x64xf32>
    %712 = math.tanh %711 : vector<8x64xf32>
    %713 = vector.extract_strided_slice %710 {offsets = [0, 0], sizes = [8, 64], strides = [1, 1]} : vector<8x192xf32> to vector<8x64xf32>
    %714 = vector.extract_strided_slice %710 {offsets = [0, 64], sizes = [8, 64], strides = [1, 1]} : vector<8x192xf32> to vector<8x64xf32>
    %715 = vector.extract_strided_slice %710 {offsets = [0, 128], sizes = [8, 64], strides = [1, 1]} : vector<8x192xf32> to vector<8x64xf32>
    %716 = arith.mulf %714, %673 : vector<8x64xf32>
    %717 = arith.mulf %713, %712 : vector<8x64xf32>
    %718 = arith.addf %716, %717 : vector<8x64xf32>
    %719 = math.tanh %718 : vector<8x64xf32>
    %720 = arith.mulf %715, %719 : vector<8x64xf32>
    %721 = arith.truncf %720 : vector<8x64xf32> to vector<8x64xbf16>
    %cst_127 = arith.constant dense<0.000000e+00> : vector<8x256xf32>
    %722 = tpu.matmul %721, %3, %cst_127 {dimension_numbers = #tpu.dot_dimension_numbers<[1], [0], [0], [1], [0, 0, 1, 1], [], []>} : vector<8x64xbf16>, vector<64x256xbf16>, vector<8x256xf32> -> vector<8x256xf32>
    %723 = arith.addf %698, %722 : vector<8x256xf32>
    %724 = vector.extract_strided_slice %723 {offsets = [0, 0], sizes = [8, 192], strides = [1, 1]} : vector<8x256xf32> to vector<8x192xf32>
    %725 = arith.negf %724 : vector<8x192xf32>
    %726 = math.exp %725 : vector<8x192xf32>
    %cst_128 = arith.constant 1.000000e+00 : f32
    %727 = vector.broadcast %cst_128 : f32 to vector<8x192xf32>
    %728 = arith.addf %727, %726 : vector<8x192xf32>
    %729 = arith.divf %727, %728 : vector<8x192xf32>
    %730 = vector.extract_strided_slice %723 {offsets = [0, 192], sizes = [8, 64], strides = [1, 1]} : vector<8x256xf32> to vector<8x64xf32>
    %731 = math.tanh %730 : vector<8x64xf32>
    %732 = vector.extract_strided_slice %729 {offsets = [0, 0], sizes = [8, 64], strides = [1, 1]} : vector<8x192xf32> to vector<8x64xf32>
    %733 = vector.extract_strided_slice %729 {offsets = [0, 64], sizes = [8, 64], strides = [1, 1]} : vector<8x192xf32> to vector<8x64xf32>
    %734 = vector.extract_strided_slice %729 {offsets = [0, 128], sizes = [8, 64], strides = [1, 1]} : vector<8x192xf32> to vector<8x64xf32>
    %735 = arith.mulf %733, %692 : vector<8x64xf32>
    %736 = arith.mulf %732, %731 : vector<8x64xf32>
    %737 = arith.addf %735, %736 : vector<8x64xf32>
    %738 = math.tanh %737 : vector<8x64xf32>
    %739 = arith.mulf %734, %738 : vector<8x64xf32>
    %c16_i32 = arith.constant 16 : i32
    %c3 = arith.constant 3 : index
    %c0_129 = arith.constant 0 : index
    %740 = vector.load %arg2[%c3, %c0_129] : memref<8x256xf32, #tpu.memory_space<vmem>>, vector<1x64xf32>
    %c4 = arith.constant 4 : index
    %c0_130 = arith.constant 0 : index
    %741 = vector.load %arg2[%c4, %c0_130] : memref<8x256xf32, #tpu.memory_space<vmem>>, vector<1x1xf32>
    %742 = vector.broadcast %740 : vector<1x64xf32> to vector<8x64xf32>
    %743 = arith.mulf %739, %742 : vector<8x64xf32>
    %cst_131 = arith.constant dense<0.000000e+00> : vector<8xf32>
    %744 = vector.multi_reduction <add>, %743, %cst_131 [1] : vector<8x64xf32> to vector<8xf32>
    %745 = vector.shape_cast %744 : vector<8xf32> to vector<8x1xf32>
    %746 = vector.broadcast %741 : vector<1x1xf32> to vector<8x1xf32>
    %747 = arith.addf %745, %746 : vector<8x1xf32>
    %c0_132 = arith.constant 0 : index
    %c0_133 = arith.constant 0 : index
    %748 = vector.load %arg3[%c0_132, %c0_133] : memref<8x1xf32, #tpu.memory_space<vmem>>, vector<8x1xf32>
    tpu.vector_store %arg3[%c0_132, %c0_133], %747 {strides = array<i32>} : memref<8x1xf32, #tpu.memory_space<vmem>>, vector<8x1xf32>,
    return
  }
}

</mosaic_0001>

<bundles_post_ra>
// kernel: lstm_forward.1
= control target key start
LH: loop header
LB: loop body
LE: loop exit
PB: predicated region body
PF: predicated region fallthrough
CT: control target
= control target key end

     0   :  { %8 = vsyncpa [#allocation4], 0  ;;  %s4252_s12 = smov [#allocation3]   ;;  %s5320_s0 = inlined_call_operand.vmem [shape: f32[16,8], index: 0, kind: input, shape index: {}]   ;;  %s5321_s1 = inlined_call_operand.hbm [shape: bf16[3,64,256], index: 1, kind: input, shape index: {}]   ;;  %s5322_s2 = inlined_call_operand.vmem [shape: f32[8,256], index: 2, kind: input, shape index: {}]   ;;  %s5323_s3 = inlined_call_operand.vmem [shape: f32[8,1], index: 3, kind: output, shape index: {}]  }
   0x1   :  { %s16_s13 = sshll.u32 %s4252_s12, 4  ;;  %s17_s13 = int_to_ptr.vmem [resolvable:$true] %s16_s13 }
   0x2   :  { %s4238_s14 = scalar_lea.vmem %s17_s13, 3072  ;;  %p4243_p1 = scmp.lt.s32.totalorder %s17_s13, %s17_s13 }
   0x3   :  { %p4239_p0 = scmp.ne.s32.totalorder %s17_s13, %s4238_s14  ;;  %p4244_p2 = scmp.lt.s32.totalorder %s4238_s14, %s4238_s14 }
   0x5   :  { %p4245_p3 = por %p4244_p2, %p4243_p1 }
   0x7   :  { %p4246_p4 = pnand %p4245_p3, %p4239_p0 }
   0x9   :  { %4249 = shalt.err (!%p4246_p4)
}
   0xa   :  { %s4253_s15 = smov 128   ;;  %s4254_s16 = smov 8  }
   0xb   :  { %22 = dma.hbm_to_vmem [thread:$0]  %s5321_s1, 3072, %s17_s13, [#allocation4], %s4253_s15, %s4253_s15, %s4254_s16  }
   0xc   :  { %4250 = dma.done.wait [#allocation4], 3072  }
   0xd   :  { %4251 = vsyncadd [#allocation4], 4294964224  ;;  %v4255_v0 = vmov 0   ;;  %v62_v1 = vlaneseq  ;;  %v4284_v3 = vld [vmem:[#allocation3 + $0x34] ss:$8 sps:$4 sm:$0xff]   ;;  %v4303_v9 = vld [vmem:[%s5320_s0] sm:$0xff] }
   0xe   :  { %462 = vmatprep.mubr.bf16.mxu1 %v4255_v0  ;;  %379 = vmatprep.mubr.bf16.mxu0 %v4255_v0  ;;  %v4286_v4 = vld [vmem:[#allocation3 + $0x30] ss:$8 sps:$4 sm:$0xff]   ;;  %v4289_v5 = vld [vmem:[#allocation3 + $0x24] ss:$8 sps:$4 sm:$0xff]   ;;  %v4295_v7 = vld [vmem:[#allocation3 + $0x20] ss:$8 sps:$4 sm:$0xff]  }
   0xf   :  { %v4282_v2 = vshrl.u32 %v62_v1, 7  ;;  %438 = vmatprep.subr.bf16.mxu1 %v4284_v3  ;;  %v4298_v8 = vld [vmem:[#allocation3 + $0x14] ss:$8 sps:$4 sm:$0xff]   ;;  %v4305_v10 = vld [vmem:[#allocation3 + $0x10] ss:$8 sps:$4 sm:$0xff]   ;;  %s4256_s24 = smov 64  }
  0x10   :  { %439 = vmatpush1.bf16.msra.mxu1 %v4286_v4  ;;  %v4307_v11 = vld [vmem:[#allocation3 + $0x4] ss:$8 sps:$4 sm:$0xff]   ;;  %v4313_v13 = vld [vmem:[#allocation3] ss:$8 sps:$4 sm:$0xff]   ;;  %v4350_v39 = vld [vmem:[#allocation3 + $0xb4] ss:$8 sps:$4 sm:$0xff]  }
  0x11   :  { %v4292_v6 = vsub.s32 0, %v4282_v2  ;;  %440 = vmatprep.subr.bf16.mxu1 %v4289_v5  ;;  %v4321_v14 = vsub.s32 1, %v4282_v2  ;;  %v57_v15 = vld [vmem:[%s5322_s2] ss:$8 sm:$0x3]  ;;  %355 = vmatprep.subr.bf16.mxu0 %v4350_v39  ;;  %vm343_vm0 = vcmask 523264  }
  0x12   :  { %v3605_v17 = vld [vmem:[%s5322_s2 + $0x1] ss:$8 sm:$0x3]  ;;  %v4352_v40 = vld [vmem:[#allocation3 + $0xb0] ss:$8 sps:$4 sm:$0xff]   ;;  %vm3597_vm1 = vcmask 7168  }
  0x13   :  { %v65_v12 = vrot.slane %v4303_v9, %v4292_v6  ;;  %v4327_v16 = vrot.slane %v57_v15, %v4321_v14  ;;  %v4333_v19 = vrot.slane %v3605_v17, %v4321_v14  ;;  %v4342_v28 = vrot.slane %v57_v15, %v4292_v6  ;;  %v4354_v41 = vld [vmem:[#allocation3 + $0xa4] ss:$8 sps:$4 sm:$0xff]   ;;  %356 = vmatpush1.bf16.msra.mxu0 %v4352_v40  ;;  %v4359_v42 = vld [vmem:[#allocation3 + $0xa0] ss:$8 sps:$4 sm:$0xff]   ;;  %v4363_v43 = vld [vmem:[#allocation3 + $0x94] ss:$8 sps:$4 sm:$0xff]  }
  0x14   :  { %441 = vmatpush1.bf16.msra.mxu1 %v4295_v7  ;;  %v4345_v29 = vrot.slane %v3605_v17, %v4292_v6  ;;  %357 = vmatprep.subr.bf16.mxu0 %v4354_v41  ;;  %v4367_v44 = vld [vmem:[#allocation3 + $0x90] ss:$8 sps:$4 sm:$0xff]   ;;  %v4371_v45 = vld [vmem:[#allocation3 + $0x84] ss:$8 sps:$4 sm:$0xff]   ;;  %v4375_v46 = vld [vmem:[#allocation3 + $0x80] ss:$8 sps:$4 sm:$0xff]   ;;  %v72_v59 = vrot.slane %v4303_v9, %v4321_v14 }
  0x15   :  { %442 = vmatprep.subr.bf16.mxu1 %v4298_v8  ;;  %67 = vbcast.lane.b32.xlu0 %v65_v12, 256  ;;  %v4379_v47 = vld [vmem:[#allocation3 + $0x74] ss:$8 sps:$4 sm:$0xff]   ;;  %v4383_v48 = vld [vmem:[#allocation3 + $0x70] ss:$8 sps:$4 sm:$0xff]  }
  0x16   :  { %v4387_v49 = vld [vmem:[#allocation3 + $0x64] ss:$8 sps:$4 sm:$0xff]   ;;  %v4392_v50 = vld [vmem:[#allocation3 + $0x60] ss:$8 sps:$4 sm:$0xff]   ;;  %v4396_v51 = vld [vmem:[#allocation3 + $0x54] ss:$8 sps:$4 sm:$0xff]  }
  0x17   :  { %358 = vmatpush1.bf16.msra.mxu0 %v4359_v42  ;;  %v4399_v52 = vld [vmem:[#allocation3 + $0x50] ss:$8 sps:$4 sm:$0xff]   ;;  %v4402_v53 = vld [vmem:[#allocation3 + $0x44] ss:$8 sps:$4 sm:$0xff]   ;;  %v4408_v57 = vld [vmem:[#allocation3 + $0x40] ss:$8 sps:$4 sm:$0xff]  }
  0x18   :  { %443 = vmatpush1.bf16.msra.mxu1 %v4305_v10  ;;  %359 = vmatprep.subr.bf16.mxu0 %v4363_v43 }
  0x19   :  { %444 = vmatprep.subr.bf16.mxu1 %v4307_v11 }
  0x1b   :  { %360 = vmatpush1.bf16.msra.mxu0 %v4367_v44 }
  0x1c   :  { %445 = vmatpush1.bf16.msra.mxu1 %v4313_v13  ;;  %361 = vmatprep.subr.bf16.mxu0 %v4371_v45 }
  0x1d   :  { %632 = vmatprep.subr.bf16.mxu1 %v4350_v39 }
  0x1f   :  { %463 = vmatmul.mubr.bf16.vlgmr.msra.gmra.mxu1 %v4255_v0  ;;  %362 = vmatpush1.bf16.msra.mxu0 %v4375_v46 }
  0x20   :  { %656 = vmatprep.mubr.bf16.mxu1 %v4255_v0  ;;  %633 = vmatpush1.bf16.msra.mxu1 %v4352_v40 }
  0x21   :  { %634 = vmatprep.subr.bf16.mxu1 %v4354_v41  ;;  %555 = vmatprep.subr.bf16.mxu0 %v4379_v47 }
  0x22   :  { %380 = vmatmul.mubr.bf16.vlgmr.msra.gmra.mxu0 %v4255_v0 }
  0x23   :  { %556 = vmatpush1.bf16.msra.mxu0 %v4383_v48  ;;  %579 = vmatprep.mubr.bf16.mxu0 %v4255_v0 }
  0x24   :  { %635 = vmatpush1.bf16.msra.mxu1 %v4359_v42  ;;  %557 = vmatprep.subr.bf16.mxu0 %v4387_v49 }
  0x25   :  { %636 = vmatprep.subr.bf16.mxu1 %v4363_v43 }
  0x27   :  { %558 = vmatpush1.bf16.msra.mxu0 %v4392_v50 }
  0x28   :  { %637 = vmatpush1.bf16.msra.mxu1 %v4367_v44  ;;  %559 = vmatprep.subr.bf16.mxu0 %v4396_v51 }
  0x29   :  { %638 = vmatprep.subr.bf16.mxu1 %v4371_v45 }
  0x2b   :  { %560 = vmatpush1.bf16.msra.mxu0 %v4399_v52 }
  0x2c   :  { %639 = vmatpush1.bf16.msra.mxu1 %v4375_v46  ;;  %561 = vmatprep.subr.bf16.mxu0 %v4402_v53 }
  0x2d   :  { %753 = vmatprep.subr.bf16.mxu1 %v4379_v47 }
  0x2f   :  { %562 = vmatpush1.bf16.msra.mxu0 %v4408_v57 }
  0x30   :  { %676 = vmatprep.subr.bf16.mxu0 %v4284_v3 }
  0x87   :  { %v68_v18 = vpop.permute.xlu0 %67 }
  0x88   :  { %v186_v20 = vmul.f32 %v4327_v16, %v68_v18  ;;  %v185_v30 = vmul.f32 %v4342_v28, %v68_v18 }
  0x8a   :  { %v229_v21 = vadd.f32 %v4333_v19, %v186_v20  ;;  %v228_v31 = vadd.f32 %v4345_v29, %v185_v30 }
  0xdf   :  { %v464_v22 = vpop.f32.mrf.mxu1 }
  0xe0   :  { %v471_v32 = vadd.f32 %v464_v22, %v228_v31  ;;  %v3604_v22 = vld [vmem:[%s5322_s2 + $0x2] ss:$8 sm:$0x3] }
  0xe1   :  { %v466_v23 = vpop.f32.mrf.mxu1 }
  0xe2   :  { %v4337_v24 = vadd.f32 %v466_v23, %v229_v21  ;;  %v3622_v33 = vmul.f32 -1.442695, %v471_v32  ;;  %v381_v61 = vpop.f32.mrf.mxu0  ;;  %v4441_v23 = vrot.slane %v3604_v22, %v4292_v6 }
  0xe3   :  { %v468_v25 = vpop.f32.mrf.mxu1 }
  0xe4   :  { %3781 = vtanh.f32 %v4337_v24  ;;  %v3623_v60 = vmul.f32 -1.442695, %v4337_v24  ;;  %v383_v62 = vpop.f32.mrf.mxu0  ;;  %v4444_v24 = vrot.slane %v3604_v22, %v4321_v14  ;;  %v382_v25 = vadd.f32 %v381_v61, %v4441_v23 }
  0xe5   :  { %v469_v26 = vpop.f32.mrf.mxu1  ;;  %3783 = vpow2.f32 %v3622_v33 }
  0xe6   :  { %v385_v63 = vpop.f32.mrf.mxu0 }
  0xe8   :  { %v386_v1 = vpop.f32.mrf.mxu0 }
  0xf1   :  { %v3782_v27 = vpop.eup %3781 }
  0xf2   :  { %488 = vrot.lane.b32.xlu0 %v3782_v27, %s4256_s24  ;;  %v3784_v34 = vpop.eup %3783  ;;  %v384_v27 = vadd.f32 %v383_v62, %v4444_v24 }
  0xf3   :  { %v479_v35 = vadd.f32 1.0, %v3784_v34 }
  0xf5   :  { %3785 = vrcp.f32 %v479_v35 }
  0xf6   :  { %74 = vbcast.lane.b32.xlu0 %v72_v59, 256 }
 0x102   :  { %v3786_v36 = vpop.eup %3785 }
 0x103   :  { %v486_v54 = vmul.f32 0.0, %v3786_v36 }
 0x164   :  { %v489_v37 = vpop.permute.xlu0 %488 }
 0x165   :  { %v491_v38 = vmul.f32 %v3786_v36, %v489_v37 }
 0x167   :  { %493 = vrot.lane.b32.xlu1 %v491_v38, %s4256_s24 }
 0x168   :  { %v75_v35 = vpop.permute.xlu0 %74 }
 0x169   :  { %v188_v36 = vmul.f32 %v4327_v16, %v75_v35  ;;  %v187_v63 = vmul.f32 %v4342_v28, %v75_v35 }
 0x16b   :  { %v231_v38 = vadd.f32 %v4333_v19, %v188_v36  ;;  %v230_v1 = vadd.f32 %v4345_v29, %v187_v63 }
 0x1d9   :  { %v494_v55 = vpop.permute.xlu1 %493 }
 0x1da   :  { %v4406_v56 = vadd.f32 %v494_v55, %v486_v54 }
 0x1dc   :  { %3787 = vtanh.f32 %v4406_v56 }
 0x1dd   :  { %3789 = vpow2.f32 %v3623_v60 }
 0x1e9   :  { %v3788_v58 = vpop.eup %3787 }
 0x1ea   :  { %499 = vrot.lane.b32.xlu1 %v3788_v58, %s4256_s24  ;;  %v3790_v12 = vpop.eup %3789 }
 0x1eb   :  { %v480_v15 = vadd.f32 1.0, %v3790_v12 }
 0x1ed   :  { %3791 = vrcp.f32 %v480_v15 }
 0x1fa   :  { %v3792_v17 = vpop.eup %3791 }
 0x25c   :  { %v500_v18 = vpop.permute.xlu1 %499 }
 0x25d   :  { %v502_v20 = vmul.f32 %v3792_v17, %v500_v18 }
 0x25f   :  { %v503_v21 = vpack.c.bf16 %v502_v20, %v502_v20 }
 0x261   :  { %3632 = vmatmul.mubr.msk.bf16.vlgmr.msra.gmra.mxu0 %vm343_vm0, %v503_v21 }
 0x262   :  { %677 = vmatpush1.bf16.msra.mxu0 %v4286_v4  ;;  %700 = vmatprep.mubr.bf16.mxu0 %v4255_v0 }
 0x263   :  { %678 = vmatprep.subr.bf16.mxu0 %v4289_v5 }
 0x266   :  { %679 = vmatpush1.bf16.msra.mxu0 %v4295_v7 }
 0x267   :  { %680 = vmatprep.subr.bf16.mxu0 %v4298_v8 }
 0x26a   :  { %681 = vmatpush1.bf16.msra.mxu0 %v4305_v10 }
 0x26b   :  { %682 = vmatprep.subr.bf16.mxu0 %v4307_v11 }
 0x26e   :  { %683 = vmatpush1.bf16.msra.mxu0 %v4313_v13 }
 0x26f   :  { %830 = vmatprep.subr.bf16.mxu0 %v4350_v39 }
 0x271   :  { %3636 = vmatmul.mubr.msk.bf16.vlgmr.msra.gmra.mxu0 %vm343_vm0, %v503_v21 }
 0x272   :  { %831 = vmatpush1.bf16.msra.mxu0 %v4352_v40  ;;  %854 = vmatprep.mubr.bf16.mxu0 %v4255_v0 }
 0x273   :  { %832 = vmatprep.subr.bf16.mxu0 %v4354_v41 }
 0x276   :  { %833 = vmatpush1.bf16.msra.mxu0 %v4359_v42 }
 0x277   :  { %834 = vmatprep.subr.bf16.mxu0 %v4363_v43 }
 0x27a   :  { %835 = vmatpush1.bf16.msra.mxu0 %v4367_v44 }
 0x27b   :  { %836 = vmatprep.subr.bf16.mxu0 %v4371_v45 }
 0x27e   :  { %837 = vmatpush1.bf16.msra.mxu0 %v4375_v46 }
 0x27f   :  { %951 = vmatprep.subr.bf16.mxu0 %v4379_v47 }
 0x321   :  { %v581_v26 = vpop.f32.mrf.mxu0 }
 0x322   :  { %v588_v30 = vadd.f32 %v581_v26, %v382_v25 }
 0x323   :  { %v583_v31 = vpop.f32.mrf.mxu0 }
 0x324   :  { %v589_v32 = vadd.f32 %v583_v31, %v384_v27  ;;  %v3633_v62 = vmul.f32 -1.442695, %v588_v30 }
 0x325   :  { %v585_v33 = vpop.f32.mrf.mxu0 }
 0x326   :  { %3793 = vtanh.f32 %v589_v32 }
 0x327   :  { %v586_v34 = vpop.f32.mrf.mxu0 }
 0x331   :  { %v702_v37 = vpop.f32.mrf.mxu0 }
 0x332   :  { %v709_v12 = vadd.f32 %v702_v37, %v230_v1 }
 0x333   :  { %v704_v54 = vpop.f32.mrf.mxu0  ;;  %v3794_v55 = vpop.eup %3793 }
 0x334   :  { %605 = vrot.lane.b32.xlu1 %v3794_v55, %s4256_s24  ;;  %v710_v59 = vadd.f32 %v704_v54, %v231_v38  ;;  %v3637_v17 = vmul.f32 -1.442695, %v709_v12 }
 0x335   :  { %v706_v58 = vpop.f32.mrf.mxu0 }
 0x336   :  { %3795 = vtanh.f32 %v710_v59  ;;  %v78_v58 = vsub.s32 2, %v4282_v2  ;;  %v3638_v63 = vmul.f32 -1.442695, %v710_v59 }
 0x337   :  { %v707_v60 = vpop.f32.mrf.mxu0  ;;  %3797 = vpow2.f32 %v3633_v62 }
 0x338   :  { %3799 = vpow2.f32 %v3637_v17  ;;  %v79_v60 = vrot.slane %v4303_v9, %v78_v58 }
 0x343   :  { %v3796_v61 = vpop.eup %3795 }
 0x344   :  { %726 = vrot.lane.b32.xlu0 %v3796_v61, %s4256_s24  ;;  %v3798_v15 = vpop.eup %3797  ;;  %v3634_v61 = vmul.f32 -1.442695, %v589_v32 }
 0x345   :  { %v596_v18 = vadd.f32 1.0, %v3798_v15  ;;  %v3800_v20 = vpop.eup %3799 }
 0x346   :  { %v717_v26 = vadd.f32 1.0, %v3800_v20 }
 0x347   :  { %3801 = vrcp.f32 %v596_v18 }
 0x348   :  { %3803 = vrcp.f32 %v717_v26 }
 0x354   :  { %v3802_v21 = vpop.eup %3801 }
 0x355   :  { %v3804_v27 = vpop.eup %3803  ;;  %v603_v33 = vmul.f32 0.0, %v3802_v21 }
 0x356   :  { %v724_v37 = vmul.f32 %v3804_v27, %v4406_v56 }
 0x3a6   :  { %v606_v22 = vpop.permute.xlu1 %605 }
 0x3a7   :  { %v608_v25 = vmul.f32 %v3802_v21, %v606_v22 }
 0x3a9   :  { %610 = vrot.lane.b32.xlu1 %v608_v25, %s4256_s24 }
 0x3b6   :  { %v727_v30 = vpop.permute.xlu0 %726 }
 0x3b7   :  { %v729_v31 = vmul.f32 %v3804_v27, %v727_v30 }
 0x3b9   :  { %731 = vrot.lane.b32.xlu0 %v729_v31, %s4256_s24 }
 0x41b   :  { %v611_v34 = vpop.permute.xlu1 %610 }
 0x41c   :  { %v4456_v35 = vadd.f32 %v611_v34, %v603_v33 }
 0x41e   :  { %3805 = vtanh.f32 %v4456_v35 }
 0x42b   :  { %v3806_v36 = vpop.eup %3805  ;;  %v732_v38 = vpop.permute.xlu0 %731 }
 0x42c   :  { %616 = vrot.lane.b32.xlu1 %v3806_v36, %s4256_s24  ;;  %v4461_v54 = vadd.f32 %v732_v38, %v724_v37 }
 0x42e   :  { %3807 = vtanh.f32 %v4461_v54 }
 0x42f   :  { %3809 = vpow2.f32 %v3634_v61 }
 0x430   :  { %81 = vbcast.lane.b32.xlu1 %v79_v60, 256  ;;  %3811 = vpow2.f32 %v3638_v63 }
 0x43b   :  { %v3808_v55 = vpop.eup %3807 }
 0x43c   :  { %737 = vrot.lane.b32.xlu0 %v3808_v55, %s4256_s24  ;;  %v3810_v62 = vpop.eup %3809 }
 0x43d   :  { %v597_v56 = vadd.f32 1.0, %v3810_v62  ;;  %v3812_v1 = vpop.eup %3811 }
 0x43e   :  { %v718_v18 = vadd.f32 1.0, %v3812_v1 }
 0x43f   :  { %3813 = vrcp.f32 %v597_v56 }
 0x440   :  { %3815 = vrcp.f32 %v718_v18 }
 0x44c   :  { %v3814_v12 = vpop.eup %3813 }
 0x44d   :  { %v3816_v32 = vpop.eup %3815 }
 0x49e   :  { %v617_v15 = vpop.permute.xlu1 %616 }
 0x49f   :  { %v619_v17 = vmul.f32 %v3814_v12, %v617_v15 }
 0x4a1   :  { %v620_v20 = vpack.c.bf16 %v619_v17, %v619_v17 }
 0x4a2   :  { %v82_v61 = vpop.permute.xlu1 %81 }
 0x4a3   :  { %3635 = vmatmul.mubr.msk.bf16.vlgmr.msra.gmra.mxu1 %vm343_vm0, %v620_v20  ;;  %v190_v62 = vmul.f32 %v4327_v16, %v82_v61 }
 0x4a4   :  { %754 = vmatpush1.bf16.msra.mxu1 %v4383_v48  ;;  %777 = vmatprep.mubr.bf16.mxu1 %v4255_v0 }
 0x4a5   :  { %755 = vmatprep.subr.bf16.mxu1 %v4387_v49  ;;  %v233_v56 = vadd.f32 %v4333_v19, %v190_v62 }
 0x4a8   :  { %756 = vmatpush1.bf16.msra.mxu1 %v4392_v50 }
 0x4a9   :  { %757 = vmatprep.subr.bf16.mxu1 %v4396_v51 }
 0x4ac   :  { %758 = vmatpush1.bf16.msra.mxu1 %v4399_v52 }
 0x4ad   :  { %759 = vmatprep.subr.bf16.mxu1 %v4402_v53 }
 0x4ae   :  { %v738_v59 = vpop.permute.xlu0 %737 }
 0x4af   :  { %v740_v21 = vmul.f32 %v3816_v32, %v738_v59  ;;  %v189_v59 = vmul.f32 %v4342_v28, %v82_v61 }
 0x4b0   :  { %760 = vmatpush1.bf16.msra.mxu1 %v4408_v57 }
 0x4b1   :  { %874 = vmatprep.subr.bf16.mxu1 %v4284_v3  ;;  %v741_v22 = vpack.c.bf16 %v740_v21, %v740_v21  ;;  %v232_v21 = vadd.f32 %v4345_v29, %v189_v59 }
 0x4b3   :  { %3639 = vmatmul.mubr.msk.bf16.vlgmr.msra.gmra.mxu1 %vm343_vm0, %v741_v22 }
 0x4b4   :  { %875 = vmatpush1.bf16.msra.mxu1 %v4286_v4  ;;  %898 = vmatprep.mubr.bf16.mxu1 %v4255_v0 }
 0x4b5   :  { %876 = vmatprep.subr.bf16.mxu1 %v4289_v5 }
 0x4b8   :  { %877 = vmatpush1.bf16.msra.mxu1 %v4295_v7 }
 0x4b9   :  { %878 = vmatprep.subr.bf16.mxu1 %v4298_v8 }
 0x4bc   :  { %879 = vmatpush1.bf16.msra.mxu1 %v4305_v10 }
 0x4bd   :  { %880 = vmatprep.subr.bf16.mxu1 %v4307_v11 }
 0x4c0   :  { %881 = vmatpush1.bf16.msra.mxu1 %v4313_v13 }
 0x4c1   :  { %1028 = vmatprep.subr.bf16.mxu1 %v4350_v39 }
 0x4c3   :  { %3643 = vmatmul.mubr.msk.bf16.vlgmr.msra.gmra.mxu1 %vm343_vm0, %v741_v22 }
 0x4c4   :  { %1029 = vmatpush1.bf16.msra.mxu1 %v4352_v40  ;;  %1052 = vmatprep.mubr.bf16.mxu1 %v4255_v0 }
 0x4c5   :  { %1030 = vmatprep.subr.bf16.mxu1 %v4354_v41 }
 0x4c8   :  { %1031 = vmatpush1.bf16.msra.mxu1 %v4359_v42 }
 0x4c9   :  { %1032 = vmatprep.subr.bf16.mxu1 %v4363_v43 }
 0x4cc   :  { %1033 = vmatpush1.bf16.msra.mxu1 %v4367_v44 }
 0x4cd   :  { %1034 = vmatprep.subr.bf16.mxu1 %v4371_v45 }
 0x4d0   :  { %1035 = vmatpush1.bf16.msra.mxu1 %v4375_v46 }
 0x4d1   :  { %1149 = vmatprep.subr.bf16.mxu1 %v4379_v47 }
 0x563   :  { %v658_v25 = vpop.f32.mrf.mxu1 }
 0x564   :  { %v659_v31 = vadd.f32 %v658_v25, %v4441_v23 }
 0x565   :  { %v660_v26 = vpop.f32.mrf.mxu1 }
 0x566   :  { %v661_v34 = vadd.f32 %v660_v26, %v4444_v24 }
 0x567   :  { %v662_v27 = vpop.f32.mrf.mxu1 }
 0x569   :  { %v663_v30 = vpop.f32.mrf.mxu1 }
 0x573   :  { %v779_v33 = vpop.f32.mrf.mxu1 }
 0x574   :  { %v786_v36 = vadd.f32 %v779_v33, %v659_v31 }
 0x575   :  { %v781_v37 = vpop.f32.mrf.mxu1 }
 0x576   :  { %v787_v38 = vadd.f32 %v781_v37, %v661_v34  ;;  %v3640_v32 = vmul.f32 -1.442695, %v786_v36 }
 0x577   :  { %v783_v55 = vpop.f32.mrf.mxu1 }
 0x578   :  { %3817 = vtanh.f32 %v787_v38 }
 0x579   :  { %v784_v60 = vpop.f32.mrf.mxu1 }
 0x583   :  { %v900_v63 = vpop.f32.mrf.mxu1 }
 0x584   :  { %v907_v22 = vadd.f32 %v900_v63, %v232_v21 }
 0x585   :  { %v902_v1 = vpop.f32.mrf.mxu1  ;;  %v3818_v12 = vpop.eup %3817 }
 0x586   :  { %803 = vrot.lane.b32.xlu0 %v3818_v12, %s4256_s24  ;;  %v908_v17 = vadd.f32 %v902_v1, %v233_v56  ;;  %v3644_v26 = vmul.f32 -1.442695, %v907_v22 }
 0x587   :  { %v904_v15 = vpop.f32.mrf.mxu1 }
 0x588   :  { %3819 = vtanh.f32 %v908_v17  ;;  %v3645_v21 = vmul.f32 -1.442695, %v908_v17 }
 0x589   :  { %v905_v18 = vpop.f32.mrf.mxu1  ;;  %3821 = vpow2.f32 %v3640_v32  ;;  %v3641_v32 = vmul.f32 -1.442695, %v787_v38 }
 0x58a   :  { %3823 = vpow2.f32 %v3644_v26 }
 0x595   :  { %v3820_v20 = vpop.eup %3819 }
 0x596   :  { %924 = vrot.lane.b32.xlu1 %v3820_v20, %s4256_s24  ;;  %v3822_v25 = vpop.eup %3821 }
 0x597   :  { %v794_v27 = vadd.f32 1.0, %v3822_v25  ;;  %v3824_v30 = vpop.eup %3823 }
 0x598   :  { %v915_v37 = vadd.f32 1.0, %v3824_v30 }
 0x599   :  { %3825 = vrcp.f32 %v794_v27 }
 0x59a   :  { %3827 = vrcp.f32 %v915_v37 }
 0x5a6   :  { %v3826_v31 = vpop.eup %3825 }
 0x5a7   :  { %v3828_v36 = vpop.eup %3827  ;;  %v801_v61 = vmul.f32 %v3826_v31, %v4456_v35  ;;  %v85_v35 = vsub.s32 3, %v4282_v2 }
 0x5a8   :  { %v922_v1 = vmul.f32 %v3828_v36, %v4461_v54 }
 0x5a9   :  { %v86_v20 = vrot.slane %v4303_v9, %v85_v35 }
 0x5f8   :  { %v804_v33 = vpop.permute.xlu0 %803 }
 0x5f9   :  { %v806_v34 = vmul.f32 %v3826_v31, %v804_v33 }
 0x5fb   :  { %808 = vrot.lane.b32.xlu0 %v806_v34, %s4256_s24 }
 0x608   :  { %v925_v55 = vpop.permute.xlu1 %924 }
 0x609   :  { %v927_v60 = vmul.f32 %v3828_v36, %v925_v55 }
 0x60b   :  { %929 = vrot.lane.b32.xlu1 %v927_v60, %s4256_s24 }
 0x66d   :  { %v809_v62 = vpop.permute.xlu0 %808 }
 0x66e   :  { %v4510_v63 = vadd.f32 %v809_v62, %v801_v61 }
 0x670   :  { %3829 = vtanh.f32 %v4510_v63 }
 0x67d   :  { %v3830_v56 = vpop.eup %3829  ;;  %v930_v12 = vpop.permute.xlu1 %929 }
 0x67e   :  { %814 = vrot.lane.b32.xlu0 %v3830_v56, %s4256_s24  ;;  %v4515_v15 = vadd.f32 %v930_v12, %v922_v1 }
 0x680   :  { %3831 = vtanh.f32 %v4515_v15 }
 0x681   :  { %3833 = vpow2.f32 %v3641_v32 }
 0x682   :  { %88 = vbcast.lane.b32.xlu0 %v86_v20, 256  ;;  %3835 = vpow2.f32 %v3645_v21 }
 0x68d   :  { %v3832_v18 = vpop.eup %3831 }
 0x68e   :  { %935 = vrot.lane.b32.xlu1 %v3832_v18, %s4256_s24  ;;  %v3834_v59 = vpop.eup %3833 }
 0x68f   :  { %v795_v54 = vadd.f32 1.0, %v3834_v59  ;;  %v3836_v22 = vpop.eup %3835 }
 0x690   :  { %v916_v30 = vadd.f32 1.0, %v3836_v22 }
 0x691   :  { %3837 = vrcp.f32 %v795_v54 }
 0x692   :  { %3839 = vrcp.f32 %v916_v30 }
 0x69e   :  { %v3838_v25 = vpop.eup %3837 }
 0x69f   :  { %v3840_v38 = vpop.eup %3839 }
 0x6f0   :  { %v815_v26 = vpop.permute.xlu0 %814 }
 0x6f1   :  { %v817_v27 = vmul.f32 %v3838_v25, %v815_v26 }
 0x6f3   :  { %v818_v31 = vpack.c.bf16 %v817_v27, %v817_v27 }
 0x6f4   :  { %v89_v59 = vpop.permute.xlu0 %88 }
 0x6f5   :  { %3642 = vmatmul.mubr.msk.bf16.vlgmr.msra.gmra.mxu0 %vm343_vm0, %v818_v31  ;;  %v192_v21 = vmul.f32 %v4327_v16, %v89_v59 }
 0x6f6   :  { %952 = vmatpush1.bf16.msra.mxu0 %v4383_v48  ;;  %975 = vmatprep.mubr.bf16.mxu0 %v4255_v0 }
 0x6f7   :  { %953 = vmatprep.subr.bf16.mxu0 %v4387_v49  ;;  %v235_v22 = vadd.f32 %v4333_v19, %v192_v21 }
 0x6fa   :  { %954 = vmatpush1.bf16.msra.mxu0 %v4392_v50 }
 0x6fb   :  { %955 = vmatprep.subr.bf16.mxu0 %v4396_v51 }
 0x6fe   :  { %956 = vmatpush1.bf16.msra.mxu0 %v4399_v52 }
 0x6ff   :  { %957 = vmatprep.subr.bf16.mxu0 %v4402_v53 }
 0x700   :  { %v936_v17 = vpop.permute.xlu1 %935 }
 0x701   :  { %v938_v33 = vmul.f32 %v3840_v38, %v936_v17 }
 0x702   :  { %958 = vmatpush1.bf16.msra.mxu0 %v4408_v57 }
 0x703   :  { %1072 = vmatprep.subr.bf16.mxu0 %v4284_v3  ;;  %v939_v34 = vpack.c.bf16 %v938_v33, %v938_v33  ;;  %v191_v33 = vmul.f32 %v4342_v28, %v89_v59 }
 0x705   :  { %3646 = vmatmul.mubr.msk.bf16.vlgmr.msra.gmra.mxu0 %vm343_vm0, %v939_v34 }
 0x706   :  { %1073 = vmatpush1.bf16.msra.mxu0 %v4286_v4  ;;  %1096 = vmatprep.mubr.bf16.mxu0 %v4255_v0 }
 0x707   :  { %1074 = vmatprep.subr.bf16.mxu0 %v4289_v5 }
 0x70a   :  { %1075 = vmatpush1.bf16.msra.mxu0 %v4295_v7 }
 0x70b   :  { %1076 = vmatprep.subr.bf16.mxu0 %v4298_v8 }
 0x70e   :  { %1077 = vmatpush1.bf16.msra.mxu0 %v4305_v10 }
 0x70f   :  { %1078 = vmatprep.subr.bf16.mxu0 %v4307_v11 }
 0x712   :  { %1079 = vmatpush1.bf16.msra.mxu0 %v4313_v13 }
 0x713   :  { %1226 = vmatprep.subr.bf16.mxu0 %v4350_v39 }
 0x715   :  { %3650 = vmatmul.mubr.msk.bf16.vlgmr.msra.gmra.mxu0 %vm343_vm0, %v939_v34  ;;  %v234_v34 = vadd.f32 %v4345_v29, %v191_v33 }
 0x716   :  { %1227 = vmatpush1.bf16.msra.mxu0 %v4352_v40  ;;  %1250 = vmatprep.mubr.bf16.mxu0 %v4255_v0 }
 0x717   :  { %1228 = vmatprep.subr.bf16.mxu0 %v4354_v41 }
 0x71a   :  { %1229 = vmatpush1.bf16.msra.mxu0 %v4359_v42 }
 0x71b   :  { %1230 = vmatprep.subr.bf16.mxu0 %v4363_v43 }
 0x71e   :  { %1231 = vmatpush1.bf16.msra.mxu0 %v4367_v44 }
 0x71f   :  { %1232 = vmatprep.subr.bf16.mxu0 %v4371_v45 }
 0x722   :  { %1233 = vmatpush1.bf16.msra.mxu0 %v4375_v46 }
 0x723   :  { %1347 = vmatprep.subr.bf16.mxu0 %v4379_v47 }
 0x7b5   :  { %v856_v37 = vpop.f32.mrf.mxu0 }
 0x7b6   :  { %v857_v61 = vadd.f32 %v856_v37, %v4441_v23 }
 0x7b7   :  { %v858_v36 = vpop.f32.mrf.mxu0 }
 0x7b8   :  { %v859_v56 = vadd.f32 %v858_v36, %v4444_v24 }
 0x7b9   :  { %v860_v55 = vpop.f32.mrf.mxu0 }
 0x7bb   :  { %v861_v60 = vpop.f32.mrf.mxu0 }
 0x7c5   :  { %v977_v62 = vpop.f32.mrf.mxu0 }
 0x7c6   :  { %v984_v1 = vadd.f32 %v977_v62, %v857_v61 }
 0x7c7   :  { %v979_v12 = vpop.f32.mrf.mxu0 }
 0x7c8   :  { %v985_v18 = vadd.f32 %v979_v12, %v859_v56  ;;  %v3647_v17 = vmul.f32 -1.442695, %v984_v1 }
 0x7c9   :  { %v981_v20 = vpop.f32.mrf.mxu0 }
 0x7ca   :  { %3841 = vtanh.f32 %v985_v18  ;;  %v3648_v33 = vmul.f32 -1.442695, %v985_v18 }
 0x7cb   :  { %v982_v32 = vpop.f32.mrf.mxu0 }
 0x7d5   :  { %v1098_v54 = vpop.f32.mrf.mxu0 }
 0x7d6   :  { %v1105_v37 = vadd.f32 %v1098_v54, %v234_v34 }
 0x7d7   :  { %v1100_v25 = vpop.f32.mrf.mxu0  ;;  %v3842_v26 = vpop.eup %3841 }
 0x7d8   :  { %1001 = vrot.lane.b32.xlu1 %v3842_v26, %s4256_s24  ;;  %v1106_v30 = vadd.f32 %v1100_v25, %v235_v22  ;;  %v3651_v55 = vmul.f32 -1.442695, %v1105_v37 }
 0x7d9   :  { %v1102_v27 = vpop.f32.mrf.mxu0 }
 0x7da   :  { %3843 = vtanh.f32 %v1106_v30  ;;  %v3652_v37 = vmul.f32 -1.442695, %v1106_v30 }
 0x7db   :  { %v1103_v31 = vpop.f32.mrf.mxu0  ;;  %3845 = vpow2.f32 %v3647_v17 }
 0x7dc   :  { %3847 = vpow2.f32 %v3651_v55 }
 0x7e7   :  { %v3844_v38 = vpop.eup %3843 }
 0x7e8   :  { %1122 = vrot.lane.b32.xlu0 %v3844_v38, %s4256_s24  ;;  %v3846_v36 = vpop.eup %3845 }
 0x7e9   :  { %v992_v60 = vadd.f32 1.0, %v3846_v36  ;;  %v3848_v61 = vpop.eup %3847 }
 0x7ea   :  { %v1113_v20 = vadd.f32 1.0, %v3848_v61 }
 0x7eb   :  { %3849 = vrcp.f32 %v992_v60 }
 0x7ec   :  { %3851 = vrcp.f32 %v1113_v20 }
 0x7f8   :  { %v3850_v62 = vpop.eup %3849 }
 0x7f9   :  { %v3852_v1 = vpop.eup %3851  ;;  %v999_v59 = vmul.f32 %v3850_v62, %v4510_v63  ;;  %v92_v63 = vsub.s32 4, %v4282_v2 }
 0x7fa   :  { %v1120_v26 = vmul.f32 %v3852_v1, %v4515_v15 }
 0x7fb   :  { %v93_v17 = vrot.slane %v4303_v9, %v92_v63 }
 0x84a   :  { %v1002_v56 = vpop.permute.xlu1 %1001 }
 0x84b   :  { %v1004_v12 = vmul.f32 %v3850_v62, %v1002_v56 }
 0x84d   :  { %1006 = vrot.lane.b32.xlu1 %v1004_v12, %s4256_s24 }
 0x85a   :  { %v1123_v32 = vpop.permute.xlu0 %1122 }
 0x85b   :  { %v1125_v21 = vmul.f32 %v3852_v1, %v1123_v32 }
 0x85d   :  { %1127 = vrot.lane.b32.xlu0 %v1125_v21, %s4256_s24 }
 0x8bf   :  { %v1007_v54 = vpop.permute.xlu1 %1006 }
 0x8c0   :  { %v4564_v22 = vadd.f32 %v1007_v54, %v999_v59 }
 0x8c2   :  { %3853 = vtanh.f32 %v4564_v22 }
 0x8cf   :  { %v3854_v25 = vpop.eup %3853  ;;  %v1128_v27 = vpop.permute.xlu0 %1127 }
 0x8d0   :  { %1012 = vrot.lane.b32.xlu1 %v3854_v25, %s4256_s24  ;;  %v4569_v31 = vadd.f32 %v1128_v27, %v1120_v26 }
 0x8d2   :  { %3855 = vtanh.f32 %v4569_v31 }
 0x8d3   :  { %3857 = vpow2.f32 %v3648_v33 }
 0x8d4   :  { %95 = vbcast.lane.b32.xlu1 %v93_v17, 256  ;;  %3859 = vpow2.f32 %v3652_v37 }
 0x8df   :  { %v3856_v38 = vpop.eup %3855 }
 0x8e0   :  { %1133 = vrot.lane.b32.xlu0 %v3856_v38, %s4256_s24  ;;  %v3858_v34 = vpop.eup %3857 }
 0x8e1   :  { %v993_v15 = vadd.f32 1.0, %v3858_v34  ;;  %v3860_v36 = vpop.eup %3859 }
 0x8e2   :  { %v1114_v62 = vadd.f32 1.0, %v3860_v36 }
 0x8e3   :  { %3861 = vrcp.f32 %v993_v15 }
 0x8e4   :  { %3863 = vrcp.f32 %v1114_v62 }
 0x8f0   :  { %v3862_v55 = vpop.eup %3861 }
 0x8f1   :  { %v3864_v9 = vpop.eup %3863 }
 0x942   :  { %v1013_v60 = vpop.permute.xlu1 %1012 }
 0x943   :  { %v1015_v61 = vmul.f32 %v3862_v55, %v1013_v60 }
 0x945   :  { %v1016_v56 = vpack.c.bf16 %v1015_v61, %v1015_v61 }
 0x946   :  { %v96_v20 = vpop.permute.xlu1 %95 }
 0x947   :  { %3649 = vmatmul.mubr.msk.bf16.vlgmr.msra.gmra.mxu1 %vm343_vm0, %v1016_v56  ;;  %v194_v1 = vmul.f32 %v4327_v16, %v96_v20  ;;  %v193_v33 = vmul.f32 %v4342_v28, %v96_v20 }
 0x948   :  { %1150 = vmatpush1.bf16.msra.mxu1 %v4383_v48  ;;  %1173 = vmatprep.mubr.bf16.mxu1 %v4255_v0 }
 0x949   :  { %1151 = vmatprep.subr.bf16.mxu1 %v4387_v49  ;;  %v237_v21 = vadd.f32 %v4333_v19, %v194_v1  ;;  %v236_v34 = vadd.f32 %v4345_v29, %v193_v33  ;;  %v4668_v33 = vld [vmem:[#allocation3] ss:$8 sps:$4 sm:$0xff]  }
 0x94c   :  { %1152 = vmatpush1.bf16.msra.mxu1 %v4392_v50 }
 0x94d   :  { %1153 = vmatprep.subr.bf16.mxu1 %v4396_v51 }
 0x950   :  { %1154 = vmatpush1.bf16.msra.mxu1 %v4399_v52 }
 0x951   :  { %1155 = vmatprep.subr.bf16.mxu1 %v4402_v53 }
 0x952   :  { %v1134_v18 = vpop.permute.xlu0 %1133 }
 0x953   :  { %v1136_v30 = vmul.f32 %v3864_v9, %v1134_v18 }
 0x954   :  { %1156 = vmatpush1.bf16.msra.mxu1 %v4408_v57 }
 0x955   :  { %1270 = vmatprep.subr.bf16.mxu1 %v4284_v3  ;;  %v1137_v12 = vpack.c.bf16 %v1136_v30, %v1136_v30 }
 0x957   :  { %3653 = vmatmul.mubr.msk.bf16.vlgmr.msra.gmra.mxu1 %vm343_vm0, %v1137_v12 }
 0x958   :  { %1271 = vmatpush1.bf16.msra.mxu1 %v4286_v4  ;;  %1294 = vmatprep.mubr.bf16.mxu1 %v4255_v0 }
 0x959   :  { %1272 = vmatprep.subr.bf16.mxu1 %v4289_v5 }
 0x95c   :  { %1273 = vmatpush1.bf16.msra.mxu1 %v4295_v7 }
 0x95d   :  { %1274 = vmatprep.subr.bf16.mxu1 %v4298_v8 }
 0x960   :  { %1275 = vmatpush1.bf16.msra.mxu1 %v4305_v10 }
 0x961   :  { %1276 = vmatprep.subr.bf16.mxu1 %v4307_v11 }
 0x964   :  { %1277 = vmatpush1.bf16.msra.mxu1 %v4313_v13 }
 0x965   :  { %1424 = vmatprep.subr.bf16.mxu1 %v4350_v39 }
 0x967   :  { %3657 = vmatmul.mubr.msk.bf16.vlgmr.msra.gmra.mxu1 %vm343_vm0, %v1137_v12 }
 0x968   :  { %1425 = vmatpush1.bf16.msra.mxu1 %v4352_v40  ;;  %1448 = vmatprep.mubr.bf16.mxu1 %v4255_v0 }
 0x969   :  { %1426 = vmatprep.subr.bf16.mxu1 %v4354_v41 }
 0x96c   :  { %1427 = vmatpush1.bf16.msra.mxu1 %v4359_v42 }
 0x96d   :  { %1428 = vmatprep.subr.bf16.mxu1 %v4363_v43 }
 0x970   :  { %1429 = vmatpush1.bf16.msra.mxu1 %v4367_v44 }
 0x971   :  { %1430 = vmatprep.subr.bf16.mxu1 %v4371_v45 }
 0x974   :  { %1431 = vmatpush1.bf16.msra.mxu1 %v4375_v46 }
 0x975   :  { %1545 = vmatprep.subr.bf16.mxu1 %v4379_v47 }
 0xa07   :  { %v1054_v3 = vpop.f32.mrf.mxu1 }
 0xa08   :  { %v1055_v8 = vadd.f32 %v1054_v3, %v4441_v23 }
 0xa09   :  { %v1056_v4 = vpop.f32.mrf.mxu1 }
 0xa0a   :  { %v1057_v11 = vadd.f32 %v1056_v4, %v4444_v24 }
 0xa0b   :  { %v1058_v5 = vpop.f32.mrf.mxu1 }
 0xa0d   :  { %v1059_v7 = vpop.f32.mrf.mxu1 }
 0xa17   :  { %v1175_v10 = vpop.f32.mrf.mxu1 }
 0xa18   :  { %v1182_v13 = vadd.f32 %v1175_v10, %v1055_v8 }
 0xa19   :  { %v1177_v39 = vpop.f32.mrf.mxu1 }
 0xa1a   :  { %v1183_v40 = vadd.f32 %v1177_v39, %v1057_v11  ;;  %v3654_v17 = vmul.f32 -1.442695, %v1182_v13  ;;  %v4631_v39 = vld [vmem:[%s5320_s0] sm:$0xff] }
 0xa1b   :  { %v1179_v41 = vpop.f32.mrf.mxu1 }
 0xa1c   :  { %3865 = vtanh.f32 %v1183_v40 }
 0xa1d   :  { %v1180_v42 = vpop.f32.mrf.mxu1 }
 0xa27   :  { %v1296_v32 = vpop.f32.mrf.mxu1 }
 0xa28   :  { %v1303_v37 = vadd.f32 %v1296_v32, %v236_v34  ;;  %v4671_v34 = vld [vmem:[#allocation3 + $0xb4] ss:$8 sps:$4 sm:$0xff]  }
 0xa29   :  { %v1298_v59 = vpop.f32.mrf.mxu1  ;;  %v3866_v54 = vpop.eup %3865 }
 0xa2a   :  { %1199 = vrot.lane.b32.xlu0 %v3866_v54, %s4256_s24  ;;  %v1304_v26 = vadd.f32 %v1298_v59, %v237_v21  ;;  %v3658_v36 = vmul.f32 -1.442695, %v1303_v37  ;;  %v4675_v37 = vld [vmem:[#allocation3 + $0xb0] ss:$8 sps:$4 sm:$0xff]  }
 0xa2b   :  { %v1300_v25 = vpop.f32.mrf.mxu1 }
 0xa2c   :  { %3867 = vtanh.f32 %v1304_v26  ;;  %v3659_v20 = vmul.f32 -1.442695, %v1304_v26 }
 0xa2d   :  { %v1301_v27 = vpop.f32.mrf.mxu1  ;;  %3869 = vpow2.f32 %v3654_v17 }
 0xa2e   :  { %3871 = vpow2.f32 %v3658_v36  ;;  %v4682_v36 = vld [vmem:[#allocation3 + $0xa0] ss:$8 sps:$4 sm:$0xff]  }
 0xa39   :  { %v3868_v38 = vpop.eup %3867 }
 0xa3a   :  { %1320 = vrot.lane.b32.xlu1 %v3868_v38, %s4256_s24  ;;  %v3870_v15 = vpop.eup %3869  ;;  %v4645_v38 = vld [vmem:[#allocation3 + $0x34] ss:$8 sps:$4 sm:$0xff]  }
 0xa3b   :  { %v1190_v55 = vadd.f32 1.0, %v3870_v15  ;;  %v3872_v60 = vpop.eup %3871  ;;  %v4679_v15 = vld [vmem:[#allocation3 + $0xa4] ss:$8 sps:$4 sm:$0xff]  }
 0xa3c   :  { %v1311_v9 = vadd.f32 1.0, %v3872_v60 }
 0xa3d   :  { %3873 = vrcp.f32 %v1190_v55 }
 0xa3e   :  { %3875 = vrcp.f32 %v1311_v9 }
 0xa4a   :  { %v3874_v61 = vpop.eup %3873 }
 0xa4b   :  { %v3876_v18 = vpop.eup %3875  ;;  %v1197_v3 = vmul.f32 %v3874_v61, %v4564_v22  ;;  %v99_v22 = vsub.s32 5, %v4282_v2 }
 0xa4c   :  { %v1318_v8 = vmul.f32 %v3876_v18, %v4569_v31  ;;  %v3655_v31 = vmul.f32 -1.442695, %v1183_v40 }
 0xa4d   :  { %v100_v41 = vrot.slane %v4631_v39, %v99_v22 }
 0xa9c   :  { %v1200_v62 = vpop.permute.xlu0 %1199 }
 0xa9d   :  { %v1202_v56 = vmul.f32 %v3874_v61, %v1200_v62 }
 0xa9f   :  { %1204 = vrot.lane.b32.xlu0 %v1202_v56, %s4256_s24 }
 0xaac   :  { %v1321_v30 = vpop.permute.xlu1 %1320 }
 0xaad   :  { %v1323_v12 = vmul.f32 %v3876_v18, %v1321_v30 }
 0xaaf   :  { %1325 = vrot.lane.b32.xlu1 %v1323_v12, %s4256_s24 }
 0xb11   :  { %v1205_v4 = vpop.permute.xlu0 %1204 }
 0xb12   :  { %v4618_v5 = vadd.f32 %v1205_v4, %v1197_v3 }
 0xb14   :  { %3877 = vtanh.f32 %v4618_v5 }
 0xb21   :  { %v3878_v7 = vpop.eup %3877  ;;  %v1326_v10 = vpop.permute.xlu1 %1325 }
 0xb22   :  { %1210 = vrot.lane.b32.xlu0 %v3878_v7, %s4256_s24  ;;  %v4623_v11 = vadd.f32 %v1326_v10, %v1318_v8 }
 0xb24   :  { %3879 = vtanh.f32 %v4623_v11 }
 0xb25   :  { %3881 = vpow2.f32 %v3655_v31 }
 0xb26   :  { %102 = vbcast.lane.b32.xlu0 %v100_v41, 256  ;;  %3883 = vpow2.f32 %v3659_v20 }
 0xb31   :  { %v3880_v13 = vpop.eup %3879 }
 0xb32   :  { %1331 = vrot.lane.b32.xlu1 %v3880_v13, %s4256_s24  ;;  %v3882_v42 = vpop.eup %3881 }
 0xb33   :  { %v1191_v1 = vadd.f32 1.0, %v3882_v42  ;;  %v3884_v32 = vpop.eup %3883 }
 0xb34   :  { %v1312_v25 = vadd.f32 1.0, %v3884_v32 }
 0xb35   :  { %3885 = vrcp.f32 %v1191_v1 }
 0xb36   :  { %3887 = vrcp.f32 %v1312_v25 }
 0xb42   :  { %v3886_v21 = vpop.eup %3885 }
 0xb43   :  { %v3888_v40 = vpop.eup %3887 }
 0xb94   :  { %v1211_v59 = vpop.permute.xlu0 %1210 }
 0xb95   :  { %v1213_v54 = vmul.f32 %v3886_v21, %v1211_v59 }
 0xb97   :  { %v1214_v27 = vpack.c.bf16 %v1213_v54, %v1213_v54 }
 0xb99   :  { %3656 = vmatmul.mubr.msk.bf16.vlgmr.msra.gmra.mxu0 %vm343_vm0, %v1214_v27 }
 0xb9a   :  { %1348 = vmatpush1.bf16.msra.mxu0 %v4383_v48  ;;  %1371 = vmatprep.mubr.bf16.mxu0 %v4255_v0 }
 0xb9b   :  { %1349 = vmatprep.subr.bf16.mxu0 %v4387_v49  ;;  %v4649_v49 = vld [vmem:[#allocation3 + $0x30] ss:$8 sps:$4 sm:$0xff]  }
 0xb9e   :  { %1350 = vmatpush1.bf16.msra.mxu0 %v4392_v50  ;;  %v4653_v50 = vld [vmem:[#allocation3 + $0x24] ss:$8 sps:$4 sm:$0xff]  }
 0xb9f   :  { %1351 = vmatprep.subr.bf16.mxu0 %v4396_v51  ;;  %v4656_v51 = vld [vmem:[#allocation3 + $0x20] ss:$8 sps:$4 sm:$0xff]  }
 0xba2   :  { %1352 = vmatpush1.bf16.msra.mxu0 %v4399_v52  ;;  %v4659_v52 = vld [vmem:[#allocation3 + $0x14] ss:$8 sps:$4 sm:$0xff]  }
 0xba3   :  { %1353 = vmatprep.subr.bf16.mxu0 %v4402_v53  ;;  %v4662_v53 = vld [vmem:[#allocation3 + $0x10] ss:$8 sps:$4 sm:$0xff]  }
 0xba4   :  { %v1332_v26 = vpop.permute.xlu1 %1331 }
 0xba5   :  { %v1334_v48 = vmul.f32 %v3888_v40, %v1332_v26 }
 0xba6   :  { %1354 = vmatpush1.bf16.msra.mxu0 %v4408_v57  ;;  %v4665_v57 = vld [vmem:[#allocation3 + $0x4] ss:$8 sps:$4 sm:$0xff]  }
 0xba7   :  { %1468 = vmatprep.subr.bf16.mxu0 %v4645_v38  ;;  %v1335_v17 = vpack.c.bf16 %v1334_v48, %v1334_v48 }
 0xba9   :  { %3660 = vmatmul.mubr.msk.bf16.vlgmr.msra.gmra.mxu0 %vm343_vm0, %v1335_v17 }
 0xbaa   :  { %1469 = vmatpush1.bf16.msra.mxu0 %v4649_v49  ;;  %1492 = vmatprep.mubr.bf16.mxu0 %v4255_v0 }
 0xbab   :  { %1470 = vmatprep.subr.bf16.mxu0 %v4653_v50 }
 0xbae   :  { %1471 = vmatpush1.bf16.msra.mxu0 %v4656_v51 }
 0xbaf   :  { %1472 = vmatprep.subr.bf16.mxu0 %v4659_v52 }
 0xbb2   :  { %1473 = vmatpush1.bf16.msra.mxu0 %v4662_v53 }
 0xbb3   :  { %1474 = vmatprep.subr.bf16.mxu0 %v4665_v57 }
 0xbb6   :  { %1475 = vmatpush1.bf16.msra.mxu0 %v4668_v33 }
 0xbb7   :  { %1622 = vmatprep.subr.bf16.mxu0 %v4671_v34 }
 0xbb9   :  { %3664 = vmatmul.mubr.msk.bf16.vlgmr.msra.gmra.mxu0 %vm343_vm0, %v1335_v17 }
 0xbba   :  { %1623 = vmatpush1.bf16.msra.mxu0 %v4675_v37  ;;  %1646 = vmatprep.mubr.bf16.mxu0 %v4255_v0 }
 0xbbb   :  { %1624 = vmatprep.subr.bf16.mxu0 %v4679_v15 }
 0xbbe   :  { %1625 = vmatpush1.bf16.msra.mxu0 %v4682_v36 }
 0xbbf   :  { %1626 = vmatprep.subr.bf16.mxu0 %v4363_v43 }
 0xbc2   :  { %1627 = vmatpush1.bf16.msra.mxu0 %v4367_v44 }
 0xbc3   :  { %1628 = vmatprep.subr.bf16.mxu0 %v4371_v45  ;;  %v103_v45 = vpop.permute.xlu0 %102 }
 0xbc4   :  { %v195_v20 = vmul.f32 %v4342_v28, %v103_v45 }
 0xbc6   :  { %1629 = vmatpush1.bf16.msra.mxu0 %v4375_v46  ;;  %v196_v46 = vmul.f32 %v4327_v16, %v103_v45  ;;  %v238_v1 = vadd.f32 %v4345_v29, %v195_v20  ;;  %v4725_v20 = vld [vmem:[#allocation3 + $0x54] ss:$8 sps:$4 sm:$0xff]  }
 0xbc7   :  { %1743 = vmatprep.subr.bf16.mxu0 %v4379_v47 }
 0xbc8   :  { %v239_v47 = vadd.f32 %v4333_v19, %v196_v46 }
 0xc59   :  { %v1252_v55 = vpop.f32.mrf.mxu0 }
 0xc5a   :  { %v1253_v56 = vadd.f32 %v1252_v55, %v4441_v23 }
 0xc5b   :  { %v1254_v60 = vpop.f32.mrf.mxu0 }
 0xc5c   :  { %v1255_v18 = vadd.f32 %v1254_v60, %v4444_v24 }
 0xc5d   :  { %v1256_v61 = vpop.f32.mrf.mxu0 }
 0xc5f   :  { %v1257_v62 = vpop.f32.mrf.mxu0 }
 0xc69   :  { %v1373_v9 = vpop.f32.mrf.mxu0 }
 0xc6a   :  { %v1380_v30 = vadd.f32 %v1373_v9, %v1253_v56 }
 0xc6b   :  { %v1375_v12 = vpop.f32.mrf.mxu0 }
 0xc6c   :  { %v1381_v43 = vadd.f32 %v1375_v12, %v1255_v18  ;;  %v3661_v42 = vmul.f32 -1.442695, %v1380_v30 }
 0xc6d   :  { %v1377_v3 = vpop.f32.mrf.mxu0 }
 0xc6e   :  { %3889 = vtanh.f32 %v1381_v43  ;;  %v3662_v45 = vmul.f32 -1.442695, %v1381_v43  ;;  %v4719_v43 = vld [vmem:[#allocation3 + $0x64] ss:$8 sps:$4 sm:$0xff]  }
 0xc6f   :  { %v1378_v44 = vpop.f32.mrf.mxu0 }
 0xc79   :  { %v1494_v4 = vpop.f32.mrf.mxu0 }
 0xc7a   :  { %v1501_v32 = vadd.f32 %v1494_v4, %v238_v1  ;;  %v4728_v1 = vld [vmem:[#allocation3 + $0x50] ss:$8 sps:$4 sm:$0xff]  }
 0xc7b   :  { %v1496_v7 = vpop.f32.mrf.mxu0  ;;  %v3890_v8 = vpop.eup %3889 }
 0xc7c   :  { %1397 = vrot.lane.b32.xlu1 %v3890_v8, %s4256_s24  ;;  %v1502_v13 = vadd.f32 %v1496_v7, %v239_v47  ;;  %v3665_v59 = vmul.f32 -1.442695, %v1501_v32  ;;  %v4731_v32 = vld [vmem:[#allocation3 + $0x44] ss:$8 sps:$4 sm:$0xff]  }
 0xc7d   :  { %v1498_v10 = vpop.f32.mrf.mxu0 }
 0xc7e   :  { %3891 = vtanh.f32 %v1502_v13  ;;  %v3666_v4 = vmul.f32 -1.442695, %v1502_v13  ;;  %v4722_v13 = vld [vmem:[#allocation3 + $0x60] ss:$8 sps:$4 sm:$0xff]  }
 0xc7f   :  { %v1499_v41 = vpop.f32.mrf.mxu0  ;;  %3893 = vpow2.f32 %v3661_v42  ;;  %v4715_v42 = vld [vmem:[#allocation3 + $0x70] ss:$8 sps:$4 sm:$0xff]  }
 0xc80   :  { %3895 = vpow2.f32 %v3665_v59 }
 0xc8b   :  { %v3892_v31 = vpop.eup %3891 }
 0xc8c   :  { %1518 = vrot.lane.b32.xlu0 %v3892_v31, %s4256_s24  ;;  %v3894_v21 = vpop.eup %3893 }
 0xc8d   :  { %v1388_v54 = vadd.f32 1.0, %v3894_v21  ;;  %v3896_v25 = vpop.eup %3895  ;;  %v4734_v21 = vld [vmem:[#allocation3 + $0x40] ss:$8 sps:$4 sm:$0xff]  }
 0xc8e   :  { %v1509_v48 = vadd.f32 1.0, %v3896_v25 }
 0xc8f   :  { %3897 = vrcp.f32 %v1388_v54 }
 0xc90   :  { %3899 = vrcp.f32 %v1509_v48  ;;  %v4759_v48 = vld [vmem:[#allocation3 + $0x84] ss:$8 sps:$4 sm:$0xff]  }
 0xc9c   :  { %v3898_v27 = vpop.eup %3897 }
 0xc9d   :  { %v3900_v17 = vpop.eup %3899  ;;  %v1395_v61 = vmul.f32 %v3898_v27, %v4618_v5  ;;  %v106_v5 = vsub.s32 6, %v4282_v2 }
 0xc9e   :  { %v1516_v18 = vmul.f32 %v3900_v17, %v4623_v11 }
 0xc9f   :  { %v107_v44 = vrot.slane %v4631_v39, %v106_v5 }
 0xcee   :  { %v1398_v40 = vpop.permute.xlu1 %1397 }
 0xcef   :  { %v1400_v26 = vmul.f32 %v3898_v27, %v1398_v40  ;;  %v4753_v40 = vld [vmem:[#allocation3 + $0x94] ss:$8 sps:$4 sm:$0xff]  }
 0xcf1   :  { %1402 = vrot.lane.b32.xlu1 %v1400_v26, %s4256_s24  ;;  %v4756_v26 = vld [vmem:[#allocation3 + $0x90] ss:$8 sps:$4 sm:$0xff]  }
 0xcfe   :  { %v1519_v55 = vpop.permute.xlu0 %1518 }
 0xcff   :  { %v1521_v60 = vmul.f32 %v3900_v17, %v1519_v55  ;;  %v4762_v17 = vld [vmem:[#allocation3 + $0x80] ss:$8 sps:$4 sm:$0xff]   ;;  %v4765_v55 = vld [vmem:[#allocation3 + $0x74] ss:$8 sps:$4 sm:$0xff]  }
 0xd01   :  { %1523 = vrot.lane.b32.xlu0 %v1521_v60, %s4256_s24 }
 0xd63   :  { %v1403_v62 = vpop.permute.xlu1 %1402 }
 0xd64   :  { %v4701_v56 = vadd.f32 %v1403_v62, %v1395_v61 }
 0xd66   :  { %3901 = vtanh.f32 %v4701_v56 }
 0xd73   :  { %v3902_v9 = vpop.eup %3901  ;;  %v1524_v30 = vpop.permute.xlu0 %1523 }
 0xd74   :  { %1408 = vrot.lane.b32.xlu1 %v3902_v9, %s4256_s24  ;;  %v4706_v12 = vadd.f32 %v1524_v30, %v1516_v18 }
 0xd76   :  { %3903 = vtanh.f32 %v4706_v12 }
 0xd77   :  { %3905 = vpow2.f32 %v3662_v45 }
 0xd78   :  { %109 = vbcast.lane.b32.xlu1 %v107_v44, 256  ;;  %3907 = vpow2.f32 %v3666_v4 }
 0xd83   :  { %v3904_v3 = vpop.eup %3903 }
 0xd84   :  { %1529 = vrot.lane.b32.xlu0 %v3904_v3, %s4256_s24  ;;  %v3906_v46 = vpop.eup %3905 }
 0xd85   :  { %v1389_v11 = vadd.f32 1.0, %v3906_v46  ;;  %v3908_v47 = vpop.eup %3907 }
 0xd86   :  { %v1510_v41 = vadd.f32 1.0, %v3908_v47 }
 0xd87   :  { %3909 = vrcp.f32 %v1389_v11 }
 0xd88   :  { %3911 = vrcp.f32 %v1510_v41 }
 0xd94   :  { %v3910_v7 = vpop.eup %3909 }
 0xd95   :  { %v3912_v59 = vpop.eup %3911 }
 0xde6   :  { %v1409_v8 = vpop.permute.xlu1 %1408 }
 0xde7   :  { %v1411_v10 = vmul.f32 %v3910_v7, %v1409_v8 }
 0xde9   :  { %v1412_v31 = vpack.c.bf16 %v1411_v10, %v1411_v10 }
 0xdea   :  { %v110_v47 = vpop.permute.xlu1 %109 }
 0xdeb   :  { %3663 = vmatmul.mubr.msk.bf16.vlgmr.msra.gmra.mxu1 %vm343_vm0, %v1412_v31  ;;  %v198_v7 = vmul.f32 %v4327_v16, %v110_v47 }
 0xdec   :  { %1546 = vmatpush1.bf16.msra.mxu1 %v4715_v42  ;;  %1569 = vmatprep.mubr.bf16.mxu1 %v4255_v0 }
 0xded   :  { %1547 = vmatprep.subr.bf16.mxu1 %v4719_v43  ;;  %v241_v10 = vadd.f32 %v4333_v19, %v198_v7 }
 0xdf0   :  { %1548 = vmatpush1.bf16.msra.mxu1 %v4722_v13 }
 0xdf1   :  { %1549 = vmatprep.subr.bf16.mxu1 %v4725_v20 }
 0xdf4   :  { %1550 = vmatpush1.bf16.msra.mxu1 %v4728_v1 }
 0xdf5   :  { %1551 = vmatprep.subr.bf16.mxu1 %v4731_v32 }
 0xdf6   :  { %v1530_v54 = vpop.permute.xlu0 %1529 }
 0xdf7   :  { %v1532_v25 = vmul.f32 %v3912_v59, %v1530_v54 }
 0xdf8   :  { %1552 = vmatpush1.bf16.msra.mxu1 %v4734_v21 }
 0xdf9   :  { %1666 = vmatprep.subr.bf16.mxu1 %v4645_v38  ;;  %v1533_v27 = vpack.c.bf16 %v1532_v25, %v1532_v25 }
 0xdfb   :  { %3667 = vmatmul.mubr.msk.bf16.vlgmr.msra.gmra.mxu1 %vm343_vm0, %v1533_v27 }
 0xdfc   :  { %1667 = vmatpush1.bf16.msra.mxu1 %v4649_v49  ;;  %1690 = vmatprep.mubr.bf16.mxu1 %v4255_v0 }
 0xdfd   :  { %1668 = vmatprep.subr.bf16.mxu1 %v4653_v50 }
 0xe00   :  { %1669 = vmatpush1.bf16.msra.mxu1 %v4656_v51 }
 0xe01   :  { %1670 = vmatprep.subr.bf16.mxu1 %v4659_v52 }
 0xe04   :  { %1671 = vmatpush1.bf16.msra.mxu1 %v4662_v53 }
 0xe05   :  { %1672 = vmatprep.subr.bf16.mxu1 %v4665_v57 }
 0xe08   :  { %1673 = vmatpush1.bf16.msra.mxu1 %v4668_v33 }
 0xe09   :  { %1820 = vmatprep.subr.bf16.mxu1 %v4671_v34 }
 0xe0b   :  { %3671 = vmatmul.mubr.msk.bf16.vlgmr.msra.gmra.mxu1 %vm343_vm0, %v1533_v27 }
 0xe0c   :  { %1821 = vmatpush1.bf16.msra.mxu1 %v4675_v37  ;;  %1844 = vmatprep.mubr.bf16.mxu1 %v4255_v0 }
 0xe0d   :  { %1822 = vmatprep.subr.bf16.mxu1 %v4679_v15 }
 0xe10   :  { %1823 = vmatpush1.bf16.msra.mxu1 %v4682_v36 }
 0xe11   :  { %1824 = vmatprep.subr.bf16.mxu1 %v4753_v40 }
 0xe14   :  { %1825 = vmatpush1.bf16.msra.mxu1 %v4756_v26 }
 0xe15   :  { %1826 = vmatprep.subr.bf16.mxu1 %v4759_v48 }
 0xe18   :  { %1827 = vmatpush1.bf16.msra.mxu1 %v4762_v17 }
 0xe19   :  { %1941 = vmatprep.subr.bf16.mxu1 %v4765_v55 }
 0xeab   :  { %v1450_v60 = vpop.f32.mrf.mxu1 }
 0xeac   :  { %v1451_v18 = vadd.f32 %v1450_v60, %v4441_v23 }
 0xead   :  { %v1452_v61 = vpop.f32.mrf.mxu1 }
 0xeae   :  { %v1453_v3 = vadd.f32 %v1452_v61, %v4444_v24  ;;  %v197_v61 = vmul.f32 %v4342_v28, %v110_v47 }
 0xeaf   :  { %v1454_v62 = vpop.f32.mrf.mxu1 }
 0xeb0   :  { %v240_v62 = vadd.f32 %v4345_v29, %v197_v61 }
 0xeb1   :  { %v1455_v9 = vpop.f32.mrf.mxu1 }
 0xebb   :  { %v1571_v30 = vpop.f32.mrf.mxu1 }
 0xebc   :  { %v1578_v44 = vadd.f32 %v1571_v30, %v1451_v18 }
 0xebd   :  { %v1573_v45 = vpop.f32.mrf.mxu1 }
 0xebe   :  { %v1579_v46 = vadd.f32 %v1573_v45, %v1453_v3  ;;  %v3668_v60 = vmul.f32 -1.442695, %v1578_v44 }
 0xebf   :  { %v1575_v4 = vpop.f32.mrf.mxu1 }
 0xec0   :  { %3913 = vtanh.f32 %v1579_v46 }
 0xec1   :  { %v1576_v11 = vpop.f32.mrf.mxu1 }
 0xecb   :  { %v1692_v8 = vpop.f32.mrf.mxu1 }
 0xecc   :  { %v1699_v9 = vadd.f32 %v1692_v8, %v240_v62 }
 0xecd   :  { %v1694_v41 = vpop.f32.mrf.mxu1  ;;  %v3914_v31 = vpop.eup %3913 }
 0xece   :  { %1595 = vrot.lane.b32.xlu0 %v3914_v31, %s4256_s24  ;;  %v1700_v54 = vadd.f32 %v1694_v41, %v241_v10  ;;  %v3672_v30 = vmul.f32 -1.442695, %v1699_v9 }
 0xecf   :  { %v1696_v59 = vpop.f32.mrf.mxu1 }
 0xed0   :  { %3915 = vtanh.f32 %v1700_v54 }
 0xed1   :  { %v1697_v25 = vpop.f32.mrf.mxu1  ;;  %3917 = vpow2.f32 %v3668_v60 }
 0xed2   :  { %3919 = vpow2.f32 %v3672_v30 }
 0xedd   :  { %v3916_v27 = vpop.eup %3915 }
 0xede   :  { %1716 = vrot.lane.b32.xlu1 %v3916_v27, %s4256_s24  ;;  %v3918_v18 = vpop.eup %3917 }
 0xedf   :  { %v1586_v3 = vadd.f32 1.0, %v3918_v18  ;;  %v3920_v45 = vpop.eup %3919  ;;  %v3669_v18 = vmul.f32 -1.442695, %v1579_v46 }
 0xee0   :  { %v1707_v10 = vadd.f32 1.0, %v3920_v45 }
 0xee1   :  { %3921 = vrcp.f32 %v1586_v3  ;;  %v3673_v3 = vmul.f32 -1.442695, %v1700_v54 }
 0xee2   :  { %3923 = vrcp.f32 %v1707_v10 }
 0xeee   :  { %v3922_v4 = vpop.eup %3921 }
 0xeef   :  { %v3924_v44 = vpop.eup %3923  ;;  %v1593_v47 = vmul.f32 %v3922_v4, %v4701_v56  ;;  %v113_v56 = vsub.s32 7, %v4282_v2 }
 0xef0   :  { %v1714_v27 = vmul.f32 %v3924_v44, %v4706_v12 }
 0xef1   :  { %v114_v9 = vrot.slane %v4631_v39, %v113_v56 }
 0xf40   :  { %v1596_v11 = vpop.permute.xlu0 %1595 }
 0xf41   :  { %v1598_v7 = vmul.f32 %v3922_v4, %v1596_v11 }
 0xf43   :  { %1600 = vrot.lane.b32.xlu0 %v1598_v7, %s4256_s24 }
 0xf50   :  { %v1717_v41 = vpop.permute.xlu1 %1716 }
 0xf51   :  { %v1719_v31 = vmul.f32 %v3924_v44, %v1717_v41 }
 0xf53   :  { %1721 = vrot.lane.b32.xlu1 %v1719_v31, %s4256_s24 }
 0xfb5   :  { %v1601_v8 = vpop.permute.xlu0 %1600 }
 0xfb6   :  { %v4779_v59 = vadd.f32 %v1601_v8, %v1593_v47 }
 0xfb8   :  { %3925 = vtanh.f32 %v4779_v59 }
 0xfc5   :  { %v3926_v25 = vpop.eup %3925  ;;  %v1722_v60 = vpop.permute.xlu1 %1721 }
 0xfc6   :  { %1606 = vrot.lane.b32.xlu0 %v3926_v25, %s4256_s24  ;;  %v4784_v61 = vadd.f32 %v1722_v60, %v1714_v27 }
 0xfc8   :  { %3927 = vtanh.f32 %v4784_v61 }
 0xfc9   :  { %3929 = vpow2.f32 %v3669_v18 }
 0xfca   :  { %116 = vbcast.lane.b32.xlu0 %v114_v9, 256  ;;  %3931 = vpow2.f32 %v3673_v3 }
 0xfd5   :  { %v3928_v62 = vpop.eup %3927 }
 0xfd6   :  { %1727 = vrot.lane.b32.xlu1 %v3928_v62, %s4256_s24  ;;  %v3930_v30 = vpop.eup %3929 }
 0xfd7   :  { %v1587_v12 = vadd.f32 1.0, %v3930_v30  ;;  %v3932_v45 = vpop.eup %3931 }
 0xfd8   :  { %v1708_v10 = vadd.f32 1.0, %v3932_v45 }
 0xfd9   :  { %3933 = vrcp.f32 %v1587_v12 }
 0xfda   :  { %3935 = vrcp.f32 %v1708_v10 }
 0xfe6   :  { %v3934_v4 = vpop.eup %3933 }
 0xfe7   :  { %v3936_v39 = vpop.eup %3935 }
0x1038   :  { %v1607_v11 = vpop.permute.xlu0 %1606 }
0x1039   :  { %v1609_v7 = vmul.f32 %v3934_v4, %v1607_v11 }
0x103b   :  { %v1610_v44 = vpack.c.bf16 %v1609_v7, %v1609_v7 }
0x103c   :  { %v117_v45 = vpop.permute.xlu0 %116 }
0x103d   :  { %3670 = vmatmul.mubr.msk.bf16.vlgmr.msra.gmra.mxu0 %vm343_vm0, %v1610_v44  ;;  %v200_v4 = vmul.f32 %v4327_v16, %v117_v45 }
0x103e   :  { %1744 = vmatpush1.bf16.msra.mxu0 %v4715_v42  ;;  %1767 = vmatprep.mubr.bf16.mxu0 %v4255_v0 }
0x103f   :  { %1745 = vmatprep.subr.bf16.mxu0 %v4719_v43  ;;  %v243_v7 = vadd.f32 %v4333_v19, %v200_v4 }
0x1042   :  { %1746 = vmatpush1.bf16.msra.mxu0 %v4722_v13 }
0x1043   :  { %1747 = vmatprep.subr.bf16.mxu0 %v4725_v20 }
0x1046   :  { %1748 = vmatpush1.bf16.msra.mxu0 %v4728_v1 }
0x1047   :  { %1749 = vmatprep.subr.bf16.mxu0 %v4731_v32 }
0x1048   :  { %v1728_v46 = vpop.permute.xlu1 %1727 }
0x1049   :  { %v1730_v54 = vmul.f32 %v3936_v39, %v1728_v46 }
0x104a   :  { %1750 = vmatpush1.bf16.msra.mxu0 %v4734_v21 }
0x104b   :  { %1864 = vmatprep.subr.bf16.mxu0 %v4645_v38  ;;  %v1731_v41 = vpack.c.bf16 %v1730_v54, %v1730_v54 }
0x104d   :  { %3674 = vmatmul.mubr.msk.bf16.vlgmr.msra.gmra.mxu0 %vm343_vm0, %v1731_v41 }
0x104e   :  { %1865 = vmatpush1.bf16.msra.mxu0 %v4649_v49  ;;  %1888 = vmatprep.mubr.bf16.mxu0 %v4255_v0 }
0x104f   :  { %1866 = vmatprep.subr.bf16.mxu0 %v4653_v50 }
0x1052   :  { %1867 = vmatpush1.bf16.msra.mxu0 %v4656_v51 }
0x1053   :  { %1868 = vmatprep.subr.bf16.mxu0 %v4659_v52 }
0x1056   :  { %1869 = vmatpush1.bf16.msra.mxu0 %v4662_v53 }
0x1057   :  { %1870 = vmatprep.subr.bf16.mxu0 %v4665_v57 }
0x105a   :  { %1871 = vmatpush1.bf16.msra.mxu0 %v4668_v33 }
0x105b   :  { %2018 = vmatprep.subr.bf16.mxu0 %v4671_v34 }
0x105d   :  { %3678 = vmatmul.mubr.msk.bf16.vlgmr.msra.gmra.mxu0 %vm343_vm0, %v1731_v41 }
0x105e   :  { %2019 = vmatpush1.bf16.msra.mxu0 %v4675_v37  ;;  %2042 = vmatprep.mubr.bf16.mxu0 %v4255_v0 }
0x105f   :  { %2020 = vmatprep.subr.bf16.mxu0 %v4679_v15 }
0x1062   :  { %2021 = vmatpush1.bf16.msra.mxu0 %v4682_v36 }
0x1063   :  { %2022 = vmatprep.subr.bf16.mxu0 %v4753_v40 }
0x1066   :  { %2023 = vmatpush1.bf16.msra.mxu0 %v4756_v26 }
0x1067   :  { %2024 = vmatprep.subr.bf16.mxu0 %v4759_v48 }
0x106a   :  { %2025 = vmatpush1.bf16.msra.mxu0 %v4762_v17 }
0x106b   :  { %2139 = vmatprep.subr.bf16.mxu0 %v4765_v55 }
0x10fd   :  { %v1648_v31 = vpop.f32.mrf.mxu0 }
0x10fe   :  { %v1649_v27 = vadd.f32 %v1648_v31, %v4441_v23 }
0x10ff   :  { %v1650_v47 = vpop.f32.mrf.mxu0 }
0x1100   :  { %v1651_v62 = vadd.f32 %v1650_v47, %v4444_v24  ;;  %v199_v47 = vmul.f32 %v4342_v28, %v117_v45 }
0x1101   :  { %v1652_v8 = vpop.f32.mrf.mxu0 }
0x1102   :  { %v242_v8 = vadd.f32 %v4345_v29, %v199_v47 }
0x1103   :  { %v1653_v25 = vpop.f32.mrf.mxu0 }
0x110d   :  { %v1769_v60 = vpop.f32.mrf.mxu0 }
0x110e   :  { %v1776_v9 = vadd.f32 %v1769_v60, %v1649_v27 }
0x110f   :  { %v1771_v18 = vpop.f32.mrf.mxu0 }
0x1110   :  { %v1777_v30 = vadd.f32 %v1771_v18, %v1651_v62  ;;  %v3675_v31 = vmul.f32 -1.442695, %v1776_v9 }
0x1111   :  { %v1773_v3 = vpop.f32.mrf.mxu0 }
0x1112   :  { %3937 = vtanh.f32 %v1777_v30 }
0x1113   :  { %v1774_v12 = vpop.f32.mrf.mxu0 }
0x111d   :  { %v1890_v11 = vpop.f32.mrf.mxu0 }
0x111e   :  { %v1897_v25 = vadd.f32 %v1890_v11, %v242_v8 }
0x111f   :  { %v1892_v10 = vpop.f32.mrf.mxu0  ;;  %v3938_v44 = vpop.eup %3937 }
0x1120   :  { %1793 = vrot.lane.b32.xlu1 %v3938_v44, %s4256_s24  ;;  %v1898_v46 = vadd.f32 %v1892_v10, %v243_v7  ;;  %v3679_v60 = vmul.f32 -1.442695, %v1897_v25 }
0x1121   :  { %v1894_v39 = vpop.f32.mrf.mxu0 }
0x1122   :  { %3939 = vtanh.f32 %v1898_v46 }
0x1123   :  { %v1895_v54 = vpop.f32.mrf.mxu0  ;;  %3941 = vpow2.f32 %v3675_v31 }
0x1124   :  { %3943 = vpow2.f32 %v3679_v60  ;;  %v3680_v60 = vmul.f32 -1.442695, %v1898_v46 }
0x112f   :  { %v3940_v41 = vpop.eup %3939 }
0x1130   :  { %1914 = vrot.lane.b32.xlu0 %v3940_v41, %s4256_s24  ;;  %v3942_v27 = vpop.eup %3941 }
0x1131   :  { %v1784_v62 = vadd.f32 1.0, %v3942_v27  ;;  %v3944_v18 = vpop.eup %3943  ;;  %v3676_v27 = vmul.f32 -1.442695, %v1777_v30 }
0x1132   :  { %v1905_v7 = vadd.f32 1.0, %v3944_v18 }
0x1133   :  { %3945 = vrcp.f32 %v1784_v62 }
0x1134   :  { %3947 = vrcp.f32 %v1905_v7 }
0x1140   :  { %v3946_v3 = vpop.eup %3945 }
0x1141   :  { %v3948_v9 = vpop.eup %3947  ;;  %v1791_v45 = vmul.f32 %v3946_v3, %v4779_v59  ;;  %v4845_v59 = vld [vmem:[%s5320_s0 + $0x8] sm:$0xff] }
0x1142   :  { %v1912_v41 = vmul.f32 %v3948_v9, %v4784_v61  ;;  %v121_v25 = vrot.slane %v4845_v59, %v4292_v6 }
0x1192   :  { %v1794_v12 = vpop.permute.xlu1 %1793 }
0x1193   :  { %v1796_v4 = vmul.f32 %v3946_v3, %v1794_v12 }
0x1195   :  { %1798 = vrot.lane.b32.xlu1 %v1796_v4, %s4256_s24 }
0x11a2   :  { %v1915_v10 = vpop.permute.xlu0 %1914 }
0x11a3   :  { %v1917_v44 = vmul.f32 %v3948_v9, %v1915_v10 }
0x11a5   :  { %1919 = vrot.lane.b32.xlu0 %v1917_v44, %s4256_s24 }
0x1207   :  { %v1799_v11 = vpop.permute.xlu1 %1798 }
0x1208   :  { %v4833_v39 = vadd.f32 %v1799_v11, %v1791_v45 }
0x120a   :  { %3949 = vtanh.f32 %v4833_v39 }
0x1217   :  { %v3950_v54 = vpop.eup %3949  ;;  %v1920_v31 = vpop.permute.xlu0 %1919 }
0x1218   :  { %1804 = vrot.lane.b32.xlu1 %v3950_v54, %s4256_s24  ;;  %v4838_v47 = vadd.f32 %v1920_v31, %v1912_v41 }
0x121a   :  { %3951 = vtanh.f32 %v4838_v47 }
0x121b   :  { %3953 = vpow2.f32 %v3676_v27 }
0x121c   :  { %123 = vbcast.lane.b32.xlu1 %v121_v25, 256  ;;  %3955 = vpow2.f32 %v3680_v60 }
0x1227   :  { %v3952_v8 = vpop.eup %3951 }
0x1228   :  { %1925 = vrot.lane.b32.xlu0 %v3952_v8, %s4256_s24  ;;  %v3954_v61 = vpop.eup %3953 }
0x1229   :  { %v1785_v62 = vadd.f32 1.0, %v3954_v61  ;;  %v3956_v18 = vpop.eup %3955 }
0x122a   :  { %v1906_v7 = vadd.f32 1.0, %v3956_v18 }
0x122b   :  { %3957 = vrcp.f32 %v1785_v62 }
0x122c   :  { %3959 = vrcp.f32 %v1906_v7 }
0x1238   :  { %v3958_v3 = vpop.eup %3957 }
0x1239   :  { %v3960_v6 = vpop.eup %3959 }
0x128a   :  { %v1805_v12 = vpop.permute.xlu1 %1804 }
0x128b   :  { %v1807_v4 = vmul.f32 %v3958_v3, %v1805_v12 }
0x128d   :  { %v1808_v9 = vpack.c.bf16 %v1807_v4, %v1807_v4 }
0x128e   :  { %v124_v18 = vpop.permute.xlu1 %123 }
0x128f   :  { %3677 = vmatmul.mubr.msk.bf16.vlgmr.msra.gmra.mxu1 %vm343_vm0, %v1808_v9  ;;  %v202_v3 = vmul.f32 %v4327_v16, %v124_v18 }
0x1290   :  { %1942 = vmatpush1.bf16.msra.mxu1 %v4715_v42  ;;  %1965 = vmatprep.mubr.bf16.mxu1 %v4255_v0 }
0x1291   :  { %1943 = vmatprep.subr.bf16.mxu1 %v4719_v43  ;;  %v245_v4 = vadd.f32 %v4333_v19, %v202_v3 }
0x1294   :  { %1944 = vmatpush1.bf16.msra.mxu1 %v4722_v13 }
0x1295   :  { %1945 = vmatprep.subr.bf16.mxu1 %v4725_v20 }
0x1298   :  { %1946 = vmatpush1.bf16.msra.mxu1 %v4728_v1 }
0x1299   :  { %1947 = vmatprep.subr.bf16.mxu1 %v4731_v32 }
0x129a   :  { %v1926_v30 = vpop.permute.xlu0 %1925 }
0x129b   :  { %v1928_v46 = vmul.f32 %v3960_v6, %v1926_v30 }
0x129c   :  { %1948 = vmatpush1.bf16.msra.mxu1 %v4734_v21 }
0x129d   :  { %2062 = vmatprep.subr.bf16.mxu1 %v4645_v38  ;;  %v1929_v10 = vpack.c.bf16 %v1928_v46, %v1928_v46 }
0x129f   :  { %3681 = vmatmul.mubr.msk.bf16.vlgmr.msra.gmra.mxu1 %vm343_vm0, %v1929_v10 }
0x12a0   :  { %2063 = vmatpush1.bf16.msra.mxu1 %v4649_v49  ;;  %2086 = vmatprep.mubr.bf16.mxu1 %v4255_v0 }
0x12a1   :  { %2064 = vmatprep.subr.bf16.mxu1 %v4653_v50 }
0x12a4   :  { %2065 = vmatpush1.bf16.msra.mxu1 %v4656_v51 }
0x12a5   :  { %2066 = vmatprep.subr.bf16.mxu1 %v4659_v52 }
0x12a8   :  { %2067 = vmatpush1.bf16.msra.mxu1 %v4662_v53 }
0x12a9   :  { %2068 = vmatprep.subr.bf16.mxu1 %v4665_v57 }
0x12ac   :  { %2069 = vmatpush1.bf16.msra.mxu1 %v4668_v33 }
0x12ad   :  { %2216 = vmatprep.subr.bf16.mxu1 %v4671_v34 }
0x12af   :  { %3685 = vmatmul.mubr.msk.bf16.vlgmr.msra.gmra.mxu1 %vm343_vm0, %v1929_v10 }
0x12b0   :  { %2217 = vmatpush1.bf16.msra.mxu1 %v4675_v37  ;;  %2240 = vmatprep.mubr.bf16.mxu1 %v4255_v0 }
0x12b1   :  { %2218 = vmatprep.subr.bf16.mxu1 %v4679_v15 }
0x12b4   :  { %2219 = vmatpush1.bf16.msra.mxu1 %v4682_v36 }
0x12b5   :  { %2220 = vmatprep.subr.bf16.mxu1 %v4753_v40 }
0x12b8   :  { %2221 = vmatpush1.bf16.msra.mxu1 %v4756_v26 }
0x12b9   :  { %2222 = vmatprep.subr.bf16.mxu1 %v4759_v48 }
0x12bc   :  { %2223 = vmatpush1.bf16.msra.mxu1 %v4762_v17 }
0x12bd   :  { %2337 = vmatprep.subr.bf16.mxu1 %v4765_v55 }
0x134f   :  { %v1846_v44 = vpop.f32.mrf.mxu1 }
0x1350   :  { %v1847_v41 = vadd.f32 %v1846_v44, %v4441_v23 }
0x1351   :  { %v1848_v45 = vpop.f32.mrf.mxu1 }
0x1352   :  { %v1849_v8 = vadd.f32 %v1848_v45, %v4444_v24  ;;  %v201_v45 = vmul.f32 %v4342_v28, %v124_v18 }
0x1353   :  { %v1850_v11 = vpop.f32.mrf.mxu1 }
0x1354   :  { %v244_v11 = vadd.f32 %v4345_v29, %v201_v45 }
0x1355   :  { %v1851_v54 = vpop.f32.mrf.mxu1 }
0x135f   :  { %v1967_v31 = vpop.f32.mrf.mxu1 }
0x1360   :  { %v1974_v25 = vadd.f32 %v1967_v31, %v1847_v41 }
0x1361   :  { %v1969_v27 = vpop.f32.mrf.mxu1 }
0x1362   :  { %v1975_v61 = vadd.f32 %v1969_v27, %v1849_v8  ;;  %v3682_v44 = vmul.f32 -1.442695, %v1974_v25 }
0x1363   :  { %v1971_v60 = vpop.f32.mrf.mxu1 }
0x1364   :  { %3961 = vtanh.f32 %v1975_v61 }
0x1365   :  { %v1972_v62 = vpop.f32.mrf.mxu1 }
0x136f   :  { %v2088_v12 = vpop.f32.mrf.mxu1 }
0x1370   :  { %v2095_v54 = vadd.f32 %v2088_v12, %v244_v11 }
0x1371   :  { %v2090_v7 = vpop.f32.mrf.mxu1  ;;  %v3962_v9 = vpop.eup %3961 }
0x1372   :  { %1991 = vrot.lane.b32.xlu0 %v3962_v9, %s4256_s24  ;;  %v2096_v30 = vadd.f32 %v2090_v7, %v245_v4  ;;  %v3686_v31 = vmul.f32 -1.442695, %v2095_v54  ;;  %v3683_v54 = vmul.f32 -1.442695, %v1975_v61 }
0x1373   :  { %v2092_v6 = vpop.f32.mrf.mxu1 }
0x1374   :  { %3963 = vtanh.f32 %v2096_v30 }
0x1375   :  { %v2093_v46 = vpop.f32.mrf.mxu1  ;;  %3965 = vpow2.f32 %v3682_v44 }
0x1376   :  { %3967 = vpow2.f32 %v3686_v31  ;;  %v3687_v31 = vmul.f32 -1.442695, %v2096_v30 }
0x1381   :  { %v3964_v10 = vpop.eup %3963 }
0x1382   :  { %2112 = vrot.lane.b32.xlu1 %v3964_v10, %s4256_s24  ;;  %v3966_v41 = vpop.eup %3965 }
0x1383   :  { %v1982_v8 = vadd.f32 1.0, %v3966_v41  ;;  %v3968_v27 = vpop.eup %3967 }
0x1384   :  { %v2103_v4 = vadd.f32 1.0, %v3968_v27 }
0x1385   :  { %3969 = vrcp.f32 %v1982_v8 }
0x1386   :  { %3971 = vrcp.f32 %v2103_v4 }
0x1392   :  { %v3970_v60 = vpop.eup %3969 }
0x1393   :  { %v3972_v25 = vpop.eup %3971  ;;  %v1989_v18 = vmul.f32 %v3970_v60, %v4833_v39  ;;  %v128_v39 = vrot.slane %v4845_v59, %v4321_v14 }
0x1394   :  { %v2110_v10 = vmul.f32 %v3972_v25, %v4838_v47 }
0x13e4   :  { %v1992_v62 = vpop.permute.xlu0 %1991 }
0x13e5   :  { %v1994_v3 = vmul.f32 %v3970_v60, %v1992_v62 }
0x13e7   :  { %1996 = vrot.lane.b32.xlu0 %v1994_v3, %s4256_s24 }
0x13f4   :  { %v2113_v7 = vpop.permute.xlu1 %2112 }
0x13f5   :  { %v2115_v9 = vmul.f32 %v3972_v25, %v2113_v7 }
0x13f7   :  { %2117 = vrot.lane.b32.xlu1 %v2115_v9, %s4256_s24 }
0x1459   :  { %v1997_v12 = vpop.permute.xlu0 %1996 }
0x145a   :  { %v4890_v6 = vadd.f32 %v1997_v12, %v1989_v18 }
0x145c   :  { %3973 = vtanh.f32 %v4890_v6 }
0x1469   :  { %v3974_v46 = vpop.eup %3973  ;;  %v2118_v44 = vpop.permute.xlu1 %2117 }
0x146a   :  { %2002 = vrot.lane.b32.xlu0 %v3974_v46, %s4256_s24  ;;  %v4895_v45 = vadd.f32 %v2118_v44, %v2110_v10 }
0x146c   :  { %3975 = vtanh.f32 %v4895_v45 }
0x146d   :  { %3977 = vpow2.f32 %v3683_v54 }
0x146e   :  { %130 = vbcast.lane.b32.xlu0 %v128_v39, 256  ;;  %3979 = vpow2.f32 %v3687_v31 }
0x1479   :  { %v3976_v11 = vpop.eup %3975 }
0x147a   :  { %2123 = vrot.lane.b32.xlu1 %v3976_v11, %s4256_s24  ;;  %v3978_v41 = vpop.eup %3977 }
0x147b   :  { %v1983_v8 = vadd.f32 1.0, %v3978_v41  ;;  %v3980_v47 = vpop.eup %3979 }
0x147c   :  { %v2104_v3 = vadd.f32 1.0, %v3980_v47 }
0x147d   :  { %3981 = vrcp.f32 %v1983_v8 }
0x147e   :  { %3983 = vrcp.f32 %v2104_v3 }
0x148a   :  { %v3982_v27 = vpop.eup %3981 }
0x148b   :  { %v3984_v14 = vpop.eup %3983 }
0x14dc   :  { %v2003_v60 = vpop.permute.xlu0 %2002 }
0x14dd   :  { %v2005_v62 = vmul.f32 %v3982_v27, %v2003_v60 }
0x14df   :  { %v2006_v4 = vpack.c.bf16 %v2005_v62, %v2005_v62 }
0x14e0   :  { %v131_v7 = vpop.permute.xlu0 %130 }
0x14e1   :  { %3684 = vmatmul.mubr.msk.bf16.vlgmr.msra.gmra.mxu0 %vm343_vm0, %v2006_v4  ;;  %v204_v9 = vmul.f32 %v4327_v16, %v131_v7  ;;  %v203_v31 = vmul.f32 %v4342_v28, %v131_v7 }
0x14e2   :  { %2140 = vmatpush1.bf16.msra.mxu0 %v4715_v42  ;;  %2163 = vmatprep.mubr.bf16.mxu0 %v4255_v0 }
0x14e3   :  { %2141 = vmatprep.subr.bf16.mxu0 %v4719_v43  ;;  %v247_v12 = vadd.f32 %v4333_v19, %v204_v9  ;;  %v246_v8 = vadd.f32 %v4345_v29, %v203_v31  ;;  %v4989_v31 = vld [vmem:[#allocation3 + $0xb4] ss:$8 sps:$4 sm:$0xff]  }
0x14e6   :  { %2142 = vmatpush1.bf16.msra.mxu0 %v4722_v13 }
0x14e7   :  { %2143 = vmatprep.subr.bf16.mxu0 %v4725_v20 }
0x14ea   :  { %2144 = vmatpush1.bf16.msra.mxu0 %v4728_v1 }
0x14eb   :  { %2145 = vmatprep.subr.bf16.mxu0 %v4731_v32 }
0x14ec   :  { %v2124_v61 = vpop.permute.xlu1 %2123 }
0x14ed   :  { %v2126_v30 = vmul.f32 %v3984_v14, %v2124_v61 }
0x14ee   :  { %2146 = vmatpush1.bf16.msra.mxu0 %v4734_v21 }
0x14ef   :  { %2260 = vmatprep.subr.bf16.mxu0 %v4645_v38  ;;  %v2127_v25 = vpack.c.bf16 %v2126_v30, %v2126_v30 }
0x14f1   :  { %3688 = vmatmul.mubr.msk.bf16.vlgmr.msra.gmra.mxu0 %vm343_vm0, %v2127_v25 }
0x14f2   :  { %2261 = vmatpush1.bf16.msra.mxu0 %v4649_v49  ;;  %2284 = vmatprep.mubr.bf16.mxu0 %v4255_v0 }
0x14f3   :  { %2262 = vmatprep.subr.bf16.mxu0 %v4653_v50 }
0x14f6   :  { %2263 = vmatpush1.bf16.msra.mxu0 %v4656_v51 }
0x14f7   :  { %2264 = vmatprep.subr.bf16.mxu0 %v4659_v52 }
0x14fa   :  { %2265 = vmatpush1.bf16.msra.mxu0 %v4662_v53 }
0x14fb   :  { %2266 = vmatprep.subr.bf16.mxu0 %v4665_v57 }
0x14fe   :  { %2267 = vmatpush1.bf16.msra.mxu0 %v4668_v33 }
0x14ff   :  { %2414 = vmatprep.subr.bf16.mxu0 %v4671_v34 }
0x1501   :  { %3692 = vmatmul.mubr.msk.bf16.vlgmr.msra.gmra.mxu0 %vm343_vm0, %v2127_v25 }
0x1502   :  { %2415 = vmatpush1.bf16.msra.mxu0 %v4675_v37  ;;  %2438 = vmatprep.mubr.bf16.mxu0 %v4255_v0 }
0x1503   :  { %2416 = vmatprep.subr.bf16.mxu0 %v4679_v15 }
0x1506   :  { %2417 = vmatpush1.bf16.msra.mxu0 %v4682_v36 }
0x1507   :  { %2418 = vmatprep.subr.bf16.mxu0 %v4753_v40 }
0x150a   :  { %2419 = vmatpush1.bf16.msra.mxu0 %v4756_v26 }
0x150b   :  { %2420 = vmatprep.subr.bf16.mxu0 %v4759_v48 }
0x150e   :  { %2421 = vmatpush1.bf16.msra.mxu0 %v4762_v17 }
0x150f   :  { %2535 = vmatprep.subr.bf16.mxu0 %v4765_v55 }
0x15a1   :  { %v2044_v38 = vpop.f32.mrf.mxu0 }
0x15a2   :  { %v2045_v52 = vadd.f32 %v2044_v38, %v4441_v23 }
0x15a3   :  { %v2046_v49 = vpop.f32.mrf.mxu0 }
0x15a4   :  { %v2047_v57 = vadd.f32 %v2046_v49, %v4444_v24 }
0x15a5   :  { %v2048_v50 = vpop.f32.mrf.mxu0 }
0x15a7   :  { %v2049_v51 = vpop.f32.mrf.mxu0 }
0x15b1   :  { %v2165_v53 = vpop.f32.mrf.mxu0 }
0x15b2   :  { %v2172_v33 = vadd.f32 %v2165_v53, %v2045_v52 }
0x15b3   :  { %v2167_v34 = vpop.f32.mrf.mxu0 }
0x15b4   :  { %v2173_v37 = vadd.f32 %v2167_v34, %v2047_v57  ;;  %v3689_v41 = vmul.f32 -1.442695, %v2172_v33 }
0x15b5   :  { %v2169_v15 = vpop.f32.mrf.mxu0 }
0x15b6   :  { %3985 = vtanh.f32 %v2173_v37 }
0x15b7   :  { %v2170_v36 = vpop.f32.mrf.mxu0 }
0x15b8   :  { %v3690_v36 = vmul.f32 -1.442695, %v2173_v37 }
0x15c1   :  { %v2286_v18 = vpop.f32.mrf.mxu0 }
0x15c2   :  { %v2293_v47 = vadd.f32 %v2286_v18, %v246_v8  ;;  %v4993_v8 = vld [vmem:[#allocation3 + $0xb0] ss:$8 sps:$4 sm:$0xff]  }
0x15c3   :  { %v2288_v46 = vpop.f32.mrf.mxu0  ;;  %v3986_v10 = vpop.eup %3985 }
0x15c4   :  { %2189 = vrot.lane.b32.xlu1 %v3986_v10, %s4256_s24  ;;  %v2294_v11 = vadd.f32 %v2288_v46, %v247_v12  ;;  %v3693_v60 = vmul.f32 -1.442695, %v2293_v47  ;;  %v4997_v47 = vld [vmem:[#allocation3 + $0xa4] ss:$8 sps:$4 sm:$0xff]  }
0x15c5   :  { %v2290_v44 = vpop.f32.mrf.mxu0 }
0x15c6   :  { %3987 = vtanh.f32 %v2294_v11  ;;  %v3694_v9 = vmul.f32 -1.442695, %v2294_v11  ;;  %v4963_v11 = vld [vmem:[#allocation3 + $0x34] ss:$8 sps:$4 sm:$0xff]  }
0x15c7   :  { %v2291_v39 = vpop.f32.mrf.mxu0  ;;  %3989 = vpow2.f32 %v3689_v41  ;;  %v4986_v41 = vld [vmem:[#allocation3] ss:$8 sps:$4 sm:$0xff]  }
0x15c8   :  { %3991 = vpow2.f32 %v3693_v60 }
0x15d3   :  { %v3988_v54 = vpop.eup %3987 }
0x15d4   :  { %2310 = vrot.lane.b32.xlu0 %v3988_v54, %s4256_s24  ;;  %v3990_v27 = vpop.eup %3989 }
0x15d5   :  { %v2180_v62 = vadd.f32 1.0, %v3990_v27  ;;  %v3992_v3 = vpop.eup %3991  ;;  %v5000_v27 = vld [vmem:[#allocation3 + $0xa0] ss:$8 sps:$4 sm:$0xff]  }
0x15d6   :  { %v2301_v30 = vadd.f32 1.0, %v3992_v3 }
0x15d7   :  { %3993 = vrcp.f32 %v2180_v62 }
0x15d8   :  { %3995 = vrcp.f32 %v2301_v30 }
0x15e4   :  { %v3994_v4 = vpop.eup %3993 }
0x15e5   :  { %v3996_v25 = vpop.eup %3995  ;;  %v2187_v50 = vmul.f32 %v3994_v4, %v4890_v6  ;;  %v135_v6 = vrot.slane %v4845_v59, %v78_v58 }
0x15e6   :  { %v2308_v57 = vmul.f32 %v3996_v25, %v4895_v45 }
0x1636   :  { %v2190_v14 = vpop.permute.xlu1 %2189 }
0x1637   :  { %v2192_v61 = vmul.f32 %v3994_v4, %v2190_v14 }
0x1639   :  { %2194 = vrot.lane.b32.xlu1 %v2192_v61, %s4256_s24 }
0x1646   :  { %v2311_v38 = vpop.permute.xlu0 %2310 }
0x1647   :  { %v2313_v49 = vmul.f32 %v3996_v25, %v2311_v38 }
0x1649   :  { %2315 = vrot.lane.b32.xlu0 %v2313_v49, %s4256_s24 }
0x16ab   :  { %v2195_v51 = vpop.permute.xlu1 %2194 }
0x16ac   :  { %v4942_v52 = vadd.f32 %v2195_v51, %v2187_v50 }
0x16ae   :  { %3997 = vtanh.f32 %v4942_v52 }
0x16bb   :  { %v3998_v53 = vpop.eup %3997  ;;  %v2316_v33 = vpop.permute.xlu0 %2315 }
0x16bc   :  { %2200 = vrot.lane.b32.xlu1 %v3998_v53, %s4256_s24  ;;  %v4947_v34 = vadd.f32 %v2316_v33, %v2308_v57 }
0x16be   :  { %3999 = vtanh.f32 %v4947_v34 }
0x16bf   :  { %4001 = vpow2.f32 %v3690_v36 }
0x16c0   :  { %137 = vbcast.lane.b32.xlu1 %v135_v6, 256  ;;  %4003 = vpow2.f32 %v3694_v9 }
0x16cb   :  { %v4000_v15 = vpop.eup %3999 }
0x16cc   :  { %2321 = vrot.lane.b32.xlu0 %v4000_v15, %s4256_s24  ;;  %v4002_v7 = vpop.eup %4001 }
0x16cd   :  { %v2181_v18 = vadd.f32 1.0, %v4002_v7  ;;  %v4004_v45 = vpop.eup %4003 }
0x16ce   :  { %v2302_v44 = vadd.f32 1.0, %v4004_v45 }
0x16cf   :  { %4005 = vrcp.f32 %v2181_v18 }
0x16d0   :  { %4007 = vrcp.f32 %v2302_v44 }
0x16dc   :  { %v4006_v12 = vpop.eup %4005 }
0x16dd   :  { %v4008_v58 = vpop.eup %4007 }
0x172e   :  { %v2201_v46 = vpop.permute.xlu1 %2200 }
0x172f   :  { %v2203_v10 = vmul.f32 %v4006_v12, %v2201_v46 }
0x1731   :  { %v2204_v39 = vpack.c.bf16 %v2203_v10, %v2203_v10 }
0x1733   :  { %3691 = vmatmul.mubr.msk.bf16.vlgmr.msra.gmra.mxu1 %vm343_vm0, %v2204_v39 }
0x1734   :  { %2338 = vmatpush1.bf16.msra.mxu1 %v4715_v42  ;;  %2361 = vmatprep.mubr.bf16.mxu1 %v4255_v0 }
0x1735   :  { %2339 = vmatprep.subr.bf16.mxu1 %v4719_v43  ;;  %v4967_v43 = vld [vmem:[#allocation3 + $0x30] ss:$8 sps:$4 sm:$0xff]  }
0x1738   :  { %2340 = vmatpush1.bf16.msra.mxu1 %v4722_v13  ;;  %v4971_v13 = vld [vmem:[#allocation3 + $0x24] ss:$8 sps:$4 sm:$0xff]  }
0x1739   :  { %2341 = vmatprep.subr.bf16.mxu1 %v4725_v20  ;;  %v4974_v20 = vld [vmem:[#allocation3 + $0x20] ss:$8 sps:$4 sm:$0xff]  }
0x173c   :  { %2342 = vmatpush1.bf16.msra.mxu1 %v4728_v1  ;;  %v4977_v1 = vld [vmem:[#allocation3 + $0x14] ss:$8 sps:$4 sm:$0xff]  }
0x173d   :  { %2343 = vmatprep.subr.bf16.mxu1 %v4731_v32  ;;  %v4980_v32 = vld [vmem:[#allocation3 + $0x10] ss:$8 sps:$4 sm:$0xff]  }
0x173e   :  { %v2322_v37 = vpop.permute.xlu0 %2321 }
0x173f   :  { %v2324_v42 = vmul.f32 %v4008_v58, %v2322_v37 }
0x1740   :  { %2344 = vmatpush1.bf16.msra.mxu1 %v4734_v21  ;;  %v4983_v21 = vld [vmem:[#allocation3 + $0x4] ss:$8 sps:$4 sm:$0xff]  }
0x1741   :  { %2458 = vmatprep.subr.bf16.mxu1 %v4963_v11  ;;  %v2325_v54 = vpack.c.bf16 %v2324_v42, %v2324_v42 }
0x1743   :  { %3695 = vmatmul.mubr.msk.bf16.vlgmr.msra.gmra.mxu1 %vm343_vm0, %v2325_v54 }
0x1744   :  { %2459 = vmatpush1.bf16.msra.mxu1 %v4967_v43  ;;  %2482 = vmatprep.mubr.bf16.mxu1 %v4255_v0 }
0x1745   :  { %2460 = vmatprep.subr.bf16.mxu1 %v4971_v13 }
0x1748   :  { %2461 = vmatpush1.bf16.msra.mxu1 %v4974_v20 }
0x1749   :  { %2462 = vmatprep.subr.bf16.mxu1 %v4977_v1 }
0x174c   :  { %2463 = vmatpush1.bf16.msra.mxu1 %v4980_v32 }
0x174d   :  { %2464 = vmatprep.subr.bf16.mxu1 %v4983_v21 }
0x1750   :  { %2465 = vmatpush1.bf16.msra.mxu1 %v4986_v41 }
0x1751   :  { %2612 = vmatprep.subr.bf16.mxu1 %v4989_v31 }
0x1753   :  { %3699 = vmatmul.mubr.msk.bf16.vlgmr.msra.gmra.mxu1 %vm343_vm0, %v2325_v54 }
0x1754   :  { %2613 = vmatpush1.bf16.msra.mxu1 %v4993_v8  ;;  %2636 = vmatprep.mubr.bf16.mxu1 %v4255_v0 }
0x1755   :  { %2614 = vmatprep.subr.bf16.mxu1 %v4997_v47 }
0x1758   :  { %2615 = vmatpush1.bf16.msra.mxu1 %v5000_v27 }
0x1759   :  { %2616 = vmatprep.subr.bf16.mxu1 %v4753_v40 }
0x175c   :  { %2617 = vmatpush1.bf16.msra.mxu1 %v4756_v26 }
0x175d   :  { %2618 = vmatprep.subr.bf16.mxu1 %v4759_v48  ;;  %v138_v48 = vpop.permute.xlu1 %137 }
0x175e   :  { %v205_v7 = vmul.f32 %v4342_v28, %v138_v48 }
0x1760   :  { %2619 = vmatpush1.bf16.msra.mxu1 %v4762_v17  ;;  %v206_v17 = vmul.f32 %v4327_v16, %v138_v48  ;;  %v248_v9 = vadd.f32 %v4345_v29, %v205_v7  ;;  %v5051_v7 = vld [vmem:[#allocation3 + $0x40] ss:$8 sps:$4 sm:$0xff]  }
0x1761   :  { %2733 = vmatprep.subr.bf16.mxu1 %v4765_v55 }
0x1762   :  { %v249_v55 = vadd.f32 %v4333_v19, %v206_v17 }
0x17f3   :  { %v2242_v60 = vpop.f32.mrf.mxu1 }
0x17f4   :  { %v2243_v14 = vadd.f32 %v2242_v60, %v4441_v23 }
0x17f5   :  { %v2244_v62 = vpop.f32.mrf.mxu1 }
0x17f6   :  { %v2245_v30 = vadd.f32 %v2244_v62, %v4444_v24 }
0x17f7   :  { %v2246_v3 = vpop.f32.mrf.mxu1 }
0x17f9   :  { %v2247_v4 = vpop.f32.mrf.mxu1 }
0x1803   :  { %v2363_v61 = vpop.f32.mrf.mxu1 }
0x1804   :  { %v2370_v25 = vadd.f32 %v2363_v61, %v2243_v14 }
0x1805   :  { %v2365_v38 = vpop.f32.mrf.mxu1 }
0x1806   :  { %v2371_v40 = vadd.f32 %v2365_v38, %v2245_v30  ;;  %v3696_v36 = vmul.f32 -1.442695, %v2370_v25 }
0x1807   :  { %v2367_v49 = vpop.f32.mrf.mxu1 }
0x1808   :  { %4009 = vtanh.f32 %v2371_v40  ;;  %v3697_v49 = vmul.f32 -1.442695, %v2371_v40  ;;  %v5039_v40 = vld [vmem:[#allocation3 + $0x60] ss:$8 sps:$4 sm:$0xff]  }
0x1809   :  { %v2368_v26 = vpop.f32.mrf.mxu1 }
0x1813   :  { %v2484_v50 = vpop.f32.mrf.mxu1 }
0x1814   :  { %v2491_v18 = vadd.f32 %v2484_v50, %v248_v9 }
0x1815   :  { %v2486_v51 = vpop.f32.mrf.mxu1  ;;  %v4010_v53 = vpop.eup %4009 }
0x1816   :  { %2387 = vrot.lane.b32.xlu0 %v4010_v53, %s4256_s24  ;;  %v2492_v33 = vadd.f32 %v2486_v51, %v249_v55  ;;  %v3700_v12 = vmul.f32 -1.442695, %v2491_v18 }
0x1817   :  { %v2488_v57 = vpop.f32.mrf.mxu1 }
0x1818   :  { %4011 = vtanh.f32 %v2492_v33  ;;  %v3701_v48 = vmul.f32 -1.442695, %v2492_v33  ;;  %v5042_v33 = vld [vmem:[#allocation3 + $0x54] ss:$8 sps:$4 sm:$0xff]  }
0x1819   :  { %v2489_v15 = vpop.f32.mrf.mxu1  ;;  %4013 = vpow2.f32 %v3696_v36  ;;  %v5048_v36 = vld [vmem:[#allocation3 + $0x44] ss:$8 sps:$4 sm:$0xff]  }
0x181a   :  { %4015 = vpow2.f32 %v3700_v12  ;;  %v5032_v15 = vld [vmem:[#allocation3 + $0x70] ss:$8 sps:$4 sm:$0xff]  }
0x1825   :  { %v4012_v6 = vpop.eup %4011 }
0x1826   :  { %2508 = vrot.lane.b32.xlu1 %v4012_v6, %s4256_s24  ;;  %v4014_v45 = vpop.eup %4013  ;;  %v5045_v6 = vld [vmem:[#allocation3 + $0x50] ss:$8 sps:$4 sm:$0xff]  }
0x1827   :  { %v2378_v46 = vadd.f32 1.0, %v4014_v45  ;;  %v4016_v10 = vpop.eup %4015 }
0x1828   :  { %v2499_v37 = vadd.f32 1.0, %v4016_v10  ;;  %v5073_v10 = vld [vmem:[#allocation3 + $0x90] ss:$8 sps:$4 sm:$0xff]  }
0x1829   :  { %4017 = vrcp.f32 %v2378_v46  ;;  %v5070_v46 = vld [vmem:[#allocation3 + $0x94] ss:$8 sps:$4 sm:$0xff]  }
0x182a   :  { %4019 = vrcp.f32 %v2499_v37 }
0x1836   :  { %v4018_v44 = vpop.eup %4017 }
0x1837   :  { %v4020_v42 = vpop.eup %4019  ;;  %v2385_v62 = vmul.f32 %v4018_v44, %v4942_v52  ;;  %v142_v52 = vrot.slane %v4845_v59, %v85_v35  ;;  %v5036_v35 = vld [vmem:[#allocation3 + $0x64] ss:$8 sps:$4 sm:$0xff]  }
0x1838   :  { %v2506_v61 = vmul.f32 %v4020_v42, %v4947_v34 }
0x1888   :  { %v2388_v39 = vpop.permute.xlu0 %2387 }
0x1889   :  { %v2390_v58 = vmul.f32 %v4018_v44, %v2388_v39  ;;  %v5076_v44 = vld [vmem:[#allocation3 + $0x84] ss:$8 sps:$4 sm:$0xff]   ;;  %v5079_v39 = vld [vmem:[#allocation3 + $0x80] ss:$8 sps:$4 sm:$0xff]  }
0x188b   :  { %2392 = vrot.lane.b32.xlu0 %v2390_v58, %s4256_s24  ;;  %v5082_v58 = vld [vmem:[#allocation3 + $0x74] ss:$8 sps:$4 sm:$0xff]  }
0x1898   :  { %v2509_v54 = vpop.permute.xlu1 %2508 }
0x1899   :  { %v2511_v60 = vmul.f32 %v4020_v42, %v2509_v54 }
0x189b   :  { %2513 = vrot.lane.b32.xlu1 %v2511_v60, %s4256_s24 }
0x18fd   :  { %v2393_v3 = vpop.permute.xlu0 %2392 }
0x18fe   :  { %v5019_v4 = vadd.f32 %v2393_v3, %v2385_v62 }
0x1900   :  { %4021 = vtanh.f32 %v5019_v4 }
0x190d   :  { %v4022_v14 = vpop.eup %4021  ;;  %v2514_v30 = vpop.permute.xlu1 %2513 }
0x190e   :  { %2398 = vrot.lane.b32.xlu0 %v4022_v14, %s4256_s24  ;;  %v5024_v25 = vadd.f32 %v2514_v30, %v2506_v61 }
0x1910   :  { %4023 = vtanh.f32 %v5024_v25 }
0x1911   :  { %4025 = vpow2.f32 %v3697_v49 }
0x1912   :  { %144 = vbcast.lane.b32.xlu0 %v142_v52, 256  ;;  %4027 = vpow2.f32 %v3701_v48 }
0x191d   :  { %v4024_v38 = vpop.eup %4023 }
0x191e   :  { %2519 = vrot.lane.b32.xlu1 %v4024_v38, %s4256_s24  ;;  %v4026_v26 = vpop.eup %4025 }
0x191f   :  { %v2379_v17 = vadd.f32 1.0, %v4026_v26  ;;  %v4028_v34 = vpop.eup %4027 }
0x1920   :  { %v2500_v53 = vadd.f32 1.0, %v4028_v34 }
0x1921   :  { %4029 = vrcp.f32 %v2379_v17 }
0x1922   :  { %4031 = vrcp.f32 %v2500_v53 }
0x192e   :  { %v4030_v50 = vpop.eup %4029 }
0x192f   :  { %v4032_v9 = vpop.eup %4031 }
0x1980   :  { %v2399_v55 = vpop.permute.xlu0 %2398 }
0x1981   :  { %v2401_v51 = vmul.f32 %v4030_v50, %v2399_v55 }
0x1983   :  { %v2402_v57 = vpack.c.bf16 %v2401_v51, %v2401_v51 }
0x1984   :  { %v145_v26 = vpop.permute.xlu0 %144 }
0x1985   :  { %3698 = vmatmul.mubr.msk.bf16.vlgmr.msra.gmra.mxu0 %vm343_vm0, %v2402_v57  ;;  %v208_v48 = vmul.f32 %v4327_v16, %v145_v26 }
0x1986   :  { %2536 = vmatpush1.bf16.msra.mxu0 %v5032_v15  ;;  %2559 = vmatprep.mubr.bf16.mxu0 %v4255_v0 }
0x1987   :  { %2537 = vmatprep.subr.bf16.mxu0 %v5036_v35  ;;  %v251_v34 = vadd.f32 %v4333_v19, %v208_v48 }
0x198a   :  { %2538 = vmatpush1.bf16.msra.mxu0 %v5039_v40 }
0x198b   :  { %2539 = vmatprep.subr.bf16.mxu0 %v5042_v33 }
0x198e   :  { %2540 = vmatpush1.bf16.msra.mxu0 %v5045_v6 }
0x198f   :  { %2541 = vmatprep.subr.bf16.mxu0 %v5048_v36 }
0x1990   :  { %v2520_v18 = vpop.permute.xlu1 %2519 }
0x1991   :  { %v2522_v45 = vmul.f32 %v4032_v9, %v2520_v18 }
0x1992   :  { %2542 = vmatpush1.bf16.msra.mxu0 %v5051_v7 }
0x1993   :  { %2656 = vmatprep.subr.bf16.mxu0 %v4963_v11  ;;  %v2523_v12 = vpack.c.bf16 %v2522_v45, %v2522_v45  ;;  %v207_v45 = vmul.f32 %v4342_v28, %v145_v26 }
0x1995   :  { %3702 = vmatmul.mubr.msk.bf16.vlgmr.msra.gmra.mxu0 %vm343_vm0, %v2523_v12 }
0x1996   :  { %2657 = vmatpush1.bf16.msra.mxu0 %v4967_v43  ;;  %2680 = vmatprep.mubr.bf16.mxu0 %v4255_v0 }
0x1997   :  { %2658 = vmatprep.subr.bf16.mxu0 %v4971_v13 }
0x199a   :  { %2659 = vmatpush1.bf16.msra.mxu0 %v4974_v20 }
0x199b   :  { %2660 = vmatprep.subr.bf16.mxu0 %v4977_v1 }
0x199e   :  { %2661 = vmatpush1.bf16.msra.mxu0 %v4980_v32 }
0x199f   :  { %2662 = vmatprep.subr.bf16.mxu0 %v4983_v21 }
0x19a2   :  { %2663 = vmatpush1.bf16.msra.mxu0 %v4986_v41 }
0x19a3   :  { %2810 = vmatprep.subr.bf16.mxu0 %v4989_v31 }
0x19a5   :  { %3706 = vmatmul.mubr.msk.bf16.vlgmr.msra.gmra.mxu0 %vm343_vm0, %v2523_v12  ;;  %v250_v12 = vadd.f32 %v4345_v29, %v207_v45 }
0x19a6   :  { %2811 = vmatpush1.bf16.msra.mxu0 %v4993_v8  ;;  %2834 = vmatprep.mubr.bf16.mxu0 %v4255_v0 }
0x19a7   :  { %2812 = vmatprep.subr.bf16.mxu0 %v4997_v47 }
0x19aa   :  { %2813 = vmatpush1.bf16.msra.mxu0 %v5000_v27 }
0x19ab   :  { %2814 = vmatprep.subr.bf16.mxu0 %v5070_v46 }
0x19ae   :  { %2815 = vmatpush1.bf16.msra.mxu0 %v5073_v10 }
0x19af   :  { %2816 = vmatprep.subr.bf16.mxu0 %v5076_v44 }
0x19b2   :  { %2817 = vmatpush1.bf16.msra.mxu0 %v5079_v39 }
0x19b3   :  { %2931 = vmatprep.subr.bf16.mxu0 %v5082_v58 }
0x1a45   :  { %v2440_v37 = vpop.f32.mrf.mxu0 }
0x1a46   :  { %v2441_v62 = vadd.f32 %v2440_v37, %v4441_v23 }
0x1a47   :  { %v2442_v42 = vpop.f32.mrf.mxu0 }
0x1a48   :  { %v2443_v14 = vadd.f32 %v2442_v42, %v4444_v24 }
0x1a49   :  { %v2444_v54 = vpop.f32.mrf.mxu0 }
0x1a4b   :  { %v2445_v60 = vpop.f32.mrf.mxu0 }
0x1a55   :  { %v2561_v3 = vpop.f32.mrf.mxu0 }
0x1a56   :  { %v2568_v61 = vadd.f32 %v2561_v3, %v2441_v62 }
0x1a57   :  { %v2563_v30 = vpop.f32.mrf.mxu0 }
0x1a58   :  { %v2569_v38 = vadd.f32 %v2563_v30, %v2443_v14  ;;  %v3703_v18 = vmul.f32 -1.442695, %v2568_v61 }
0x1a59   :  { %v2565_v52 = vpop.f32.mrf.mxu0 }
0x1a5a   :  { %4033 = vtanh.f32 %v2569_v38 }
0x1a5b   :  { %v2566_v49 = vpop.f32.mrf.mxu0 }
0x1a65   :  { %v2682_v17 = vpop.f32.mrf.mxu0 }
0x1a66   :  { %v2689_v37 = vadd.f32 %v2682_v17, %v250_v12 }
0x1a67   :  { %v2684_v50 = vpop.f32.mrf.mxu0  ;;  %v4034_v55 = vpop.eup %4033 }
0x1a68   :  { %2585 = vrot.lane.b32.xlu1 %v4034_v55, %s4256_s24  ;;  %v2690_v53 = vadd.f32 %v2684_v50, %v251_v34  ;;  %v3707_v54 = vmul.f32 -1.442695, %v2689_v37 }
0x1a69   :  { %v2686_v51 = vpop.f32.mrf.mxu0 }
0x1a6a   :  { %4035 = vtanh.f32 %v2690_v53  ;;  %v3708_v12 = vmul.f32 -1.442695, %v2690_v53 }
0x1a6b   :  { %v2687_v57 = vpop.f32.mrf.mxu0  ;;  %4037 = vpow2.f32 %v3703_v18  ;;  %v3704_v18 = vmul.f32 -1.442695, %v2569_v38 }
0x1a6c   :  { %4039 = vpow2.f32 %v3707_v54 }
0x1a77   :  { %v4036_v9 = vpop.eup %4035 }
0x1a78   :  { %2706 = vrot.lane.b32.xlu0 %v4036_v9, %s4256_s24  ;;  %v4038_v42 = vpop.eup %4037 }
0x1a79   :  { %v2576_v60 = vadd.f32 1.0, %v4038_v42  ;;  %v4040_v62 = vpop.eup %4039 }
0x1a7a   :  { %v2697_v52 = vadd.f32 1.0, %v4040_v62 }
0x1a7b   :  { %4041 = vrcp.f32 %v2576_v60 }
0x1a7c   :  { %4043 = vrcp.f32 %v2697_v52 }
0x1a88   :  { %v4042_v3 = vpop.eup %4041 }
0x1a89   :  { %v4044_v61 = vpop.eup %4043  ;;  %v2583_v26 = vmul.f32 %v4042_v3, %v5019_v4  ;;  %v149_v4 = vrot.slane %v4845_v59, %v92_v63 }
0x1a8a   :  { %v2704_v55 = vmul.f32 %v4044_v61, %v5024_v25 }
0x1ada   :  { %v2586_v14 = vpop.permute.xlu1 %2585 }
0x1adb   :  { %v2588_v30 = vmul.f32 %v4042_v3, %v2586_v14 }
0x1add   :  { %2590 = vrot.lane.b32.xlu1 %v2588_v30, %s4256_s24 }
0x1aea   :  { %v2707_v49 = vpop.permute.xlu0 %2706 }
0x1aeb   :  { %v2709_v48 = vmul.f32 %v4044_v61, %v2707_v49 }
0x1aed   :  { %2711 = vrot.lane.b32.xlu0 %v2709_v48, %s4256_s24 }
0x1b4f   :  { %v2591_v17 = vpop.permute.xlu1 %2590 }
0x1b50   :  { %v5096_v34 = vadd.f32 %v2591_v17, %v2583_v26 }
0x1b52   :  { %4045 = vtanh.f32 %v5096_v34 }
0x1b5f   :  { %v4046_v50 = vpop.eup %4045  ;;  %v2712_v51 = vpop.permute.xlu0 %2711 }
0x1b60   :  { %2596 = vrot.lane.b32.xlu1 %v4046_v50, %s4256_s24  ;;  %v5101_v57 = vadd.f32 %v2712_v51, %v2704_v55 }
0x1b62   :  { %4047 = vtanh.f32 %v5101_v57 }
0x1b63   :  { %4049 = vpow2.f32 %v3704_v18 }
0x1b64   :  { %151 = vbcast.lane.b32.xlu1 %v149_v4, 256  ;;  %4051 = vpow2.f32 %v3708_v12 }
0x1b6f   :  { %v4048_v9 = vpop.eup %4047 }
0x1b70   :  { %2717 = vrot.lane.b32.xlu0 %v4048_v9, %s4256_s24  ;;  %v4050_v45 = vpop.eup %4049 }
0x1b71   :  { %v2577_v37 = vadd.f32 1.0, %v4050_v45  ;;  %v4052_v25 = vpop.eup %4051 }
0x1b72   :  { %v2698_v62 = vadd.f32 1.0, %v4052_v25 }
0x1b73   :  { %4053 = vrcp.f32 %v2577_v37 }
0x1b74   :  { %4055 = vrcp.f32 %v2698_v62 }
0x1b80   :  { %v4054_v42 = vpop.eup %4053 }
0x1b81   :  { %v4056_v63 = vpop.eup %4055 }
0x1bd2   :  { %v2597_v54 = vpop.permute.xlu1 %2596 }
0x1bd3   :  { %v2599_v60 = vmul.f32 %v4054_v42, %v2597_v54 }
0x1bd5   :  { %v2600_v3 = vpack.c.bf16 %v2599_v60, %v2599_v60 }
0x1bd6   :  { %v152_v4 = vpop.permute.xlu1 %151 }
0x1bd7   :  { %3705 = vmatmul.mubr.msk.bf16.vlgmr.msra.gmra.mxu1 %vm343_vm0, %v2600_v3  ;;  %v210_v18 = vmul.f32 %v4327_v16, %v152_v4 }
0x1bd8   :  { %2734 = vmatpush1.bf16.msra.mxu1 %v5032_v15  ;;  %2757 = vmatprep.mubr.bf16.mxu1 %v4255_v0 }
0x1bd9   :  { %2735 = vmatprep.subr.bf16.mxu1 %v5036_v35  ;;  %v253_v12 = vadd.f32 %v4333_v19, %v210_v18 }
0x1bdc   :  { %2736 = vmatpush1.bf16.msra.mxu1 %v5039_v40 }
0x1bdd   :  { %2737 = vmatprep.subr.bf16.mxu1 %v5042_v33 }
0x1be0   :  { %2738 = vmatpush1.bf16.msra.mxu1 %v5045_v6 }
0x1be1   :  { %2739 = vmatprep.subr.bf16.mxu1 %v5048_v36 }
0x1be2   :  { %v2718_v59 = vpop.permute.xlu0 %2717 }
0x1be3   :  { %v2720_v38 = vmul.f32 %v4056_v63, %v2718_v59  ;;  %v209_v63 = vmul.f32 %v4342_v28, %v152_v4 }
0x1be4   :  { %2740 = vmatpush1.bf16.msra.mxu1 %v5051_v7 }
0x1be5   :  { %2854 = vmatprep.subr.bf16.mxu1 %v4963_v11  ;;  %v2721_v53 = vpack.c.bf16 %v2720_v38, %v2720_v38  ;;  %v252_v59 = vadd.f32 %v4345_v29, %v209_v63 }
0x1be7   :  { %3709 = vmatmul.mubr.msk.bf16.vlgmr.msra.gmra.mxu1 %vm343_vm0, %v2721_v53 }
0x1be8   :  { %2855 = vmatpush1.bf16.msra.mxu1 %v4967_v43  ;;  %2878 = vmatprep.mubr.bf16.mxu1 %v4255_v0 }
0x1be9   :  { %2856 = vmatprep.subr.bf16.mxu1 %v4971_v13 }
0x1bec   :  { %2857 = vmatpush1.bf16.msra.mxu1 %v4974_v20 }
0x1bed   :  { %2858 = vmatprep.subr.bf16.mxu1 %v4977_v1 }
0x1bf0   :  { %2859 = vmatpush1.bf16.msra.mxu1 %v4980_v32 }
0x1bf1   :  { %2860 = vmatprep.subr.bf16.mxu1 %v4983_v21 }
0x1bf4   :  { %2861 = vmatpush1.bf16.msra.mxu1 %v4986_v41 }
0x1bf5   :  { %3008 = vmatprep.subr.bf16.mxu1 %v4989_v31 }
0x1bf7   :  { %3713 = vmatmul.mubr.msk.bf16.vlgmr.msra.gmra.mxu1 %vm343_vm0, %v2721_v53 }
0x1bf8   :  { %3009 = vmatpush1.bf16.msra.mxu1 %v4993_v8  ;;  %3032 = vmatprep.mubr.bf16.mxu1 %v4255_v0 }
0x1bf9   :  { %3010 = vmatprep.subr.bf16.mxu1 %v4997_v47 }
0x1bfc   :  { %3011 = vmatpush1.bf16.msra.mxu1 %v5000_v27 }
0x1bfd   :  { %3012 = vmatprep.subr.bf16.mxu1 %v5070_v46 }
0x1c00   :  { %3013 = vmatpush1.bf16.msra.mxu1 %v5073_v10 }
0x1c01   :  { %3014 = vmatprep.subr.bf16.mxu1 %v5076_v44 }
0x1c04   :  { %3015 = vmatpush1.bf16.msra.mxu1 %v5079_v39 }
0x1c05   :  { %3129 = vmatprep.subr.bf16.mxu1 %v5082_v58 }
0x1c97   :  { %v2638_v14 = vpop.f32.mrf.mxu1 }
0x1c98   :  { %v2639_v49 = vadd.f32 %v2638_v14, %v4441_v23 }
0x1c99   :  { %v2640_v30 = vpop.f32.mrf.mxu1 }
0x1c9a   :  { %v2641_v26 = vadd.f32 %v2640_v30, %v4444_v24 }
0x1c9b   :  { %v2642_v52 = vpop.f32.mrf.mxu1 }
0x1c9d   :  { %v2643_v61 = vpop.f32.mrf.mxu1 }
0x1ca7   :  { %v2759_v48 = vpop.f32.mrf.mxu1 }
0x1ca8   :  { %v2766_v17 = vadd.f32 %v2759_v48, %v2639_v49 }
0x1ca9   :  { %v2761_v50 = vpop.f32.mrf.mxu1 }
0x1caa   :  { %v2767_v55 = vadd.f32 %v2761_v50, %v2641_v26  ;;  %v3710_v3 = vmul.f32 -1.442695, %v2766_v17 }
0x1cab   :  { %v2763_v51 = vpop.f32.mrf.mxu1 }
0x1cac   :  { %4057 = vtanh.f32 %v2767_v55 }
0x1cad   :  { %v2764_v9 = vpop.f32.mrf.mxu1 }
0x1cb7   :  { %v2880_v45 = vpop.f32.mrf.mxu1 }
0x1cb8   :  { %v2887_v38 = vadd.f32 %v2880_v45, %v252_v59 }
0x1cb9   :  { %v2882_v37 = vpop.f32.mrf.mxu1  ;;  %v4058_v25 = vpop.eup %4057 }
0x1cba   :  { %2783 = vrot.lane.b32.xlu0 %v4058_v25, %s4256_s24  ;;  %v2888_v54 = vadd.f32 %v2882_v37, %v253_v12  ;;  %v3714_v14 = vmul.f32 -1.442695, %v2887_v38 }
0x1cbb   :  { %v2884_v42 = vpop.f32.mrf.mxu1 }
0x1cbc   :  { %4059 = vtanh.f32 %v2888_v54 }
0x1cbd   :  { %v2885_v60 = vpop.f32.mrf.mxu1  ;;  %4061 = vpow2.f32 %v3710_v3  ;;  %v3715_v3 = vmul.f32 -1.442695, %v2888_v54 }
0x1cbe   :  { %4063 = vpow2.f32 %v3714_v14 }
0x1cc9   :  { %v4060_v62 = vpop.eup %4059 }
0x1cca   :  { %2904 = vrot.lane.b32.xlu1 %v4060_v62, %s4256_s24  ;;  %v4062_v53 = vpop.eup %4061  ;;  %v3711_v62 = vmul.f32 -1.442695, %v2767_v55 }
0x1ccb   :  { %v2774_v30 = vadd.f32 1.0, %v4062_v53  ;;  %v4064_v52 = vpop.eup %4063 }
0x1ccc   :  { %v2895_v26 = vadd.f32 1.0, %v4064_v52 }
0x1ccd   :  { %4065 = vrcp.f32 %v2774_v30 }
0x1cce   :  { %4067 = vrcp.f32 %v2895_v26 }
0x1cda   :  { %v4066_v61 = vpop.eup %4065 }
0x1cdb   :  { %v4068_v17 = vpop.eup %4067  ;;  %v2781_v9 = vmul.f32 %v4066_v61, %v5096_v34  ;;  %v5161_v34 = vld [vmem:[%s5320_s0 + $0x8] sm:$0xff] }
0x1cdc   :  { %v2902_v12 = vmul.f32 %v4068_v17, %v5101_v57  ;;  %v156_v60 = vrot.slane %v5161_v34, %v99_v22 }
0x1d2c   :  { %v2784_v49 = vpop.permute.xlu0 %2783 }
0x1d2d   :  { %v2786_v48 = vmul.f32 %v4066_v61, %v2784_v49 }
0x1d2f   :  { %2788 = vrot.lane.b32.xlu0 %v2786_v48, %s4256_s24 }
0x1d3c   :  { %v2905_v50 = vpop.permute.xlu1 %2904 }
0x1d3d   :  { %v2907_v51 = vmul.f32 %v4068_v17, %v2905_v50 }
0x1d3f   :  { %2909 = vrot.lane.b32.xlu1 %v2907_v51, %s4256_s24 }
0x1da1   :  { %v2789_v4 = vpop.permute.xlu0 %2788 }
0x1da2   :  { %v5149_v18 = vadd.f32 %v2789_v4, %v2781_v9 }
0x1da4   :  { %4069 = vtanh.f32 %v5149_v18 }
0x1db1   :  { %v4070_v45 = vpop.eup %4069  ;;  %v2910_v37 = vpop.permute.xlu1 %2909 }
0x1db2   :  { %2794 = vrot.lane.b32.xlu0 %v4070_v45, %s4256_s24  ;;  %v5154_v25 = vadd.f32 %v2910_v37, %v2902_v12 }
0x1db4   :  { %4071 = vtanh.f32 %v5154_v25 }
0x1db5   :  { %4073 = vpow2.f32 %v3711_v62 }
0x1db6   :  { %158 = vbcast.lane.b32.xlu0 %v156_v60, 256  ;;  %4075 = vpow2.f32 %v3715_v3 }
0x1dc1   :  { %v4072_v42 = vpop.eup %4071 }
0x1dc2   :  { %2915 = vrot.lane.b32.xlu1 %v4072_v42, %s4256_s24  ;;  %v4074_v57 = vpop.eup %4073 }
0x1dc3   :  { %v2775_v63 = vadd.f32 1.0, %v4074_v57  ;;  %v4076_v59 = vpop.eup %4075 }
0x1dc4   :  { %v2896_v30 = vadd.f32 1.0, %v4076_v59 }
0x1dc5   :  { %4077 = vrcp.f32 %v2775_v63 }
0x1dc6   :  { %4079 = vrcp.f32 %v2896_v30 }
0x1dd2   :  { %v4078_v38 = vpop.eup %4077 }
0x1dd3   :  { %v4080_v22 = vpop.eup %4079 }
0x1e24   :  { %v2795_v53 = vpop.permute.xlu0 %2794 }
0x1e25   :  { %v2797_v14 = vmul.f32 %v4078_v38, %v2795_v53 }
0x1e27   :  { %v2798_v52 = vpack.c.bf16 %v2797_v14, %v2797_v14 }
0x1e28   :  { %v159_v60 = vpop.permute.xlu0 %158 }
0x1e29   :  { %3712 = vmatmul.mubr.msk.bf16.vlgmr.msra.gmra.mxu0 %vm343_vm0, %v2798_v52  ;;  %v212_v62 = vmul.f32 %v4327_v16, %v159_v60 }
0x1e2a   :  { %2932 = vmatpush1.bf16.msra.mxu0 %v5032_v15  ;;  %2955 = vmatprep.mubr.bf16.mxu0 %v4255_v0 }
0x1e2b   :  { %2933 = vmatprep.subr.bf16.mxu0 %v5036_v35  ;;  %v255_v3 = vadd.f32 %v4333_v19, %v212_v62 }
0x1e2e   :  { %2934 = vmatpush1.bf16.msra.mxu0 %v5039_v40 }
0x1e2f   :  { %2935 = vmatprep.subr.bf16.mxu0 %v5042_v33 }
0x1e32   :  { %2936 = vmatpush1.bf16.msra.mxu0 %v5045_v6 }
0x1e33   :  { %2937 = vmatprep.subr.bf16.mxu0 %v5048_v36 }
0x1e34   :  { %v2916_v55 = vpop.permute.xlu1 %2915 }
0x1e35   :  { %v2918_v54 = vmul.f32 %v4080_v22, %v2916_v55  ;;  %v211_v22 = vmul.f32 %v4342_v28, %v159_v60 }
0x1e36   :  { %2938 = vmatpush1.bf16.msra.mxu0 %v5051_v7 }
0x1e37   :  { %3052 = vmatprep.subr.bf16.mxu0 %v4963_v11  ;;  %v2919_v61 = vpack.c.bf16 %v2918_v54, %v2918_v54  ;;  %v254_v55 = vadd.f32 %v4345_v29, %v211_v22 }
0x1e39   :  { %3716 = vmatmul.mubr.msk.bf16.vlgmr.msra.gmra.mxu0 %vm343_vm0, %v2919_v61 }
0x1e3a   :  { %3053 = vmatpush1.bf16.msra.mxu0 %v4967_v43  ;;  %3076 = vmatprep.mubr.bf16.mxu0 %v4255_v0 }
0x1e3b   :  { %3054 = vmatprep.subr.bf16.mxu0 %v4971_v13 }
0x1e3e   :  { %3055 = vmatpush1.bf16.msra.mxu0 %v4974_v20 }
0x1e3f   :  { %3056 = vmatprep.subr.bf16.mxu0 %v4977_v1 }
0x1e42   :  { %3057 = vmatpush1.bf16.msra.mxu0 %v4980_v32 }
0x1e43   :  { %3058 = vmatprep.subr.bf16.mxu0 %v4983_v21 }
0x1e46   :  { %3059 = vmatpush1.bf16.msra.mxu0 %v4986_v41 }
0x1e47   :  { %3206 = vmatprep.subr.bf16.mxu0 %v4989_v31 }
0x1e49   :  { %3720 = vmatmul.mubr.msk.bf16.vlgmr.msra.gmra.mxu0 %vm343_vm0, %v2919_v61 }
0x1e4a   :  { %3207 = vmatpush1.bf16.msra.mxu0 %v4993_v8  ;;  %3230 = vmatprep.mubr.bf16.mxu0 %v4255_v0 }
0x1e4b   :  { %3208 = vmatprep.subr.bf16.mxu0 %v4997_v47 }
0x1e4e   :  { %3209 = vmatpush1.bf16.msra.mxu0 %v5000_v27 }
0x1e4f   :  { %3210 = vmatprep.subr.bf16.mxu0 %v5070_v46 }
0x1e52   :  { %3211 = vmatpush1.bf16.msra.mxu0 %v5073_v10 }
0x1e53   :  { %3212 = vmatprep.subr.bf16.mxu0 %v5076_v44 }
0x1e56   :  { %3213 = vmatpush1.bf16.msra.mxu0 %v5079_v39 }
0x1e57   :  { %3327 = vmatprep.subr.bf16.mxu0 %v5082_v58 }
0x1ee9   :  { %v2836_v49 = vpop.f32.mrf.mxu0 }
0x1eea   :  { %v2837_v50 = vadd.f32 %v2836_v49, %v4441_v23 }
0x1eeb   :  { %v2838_v48 = vpop.f32.mrf.mxu0 }
0x1eec   :  { %v2839_v9 = vadd.f32 %v2838_v48, %v4444_v24 }
0x1eed   :  { %v2840_v26 = vpop.f32.mrf.mxu0 }
0x1eef   :  { %v2841_v17 = vpop.f32.mrf.mxu0 }
0x1ef9   :  { %v2957_v51 = vpop.f32.mrf.mxu0 }
0x1efa   :  { %v2964_v4 = vadd.f32 %v2957_v51, %v2837_v50 }
0x1efb   :  { %v2959_v45 = vpop.f32.mrf.mxu0 }
0x1efc   :  { %v2965_v12 = vadd.f32 %v2959_v45, %v2839_v9  ;;  %v3717_v52 = vmul.f32 -1.442695, %v2964_v4 }
0x1efd   :  { %v2961_v37 = vpop.f32.mrf.mxu0 }
0x1efe   :  { %4081 = vtanh.f32 %v2965_v12 }
0x1eff   :  { %v2962_v42 = vpop.f32.mrf.mxu0 }
0x1f09   :  { %v3078_v57 = vpop.f32.mrf.mxu0 }
0x1f0a   :  { %v3085_v54 = vadd.f32 %v3078_v57, %v254_v55 }
0x1f0b   :  { %v3080_v63 = vpop.f32.mrf.mxu0  ;;  %v4082_v59 = vpop.eup %4081 }
0x1f0c   :  { %2981 = vrot.lane.b32.xlu1 %v4082_v59, %s4256_s24  ;;  %v3086_v53 = vadd.f32 %v3080_v63, %v255_v3  ;;  %v3721_v49 = vmul.f32 -1.442695, %v3085_v54 }
0x1f0d   :  { %v3082_v38 = vpop.f32.mrf.mxu0 }
0x1f0e   :  { %4083 = vtanh.f32 %v3086_v53 }
0x1f0f   :  { %v3083_v14 = vpop.f32.mrf.mxu0  ;;  %4085 = vpow2.f32 %v3717_v52  ;;  %v3722_v52 = vmul.f32 -1.442695, %v3086_v53 }
0x1f10   :  { %4087 = vpow2.f32 %v3721_v49  ;;  %v3718_v14 = vmul.f32 -1.442695, %v2965_v12 }
0x1f1b   :  { %v4084_v30 = vpop.eup %4083 }
0x1f1c   :  { %3102 = vrot.lane.b32.xlu0 %v4084_v30, %s4256_s24  ;;  %v4086_v61 = vpop.eup %4085 }
0x1f1d   :  { %v2972_v48 = vadd.f32 1.0, %v4086_v61  ;;  %v4088_v26 = vpop.eup %4087 }
0x1f1e   :  { %v3093_v9 = vadd.f32 1.0, %v4088_v26 }
0x1f1f   :  { %4089 = vrcp.f32 %v2972_v48 }
0x1f20   :  { %4091 = vrcp.f32 %v3093_v9 }
0x1f2c   :  { %v4090_v17 = vpop.eup %4089 }
0x1f2d   :  { %v4092_v4 = vpop.eup %4091  ;;  %v2979_v42 = vmul.f32 %v4090_v17, %v5149_v18  ;;  %v163_v18 = vrot.slane %v5161_v34, %v106_v5 }
0x1f2e   :  { %v3100_v3 = vmul.f32 %v4092_v4, %v5154_v25 }
0x1f7e   :  { %v2982_v50 = vpop.permute.xlu1 %2981 }
0x1f7f   :  { %v2984_v51 = vmul.f32 %v4090_v17, %v2982_v50 }
0x1f81   :  { %2986 = vrot.lane.b32.xlu1 %v2984_v51, %s4256_s24 }
0x1f8e   :  { %v3103_v45 = vpop.permute.xlu0 %3102 }
0x1f8f   :  { %v3105_v37 = vmul.f32 %v4092_v4, %v3103_v45 }
0x1f91   :  { %3107 = vrot.lane.b32.xlu0 %v3105_v37, %s4256_s24 }
0x1ff3   :  { %v2987_v60 = vpop.permute.xlu1 %2986 }
0x1ff4   :  { %v5207_v62 = vadd.f32 %v2987_v60, %v2979_v42 }
0x1ff6   :  { %4093 = vtanh.f32 %v5207_v62 }
0x2003   :  { %v4094_v57 = vpop.eup %4093  ;;  %v3108_v63 = vpop.permute.xlu0 %3107 }
0x2004   :  { %2992 = vrot.lane.b32.xlu1 %v4094_v57, %s4256_s24  ;;  %v5212_v59 = vadd.f32 %v3108_v63, %v3100_v3 }
0x2006   :  { %4095 = vtanh.f32 %v5212_v59 }
0x2007   :  { %4097 = vpow2.f32 %v3718_v14 }
0x2008   :  { %165 = vbcast.lane.b32.xlu1 %v163_v18, 256  ;;  %4099 = vpow2.f32 %v3722_v52 }
0x2013   :  { %v4096_v38 = vpop.eup %4095 }
0x2014   :  { %3113 = vrot.lane.b32.xlu0 %v4096_v38, %s4256_s24  ;;  %v4098_v30 = vpop.eup %4097 }
0x2015   :  { %v2973_v22 = vadd.f32 1.0, %v4098_v30  ;;  %v4100_v25 = vpop.eup %4099 }
0x2016   :  { %v3094_v49 = vadd.f32 1.0, %v4100_v25 }
0x2017   :  { %4101 = vrcp.f32 %v2973_v22 }
0x2018   :  { %4103 = vrcp.f32 %v3094_v49 }
0x2024   :  { %v4102_v55 = vpop.eup %4101 }
0x2025   :  { %v4104_v5 = vpop.eup %4103 }
0x2076   :  { %v2993_v54 = vpop.permute.xlu1 %2992 }
0x2077   :  { %v2995_v61 = vmul.f32 %v4102_v55, %v2993_v54 }
0x2079   :  { %v2996_v48 = vpack.c.bf16 %v2995_v61, %v2995_v61 }
0x207b   :  { %3719 = vmatmul.mubr.msk.bf16.vlgmr.msra.gmra.mxu1 %vm343_vm0, %v2996_v48 }
0x207c   :  { %3130 = vmatpush1.bf16.msra.mxu1 %v5032_v15  ;;  %3153 = vmatprep.mubr.bf16.mxu1 %v4255_v0 }
0x207d   :  { %3131 = vmatprep.subr.bf16.mxu1 %v5036_v35 }
0x2080   :  { %3132 = vmatpush1.bf16.msra.mxu1 %v5039_v40 }
0x2081   :  { %3133 = vmatprep.subr.bf16.mxu1 %v5042_v33 }
0x2084   :  { %3134 = vmatpush1.bf16.msra.mxu1 %v5045_v6 }
0x2085   :  { %3135 = vmatprep.subr.bf16.mxu1 %v5048_v36 }
0x2086   :  { %v3114_v12 = vpop.permute.xlu0 %3113 }
0x2087   :  { %v3116_v53 = vmul.f32 %v4104_v5, %v3114_v12 }
0x2088   :  { %3136 = vmatpush1.bf16.msra.mxu1 %v5051_v7 }
0x2089   :  { %3250 = vmatprep.subr.bf16.mxu1 %v4963_v11  ;;  %v3117_v26 = vpack.c.bf16 %v3116_v53, %v3116_v53 }
0x208b   :  { %3723 = vmatmul.mubr.msk.bf16.vlgmr.msra.gmra.mxu1 %vm343_vm0, %v3117_v26 }
0x208c   :  { %3251 = vmatpush1.bf16.msra.mxu1 %v4967_v43  ;;  %3274 = vmatprep.mubr.bf16.mxu1 %v4255_v0 }
0x208d   :  { %3252 = vmatprep.subr.bf16.mxu1 %v4971_v13 }
0x2090   :  { %3253 = vmatpush1.bf16.msra.mxu1 %v4974_v20 }
0x2091   :  { %3254 = vmatprep.subr.bf16.mxu1 %v4977_v1 }
0x2094   :  { %3255 = vmatpush1.bf16.msra.mxu1 %v4980_v32 }
0x2095   :  { %3256 = vmatprep.subr.bf16.mxu1 %v4983_v21 }
0x2098   :  { %3257 = vmatpush1.bf16.msra.mxu1 %v4986_v41 }
0x2099   :  { %3404 = vmatprep.subr.bf16.mxu1 %v4989_v31 }
0x209b   :  { %3727 = vmatmul.mubr.msk.bf16.vlgmr.msra.gmra.mxu1 %vm343_vm0, %v3117_v26 }
0x209c   :  { %3405 = vmatpush1.bf16.msra.mxu1 %v4993_v8  ;;  %3428 = vmatprep.mubr.bf16.mxu1 %v4255_v0 }
0x209d   :  { %3406 = vmatprep.subr.bf16.mxu1 %v4997_v47 }
0x20a0   :  { %3407 = vmatpush1.bf16.msra.mxu1 %v5000_v27 }
0x20a1   :  { %3408 = vmatprep.subr.bf16.mxu1 %v5070_v46  ;;  %v166_v46 = vpop.permute.xlu1 %165 }
0x20a2   :  { %v213_v37 = vmul.f32 %v4342_v28, %v166_v46 }
0x20a4   :  { %3409 = vmatpush1.bf16.msra.mxu1 %v5073_v10  ;;  %v214_v10 = vmul.f32 %v4327_v16, %v166_v46  ;;  %v256_v42 = vadd.f32 %v4345_v29, %v213_v37 }
0x20a5   :  { %3410 = vmatprep.subr.bf16.mxu1 %v5076_v44 }
0x20a8   :  { %3411 = vmatpush1.bf16.msra.mxu1 %v5079_v39  ;;  %v257_v39 = vadd.f32 %v4333_v19, %v214_v10 }
0x20a9   :  { %3525 = vmatprep.subr.bf16.mxu1 %v5082_v58 }
0x213b   :  { %v3034_v11 = vpop.f32.mrf.mxu1 }
0x213c   :  { %v3035_v1 = vadd.f32 %v3034_v11, %v4441_v23 }
0x213d   :  { %v3036_v43 = vpop.f32.mrf.mxu1 }
0x213e   :  { %v3037_v21 = vadd.f32 %v3036_v43, %v4444_v24 }
0x213f   :  { %v3038_v13 = vpop.f32.mrf.mxu1 }
0x2141   :  { %v3039_v20 = vpop.f32.mrf.mxu1 }
0x214b   :  { %v3155_v32 = vpop.f32.mrf.mxu1 }
0x214c   :  { %v3162_v41 = vadd.f32 %v3155_v32, %v3035_v1 }
0x214d   :  { %v3157_v31 = vpop.f32.mrf.mxu1 }
0x214e   :  { %v3163_v8 = vadd.f32 %v3157_v31, %v3037_v21  ;;  %v3724_v45 = vmul.f32 -1.442695, %v3162_v41 }
0x214f   :  { %v3159_v47 = vpop.f32.mrf.mxu1 }
0x2150   :  { %4105 = vtanh.f32 %v3163_v8  ;;  %v3725_v11 = vmul.f32 -1.442695, %v3163_v8  ;;  %v4216_v47 = vld [vmem:[#allocation3 + $0x30] ss:$8 sps:$4 sm:$0xff]  }
0x2151   :  { %v3160_v27 = vpop.f32.mrf.mxu1 }
0x215b   :  { %v3276_v44 = vpop.f32.mrf.mxu1 }
0x215c   :  { %v3283_v60 = vadd.f32 %v3276_v44, %v256_v42 }
0x215d   :  { %v3278_v58 = vpop.f32.mrf.mxu1  ;;  %v4106_v17 = vpop.eup %4105 }
0x215e   :  { %3179 = vrot.lane.b32.xlu0 %v4106_v17, %s4256_s24  ;;  %v3284_v51 = vadd.f32 %v3278_v58, %v257_v39  ;;  %v3728_v3 = vmul.f32 -1.442695, %v3283_v60 }
0x215f   :  { %v3280_v50 = vpop.f32.mrf.mxu1 }
0x2160   :  { %4107 = vtanh.f32 %v3284_v51  ;;  %v3729_v13 = vmul.f32 -1.442695, %v3284_v51 }
0x2161   :  { %v3281_v9 = vpop.f32.mrf.mxu1  ;;  %4109 = vpow2.f32 %v3724_v45 }
0x2162   :  { %4111 = vpow2.f32 %v3728_v3 }
0x216d   :  { %v4108_v4 = vpop.eup %4107 }
0x216e   :  { %3300 = vrot.lane.b32.xlu1 %v4108_v4, %s4256_s24  ;;  %v4110_v57 = vpop.eup %4109 }
0x216f   :  { %v3170_v63 = vadd.f32 1.0, %v4110_v57  ;;  %v4112_v38 = vpop.eup %4111 }
0x2170   :  { %v3291_v52 = vadd.f32 1.0, %v4112_v38 }
0x2171   :  { %4113 = vrcp.f32 %v3170_v63 }
0x2172   :  { %4115 = vrcp.f32 %v3291_v52 }
0x217e   :  { %v4114_v18 = vpop.eup %4113 }
0x217f   :  { %v4116_v22 = vpop.eup %4115  ;;  %v3177_v54 = vmul.f32 %v4114_v18, %v5207_v62  ;;  %v170_v62 = vrot.slane %v5161_v34, %v113_v56  ;;  %v4215_v34 = vld [vmem:[#allocation3 + $0x34] ss:$8 sps:$4 sm:$0xff]  }
0x2180   :  { %v3298_v5 = vmul.f32 %v4116_v22, %v5212_v59 }
0x21d0   :  { %v3180_v14 = vpop.permute.xlu0 %3179 }
0x21d1   :  { %v3182_v30 = vmul.f32 %v4114_v18, %v3180_v14 }
0x21d3   :  { %3184 = vrot.lane.b32.xlu0 %v3182_v30, %s4256_s24 }
0x21e0   :  { %v3301_v25 = vpop.permute.xlu1 %3300 }
0x21e1   :  { %v3303_v55 = vmul.f32 %v4116_v22, %v3301_v25 }
0x21e3   :  { %3305 = vrot.lane.b32.xlu1 %v3303_v55, %s4256_s24 }
0x2245   :  { %v3185_v61 = vpop.permute.xlu0 %3184 }
0x2246   :  { %v5260_v49 = vadd.f32 %v3185_v61, %v3177_v54 }
0x2248   :  { %4117 = vtanh.f32 %v5260_v49 }
0x2255   :  { %v4118_v48 = vpop.eup %4117  ;;  %v3306_v12 = vpop.permute.xlu1 %3305 }
0x2256   :  { %3190 = vrot.lane.b32.xlu0 %v4118_v48, %s4256_s24  ;;  %v5265_v53 = vadd.f32 %v3306_v12, %v3298_v5 }
0x2258   :  { %4119 = vtanh.f32 %v5265_v53 }
0x2259   :  { %4121 = vpow2.f32 %v3725_v11 }
0x225a   :  { %172 = vbcast.lane.b32.xlu0 %v170_v62, 256  ;;  %4123 = vpow2.f32 %v3729_v13 }
0x2265   :  { %v4120_v26 = vpop.eup %4119 }
0x2266   :  { %3311 = vrot.lane.b32.xlu1 %v4120_v26, %s4256_s24  ;;  %v4122_v43 = vpop.eup %4121 }
0x2267   :  { %v3171_v20 = vadd.f32 1.0, %v4122_v43  ;;  %v4124_v59 = vpop.eup %4123 }
0x2268   :  { %v3292_v41 = vadd.f32 1.0, %v4124_v59 }
0x2269   :  { %4125 = vrcp.f32 %v3171_v20 }
0x226a   :  { %4127 = vrcp.f32 %v3292_v41 }
0x2276   :  { %v4126_v1 = vpop.eup %4125 }
0x2277   :  { %v4128_v2 = vpop.eup %4127 }
0x22c8   :  { %v3191_v32 = vpop.permute.xlu0 %3190 }
0x22c9   :  { %v3193_v21 = vmul.f32 %v4126_v1, %v3191_v32 }
0x22cb   :  { %v3194_v31 = vpack.c.bf16 %v3193_v21, %v3193_v21 }
0x22cc   :  { %v173_v37 = vpop.permute.xlu0 %172 }
0x22cd   :  { %3726 = vmatmul.mubr.msk.bf16.vlgmr.msra.gmra.mxu0 %vm343_vm0, %v3194_v31  ;;  %v216_v42 = vmul.f32 %v4327_v16, %v173_v37  ;;  %v215_v22 = vmul.f32 %v4342_v28, %v173_v37 }
0x22ce   :  { %3328 = vmatpush1.bf16.msra.mxu0 %v5032_v15  ;;  %3351 = vmatprep.mubr.bf16.mxu0 %v4255_v0 }
0x22cf   :  { %3329 = vmatprep.subr.bf16.mxu0 %v5036_v35  ;;  %v4217_v35 = vld [vmem:[#allocation3 + $0x24] ss:$8 sps:$4 sm:$0xff]   ;;  %v259_v57 = vadd.f32 %v4333_v19, %v216_v42  ;;  %v258_v16 = vadd.f32 %v4345_v29, %v215_v22 }
0x22d2   :  { %3330 = vmatpush1.bf16.msra.mxu0 %v5039_v40  ;;  %v4218_v40 = vld [vmem:[#allocation3 + $0x20] ss:$8 sps:$4 sm:$0xff]  }
0x22d3   :  { %3331 = vmatprep.subr.bf16.mxu0 %v5042_v33  ;;  %v4219_v33 = vld [vmem:[#allocation3 + $0x14] ss:$8 sps:$4 sm:$0xff]  }
0x22d6   :  { %3332 = vmatpush1.bf16.msra.mxu0 %v5045_v6  ;;  %v4220_v6 = vld [vmem:[#allocation3 + $0x10] ss:$8 sps:$4 sm:$0xff]  }
0x22d7   :  { %3333 = vmatprep.subr.bf16.mxu0 %v5048_v36  ;;  %v4221_v36 = vld [vmem:[#allocation3 + $0x4] ss:$8 sps:$4 sm:$0xff]  }
0x22d8   :  { %v3312_v56 = vpop.permute.xlu1 %3311 }
0x22d9   :  { %v3314_v8 = vmul.f32 %v4128_v2, %v3312_v56 }
0x22da   :  { %3334 = vmatpush1.bf16.msra.mxu0 %v5051_v7  ;;  %v4222_v7 = vld [vmem:[#allocation3] ss:$8 sps:$4 sm:$0xff]  }
0x22db   :  { %3448 = vmatprep.subr.bf16.mxu0 %v4215_v34  ;;  %v3315_v15 = vpack.c.bf16 %v3314_v8, %v3314_v8 }
0x22dd   :  { %3730 = vmatmul.mubr.msk.bf16.vlgmr.msra.gmra.mxu0 %vm343_vm0, %v3315_v15 }
0x22de   :  { %3449 = vmatpush1.bf16.msra.mxu0 %v4216_v47  ;;  %3472 = vmatprep.mubr.bf16.mxu0 %v4255_v0 }
0x22df   :  { %3450 = vmatprep.subr.bf16.mxu0 %v4217_v35 }
0x22e2   :  { %3451 = vmatpush1.bf16.msra.mxu0 %v4218_v40  ;;  %v4224_v40 = vld [vmem:[#allocation3 + $0x64] ss:$8 sps:$4 sm:$0xff]  }
0x22e3   :  { %3452 = vmatprep.subr.bf16.mxu0 %v4219_v33  ;;  %v4225_v33 = vld [vmem:[#allocation3 + $0x60] ss:$8 sps:$4 sm:$0xff]  }
0x22e6   :  { %3453 = vmatpush1.bf16.msra.mxu0 %v4220_v6  ;;  %v4226_v6 = vld [vmem:[#allocation3 + $0x54] ss:$8 sps:$4 sm:$0xff]  }
0x22e7   :  { %3454 = vmatprep.subr.bf16.mxu0 %v4221_v36  ;;  %v4227_v36 = vld [vmem:[#allocation3 + $0x50] ss:$8 sps:$4 sm:$0xff]  }
0x22ea   :  { %3455 = vmatpush1.bf16.msra.mxu0 %v4222_v7  ;;  %v4228_v7 = vld [vmem:[#allocation3 + $0x44] ss:$8 sps:$4 sm:$0xff]  }
0x22ed   :  { %3734 = vmatmul.mubr.msk.bf16.vlgmr.msra.gmra.mxu0 %vm343_vm0, %v3315_v15 }
0x238d   :  { %v3232_v27 = vpop.f32.mrf.mxu0 }
0x238e   :  { %v3233_v39 = vadd.f32 %v3232_v27, %v4441_v23  ;;  %v4229_v27 = vld [vmem:[#allocation3 + $0x40] ss:$8 sps:$4 sm:$0xff]  }
0x238f   :  { %v3234_v46 = vpop.f32.mrf.mxu0 }
0x2390   :  { %v3235_v17 = vadd.f32 %v3234_v46, %v4444_v24 }
0x2391   :  { %v3236_v10 = vpop.f32.mrf.mxu0 }
0x2393   :  { %v3237_v44 = vpop.f32.mrf.mxu0 }
0x239d   :  { %v3353_v58 = vpop.f32.mrf.mxu0 }
0x239e   :  { %v3360_v50 = vadd.f32 %v3353_v58, %v3233_v39 }
0x239f   :  { %v3355_v51 = vpop.f32.mrf.mxu0 }
0x23a0   :  { %v3361_v9 = vadd.f32 %v3355_v51, %v3235_v17  ;;  %v3731_v52 = vmul.f32 -1.442695, %v3360_v50 }
0x23a1   :  { %v3357_v4 = vpop.f32.mrf.mxu0 }
0x23a2   :  { %4129 = vtanh.f32 %v3361_v9  ;;  %v3732_v41 = vmul.f32 -1.442695, %v3361_v9 }
0x23a3   :  { %v3358_v45 = vpop.f32.mrf.mxu0 }
0x23ad   :  { %v3474_v60 = vpop.f32.mrf.mxu0 }
0x23ae   :  { %v3481_v25 = vadd.f32 %v3474_v60, %v258_v16 }
0x23af   :  { %v3476_v3 = vpop.f32.mrf.mxu0  ;;  %v4130_v63 = vpop.eup %4129 }
0x23b0   :  { %3377 = vrot.lane.b32.xlu1 %v4130_v63, %s4256_s24  ;;  %v3482_v18 = vadd.f32 %v3476_v3, %v259_v57  ;;  %v3735_v19 = vmul.f32 -1.442695, %v3481_v25 }
0x23b1   :  { %v3478_v38 = vpop.f32.mrf.mxu0 }
0x23b2   :  { %4131 = vtanh.f32 %v3482_v18 }
0x23b3   :  { %v3479_v14 = vpop.f32.mrf.mxu0  ;;  %4133 = vpow2.f32 %v3731_v52 }
0x23b4   :  { %4135 = vpow2.f32 %v3735_v19 }
0x23bf   :  { %v4132_v30 = vpop.eup %4131 }
0x23c0   :  { %3498 = vrot.lane.b32.xlu0 %v4132_v30, %s4256_s24  ;;  %v4134_v55 = vpop.eup %4133 }
0x23c1   :  { %v3368_v54 = vadd.f32 1.0, %v4134_v55  ;;  %v4136_v61 = vpop.eup %4135 }
0x23c2   :  { %v3489_v26 = vadd.f32 1.0, %v4136_v61  ;;  %v3590_v61 = vld [vmem:[%s5322_s2 + $0x3] ss:$0 sm:$0xff] }
0x23c3   :  { %4137 = vrcp.f32 %v3368_v54 }
0x23c4   :  { %4139 = vrcp.f32 %v3489_v26 }
0x23d0   :  { %v4138_v48 = vpop.eup %4137 }
0x23d1   :  { %v4140_v62 = vpop.eup %4139  ;;  %v3375_v28 = vmul.f32 %v4138_v48, %v5260_v49  ;;  %v3736_v49 = vmul.f32 -1.442695, %v3482_v18 }
0x23d2   :  { %v3496_v59 = vmul.f32 %v4140_v62, %v5265_v53  ;;  %v4223_v53 = vld [vmem:[#allocation3 + $0x70] ss:$8 sps:$4 sm:$0xff]  }
0x2422   :  { %v3378_v5 = vpop.permute.xlu1 %3377 }
0x2423   :  { %v3380_v12 = vmul.f32 %v4138_v48, %v3378_v5 }
0x2425   :  { %3382 = vrot.lane.b32.xlu1 %v3380_v12, %s4256_s24 }
0x2432   :  { %v3499_v11 = vpop.permute.xlu0 %3498 }
0x2433   :  { %v3501_v43 = vmul.f32 %v4140_v62, %v3499_v11  ;;  %v3591_v62 = vld [vmem:[%s5322_s2 + $0x4] ss:$0 sm:$0xff] }
0x2435   :  { %3503 = vrot.lane.b32.xlu0 %v3501_v43, %s4256_s24 }
0x2497   :  { %v3383_v29 = vpop.permute.xlu1 %3382 }
0x2498   :  { %v5295_v13 = vadd.f32 %v3383_v29, %v3375_v28 }
0x249a   :  { %4141 = vtanh.f32 %v5295_v13 }
0x24a7   :  { %v4142_v20 = vpop.eup %4141  ;;  %v3504_v1 = vpop.permute.xlu0 %3503 }
0x24a8   :  { %3388 = vrot.lane.b32.xlu1 %v4142_v20, %s4256_s24  ;;  %v3506_v32 = vadd.f32 %v3504_v1, %v3496_v59 }
0x24aa   :  { %4143 = vtanh.f32 %v3506_v32 }
0x24ab   :  { %4145 = vpow2.f32 %v3732_v41 }
0x24ac   :  { %4147 = vpow2.f32 %v3736_v49 }
0x24b7   :  { %v4144_v21 = vpop.eup %4143 }
0x24b8   :  { %3509 = vrot.lane.b32.xlu0 %v4144_v21, %s4256_s24  ;;  %v4146_v31 = vpop.eup %4145 }
0x24b9   :  { %v3369_v2 = vadd.f32 1.0, %v4146_v31  ;;  %v4148_v56 = vpop.eup %4147 }
0x24ba   :  { %v3490_v47 = vadd.f32 1.0, %v4148_v56 }
0x24bb   :  { %4149 = vrcp.f32 %v3369_v2 }
0x24bc   :  { %4151 = vrcp.f32 %v3490_v47 }
0x24c8   :  { %v4150_v34 = vpop.eup %4149 }
0x24c9   :  { %v4152_v46 = vpop.eup %4151 }
0x251a   :  { %v3389_v8 = vpop.permute.xlu1 %3388 }
0x251b   :  { %v3391_v15 = vmul.f32 %v4150_v34, %v3389_v8 }
0x251d   :  { %v3392_v35 = vpack.c.bf16 %v3391_v15, %v3391_v15 }
0x251f   :  { %3733 = vmatmul.mubr.msk.bf16.vlgmr.msra.gmra.mxu1 %vm343_vm0, %v3392_v35 }
0x2520   :  { %3526 = vmatpush1.bf16.msra.mxu1 %v4223_v53  ;;  %3549 = vmatprep.mubr.bf16.mxu1 %v4255_v0 }
0x2521   :  { %3527 = vmatprep.subr.bf16.mxu1 %v4224_v40 }
0x2524   :  { %3528 = vmatpush1.bf16.msra.mxu1 %v4225_v33 }
0x2525   :  { %3529 = vmatprep.subr.bf16.mxu1 %v4226_v6 }
0x2528   :  { %3530 = vmatpush1.bf16.msra.mxu1 %v4227_v36 }
0x2529   :  { %3531 = vmatprep.subr.bf16.mxu1 %v4228_v7 }
0x252a   :  { %v3510_v10 = vpop.permute.xlu0 %3509 }
0x252b   :  { %v3512_v44 = vmul.f32 %v4152_v46, %v3510_v10 }
0x252c   :  { %3532 = vmatpush1.bf16.msra.mxu1 %v4229_v27 }
0x252d   :  { %v3513_v39 = vpack.c.bf16 %v3512_v44, %v3512_v44 }
0x252f   :  { %3737 = vmatmul.mubr.msk.bf16.vlgmr.msra.gmra.mxu1 %vm343_vm0, %v3513_v39 }
0x25df   :  { %v3430_v58 = vpop.f32.mrf.mxu1 }
0x25e0   :  { %v3431_v51 = vadd.f32 %v3430_v58, %v4441_v23 }
0x25e1   :  { %v3432_v0 = vpop.f32.mrf.mxu1 }
0x25e2   :  { %v3433_v4 = vadd.f32 %v3432_v0, %v4444_v24 }
0x25e3   :  { %v3434_v17 = vpop.f32.mrf.mxu1 }
0x25e5   :  { %v3435_v50 = vpop.f32.mrf.mxu1 }
0x25ef   :  { %v3551_v9 = vpop.f32.mrf.mxu1 }
0x25f0   :  { %v3558_v45 = vadd.f32 %v3551_v9, %v3431_v51 }
0x25f1   :  { %v3553_v37 = vpop.f32.mrf.mxu1 }
0x25f2   :  { %v3559_v42 = vadd.f32 %v3553_v37, %v3433_v4  ;;  %v3738_v63 = vmul.f32 -1.442695, %v3558_v45 }
0x25f3   :  { %v3555_v60 = vpop.f32.mrf.mxu1 }
0x25f4   :  { %4153 = vtanh.f32 %v3559_v42  ;;  %v3739_v25 = vmul.f32 -1.442695, %v3559_v42 }
0x25f5   :  { %v3556_v57 = vpop.f32.mrf.mxu1  ;;  %4155 = vpow2.f32 %v3738_v63 }
0x2601   :  { %v4154_v3 = vpop.eup %4153 }
0x2602   :  { %3575 = vrot.lane.b32.xlu1 %v4154_v3, %s4256_s24  ;;  %v4156_v38 = vpop.eup %4155 }
0x2603   :  { %v3566_v18 = vadd.f32 1.0, %v4156_v38 }
0x2605   :  { %4157 = vrcp.f32 %v3566_v18 }
0x2612   :  { %v4158_v14 = vpop.eup %4157 }
0x2613   :  { %v3573_v24 = vmul.f32 %v4158_v14, %v5295_v13 }
0x2674   :  { %v3576_v30 = vpop.permute.xlu1 %3575 }
0x2675   :  { %v3578_v23 = vmul.f32 %v4158_v14, %v3576_v30 }
0x2677   :  { %3580 = vrot.lane.b32.xlu0 %v3578_v23, %s4256_s24 }
0x26e9   :  { %v3581_v52 = vpop.permute.xlu0 %3580 }
0x26ea   :  { %v3583_v22 = vadd.f32 %v3581_v52, %v3573_v24 }
0x26ec   :  { %4159 = vtanh.f32 %v3583_v22 }
0x26ed   :  { %4161 = vpow2.f32 %v3739_v25 }
0x26f9   :  { %v4160_v16 = vpop.eup %4159 }
0x26fa   :  { %3586 = vrot.lane.b32.xlu1 %v4160_v16, %s4256_s24  ;;  %v4162_v55 = vpop.eup %4161 }
0x26fb   :  { %v3567_v19 = vadd.f32 1.0, %v4162_v55 }
0x26fd   :  { %4163 = vrcp.f32 %v3567_v19 }
0x270a   :  { %v4164_v54 = vpop.eup %4163 }
0x276c   :  { %v3587_v48 = vpop.permute.xlu1 %3586 }
0x276d   :  { %v3589_v5 = vmul.f32 %v4164_v54, %v3587_v48 }
0x276f   :  { %v3592_v12 = vmul.f32 %v3590_v61, %v3589_v5 }
0x2771   :  { %v3593_v26 = vsel %vm343_vm0, %v3592_v12, 0.0 }
0x2772   :  { %3594 = vadd.xlane.f32.xlu0 %v3593_v26 }
0x27fb   :  { %v3595_v11 = vpop.xlane.xlu0 %3594 }
0x27fc   :  { %v3596_v43 = vadd.f32 %v3595_v11, %v3591_v62 }
0x27fe   :  { %3598 = vst.msk [vmem:[%s5323_s3] sm:$0xff] %vm3597_vm1, %v3596_v43 }
0x27ff   :  { %3603 = vsyncpa [#allocation4], 1 }

</bundles_post_ra>
